<compile_context>
chip_gen: v7x
topology: tpu7x:2x2x1
jax: 0.10.0
libtpu: 0.0.40
codegen_flags: <defaults>
</compile_context>

<pallas_src>
import jax
import jax.numpy as jnp
from jax import lax
from jax.experimental import pallas as pl
from jax.experimental.pallas import tpu as pltpu

# ----------------------------- config -------------------------------------
B, S = 2, 8                 # batch, sequence length
VOCAB = 64
H = 32                      # hidden size
NUM_HEADS = 4
HEAD_DIM = H // NUM_HEADS
FFN = 64                    # intermediate size
NUM_LAYERS = 4
H2 = H // 2
LN_EPS = 1e-12              # BERT LayerNorm eps
CLS_LN_EPS = 1e-5           # nn.LayerNorm default eps (classifier head)

_VMEM = pl.BlockSpec(memory_space=pltpu.MemorySpace.VMEM)


# --------------------------- small helpers ---------------------------------
def _layer_norm(x, g, b, eps):
    m = jnp.mean(x, axis=-1, keepdims=True)
    v = jnp.mean((x - m) ** 2, axis=-1, keepdims=True)
    return (x - m) * lax.rsqrt(v + eps) * g + b


def _mish(x):
    # mish(x) = x * tanh(softplus(x)); softplus with overflow guard (matches
    # torch's thresholded softplus).
    sp = jnp.where(x > 20.0, x, jnp.log1p(jnp.exp(jnp.minimum(x, 20.0))))
    return x * jnp.tanh(sp)


# ----------------------- fused forward kernel ------------------------------
def fused_forward_kernel(x_ref, mask_ref, wqkv_ref, wo_ref, w1_ref, w2_ref,
                         lvec_ref, cw1_ref, cw2_ref, cvec_ref, out_ref):
    x = x_ref[...].astype(jnp.float32)          # (B, S, H)
    mask = mask_ref[...].astype(jnp.float32)    # (B, S)
    lvec = lvec_ref[...]                        # (L, 8, 128) packed layer vectors
    cvec = cvec_ref[...]                        # (10, 128)  packed classifier vecs

    # attention bias: computed once, reused by every layer / head
    attn_bias = ((1.0 - mask) * (-1e9))[:, None, :]     # (B, 1, S)
    scale = 1.0 / jnp.sqrt(jnp.float32(HEAD_DIM))

    cls_tokens = []
    for l in range(NUM_LAYERS):                 # static unroll (4 layers)
        x_bf = x.astype(jnp.bfloat16)

        # fused QKV projection: one (B*S, H) @ (H, 3H) MXU op
        qkv = jnp.einsum('bsh,hk->bsk', x_bf, wqkv_ref[l],
                         preferred_element_type=jnp.float32)
        qkv = qkv + lvec[l, 0, :3 * H]          # (B, S, 3H)

        # attention, per-head (score / context matmuls only; projections fused)
        ctx_heads = []
        for h in range(NUM_HEADS):
            o = h * HEAD_DIM
            qh = qkv[..., o:o + HEAD_DIM]                       # (B, S, D)
            kh = qkv[..., H + o:H + o + HEAD_DIM]
            vh = qkv[..., 2 * H + o:2 * H + o + HEAD_DIM]
            scores = jnp.einsum('bqd,bkd->bqk',
                                qh.astype(jnp.bfloat16), kh.astype(jnp.bfloat16),
                                preferred_element_type=jnp.float32) * scale
            scores = scores + attn_bias
            scores = scores - jnp.max(scores, axis=-1, keepdims=True)
            p = jnp.exp(scores)
            p = p * pl.reciprocal(jnp.sum(p, axis=-1, keepdims=True), approx=True)
            ctx_heads.append(jnp.einsum('bqk,bkd->bqd',
                                        p.astype(jnp.bfloat16),
                                        vh.astype(jnp.bfloat16),
                                        preferred_element_type=jnp.float32))
        ctx = jnp.concatenate(ctx_heads, axis=-1)               # (B, S, H)

        attn_out = jnp.einsum('bsh,hk->bsk', ctx.astype(jnp.bfloat16), wo_ref[l],
                              preferred_element_type=jnp.float32) + lvec[l, 1, :H]

        h1 = _layer_norm(x + attn_out, lvec[l, 2, :H], lvec[l, 3, :H], LN_EPS)

        ffn = jnp.einsum('bsh,hf->bsf', h1.astype(jnp.bfloat16), w1_ref[l],
                         preferred_element_type=jnp.float32) + lvec[l, 4, :FFN]
        ffn = jax.nn.gelu(ffn)
        ffn = jnp.einsum('bsf,fh->bsh', ffn.astype(jnp.bfloat16), w2_ref[l],
                         preferred_element_type=jnp.float32) + lvec[l, 5, :H]

        x = _layer_norm(h1 + ffn, lvec[l, 6, :H], lvec[l, 7, :H], LN_EPS)
        cls_tokens.append(x[:, 0, :])           # (B, H) CLS of this layer

    # [h09, h10, h11, h12] (oldest->newest), matching the PyTorch module
    concat = jnp.concatenate(cls_tokens, axis=-1)   # (B, 4H) = (2, 128)

    # classifier ('ln'): Linear -> LayerNorm -> Mish (x2), Linear -> LayerNorm(1)
    # Dropout layers run as identity (inference mode).
    hcl = jnp.dot(concat.astype(jnp.bfloat16), cw1_ref[...],
                  preferred_element_type=jnp.float32) + cvec[0, :H]
    hcl = _mish(_layer_norm(hcl, cvec[1, :H], cvec[2, :H], CLS_LN_EPS))
    hcl = jnp.dot(hcl.astype(jnp.bfloat16), cw2_ref[...],
                  preferred_element_type=jnp.float32) + cvec[3, :H2]
    hcl = _mish(_layer_norm(hcl, cvec[4, :H2], cvec[5, :H2], CLS_LN_EPS))
    # final Linear (H//2 -> 1) as a lane multiply-reduce (weight stored as a row)
    logits = jnp.sum(hcl * cvec[6, :H2][None, :], axis=-1, keepdims=True)
    logits = logits + cvec[7, 0:1]
    # LayerNorm over a size-1 feature dim (exact PyTorch semantics: mean == x,
    # var == 0 -> output equals the LN bias).
    logits = _layer_norm(logits, cvec[8, 0:1], cvec[9, 0:1], CLS_LN_EPS)

    out_ref[...] = logits.astype(out_ref.dtype)


def fused_forward(x, mask, pk):
    args = (x, mask, pk['wqkv'], pk['wo'], pk['w1'], pk['w2'], pk['lvec'],
            pk['cw1'], pk['cw2'], pk['cvec'])
    return pl.pallas_call(
        fused_forward_kernel,
        out_shape=jax.ShapeDtypeStruct((x.shape[0], 1), jnp.float32),
        in_specs=[_VMEM] * len(args),
        out_specs=_VMEM,
    )(*args)


# ------------------------------ parameters ----------------------------------
def init_params(key):
    keys = iter(jax.random.split(key, 64))

    def nrm(shape):
        return (0.02 * jax.random.normal(next(keys), shape)).astype(jnp.float32)

    params = {
        'word_emb': nrm((VOCAB, H)),
        'pos_emb': nrm((S, H)),
        'emb_ln_g': jnp.ones((H,), jnp.float32),
        'emb_ln_b': jnp.zeros((H,), jnp.float32),
        'layers': [],
    }
    for _ in range(NUM_LAYERS):
        params['layers'].append({
            'wq': nrm((H, H)), 'bq': nrm((H,)),
            'wk': nrm((H, H)), 'bk': nrm((H,)),
            'wv': nrm((H, H)), 'bv': nrm((H,)),
            'wo': nrm((H, H)), 'bo': nrm((H,)),
            'ln1_g': jnp.ones((H,), jnp.float32), 'ln1_b': jnp.zeros((H,), jnp.float32),
            'w1': nrm((H, FFN)), 'b1': nrm((FFN,)),
            'w2': nrm((FFN, H)), 'b2': nrm((H,)),
            'ln2_g': jnp.ones((H,), jnp.float32), 'ln2_b': jnp.zeros((H,), jnp.float32),
        })
    # classifier sizes: [4H, H, H//2, 1]
    params['cls'] = {
        'w1': nrm((4 * H, H)), 'b1': nrm((H,)),
        'g1': jnp.ones((H,), jnp.float32), 'be1': jnp.zeros((H,), jnp.float32),
        'w2': nrm((H, H2)), 'b2': nrm((H2,)),
        'g2': jnp.ones((H2,), jnp.float32), 'be2': jnp.zeros((H2,), jnp.float32),
        'w3': nrm((H2, 1)), 'b3': nrm((1,)),
        'g3': jnp.ones((1,), jnp.float32), 'be3': jnp.zeros((1,), jnp.float32),
    }
    return params


def pack_params(params):
    """Stack per-layer weights, cast matmul weights to bf16, pack all small
    vectors into lane-dense (.., 128) f32 buffers."""
    def pad128(v):
        v = v.astype(jnp.float32)
        return jnp.pad(v, (0, 128 - v.shape[0]))

    layers = params['layers']
    wqkv = jnp.stack([jnp.concatenate([lp['wq'], lp['wk'], lp['wv']], axis=1)
                      for lp in layers]).astype(jnp.bfloat16)        # (L, H, 3H)
    wo = jnp.stack([lp['wo'] for lp in layers]).astype(jnp.bfloat16)  # (L, H, H)
    w1 = jnp.stack([lp['w1'] for lp in layers]).astype(jnp.bfloat16)  # (L, H, FFN)
    w2 = jnp.stack([lp['w2'] for lp in layers]).astype(jnp.bfloat16)  # (L, FFN, H)
    lvec = jnp.stack([jnp.stack([
        pad128(jnp.concatenate([lp['bq'], lp['bk'], lp['bv']])),      # row 0: bqkv
        pad128(lp['bo']),                                             # row 1
        pad128(lp['ln1_g']), pad128(lp['ln1_b']),                     # rows 2,3
        pad128(lp['b1']), pad128(lp['b2']),                           # rows 4,5
        pad128(lp['ln2_g']), pad128(lp['ln2_b']),                     # rows 6,7
    ]) for lp in layers])                                             # (L, 8, 128)

    c = params['cls']
    cvec = jnp.stack([
        pad128(c['b1']), pad128(c['g1']), pad128(c['be1']),           # rows 0-2
        pad128(c['b2']), pad128(c['g2']), pad128(c['be2']),           # rows 3-5
        pad128(c['w3'][:, 0]),                                        # row 6: final weight
        pad128(c['b3']), pad128(c['g3']), pad128(c['be3']),           # rows 7-9
    ])                                                                # (10, 128)

    return {
        'word_emb': params['word_emb'], 'pos_emb': params['pos_emb'],
        'emb_ln_g': params['emb_ln_g'], 'emb_ln_b': params['emb_ln_b'],
        'wqkv': wqkv, 'wo': wo, 'w1': w1, 'w2': w2, 'lvec': lvec,
        'cw1': c['w1'].astype(jnp.bfloat16), 'cw2': c['w2'].astype(jnp.bfloat16),
        'cvec': cvec,
    }


# ------------------------------- forward ------------------------------------
def model_bigbird_forward(packed, input_ids, attention_masks):
    # TODO(synk): embedding gather + dropout (identity at inference) kept as
    # plain-JAX glue; everything else runs inside one fused Pallas kernel.
    emb = packed['word_emb'][input_ids] + packed['pos_emb'][None, :, :]
    x = _layer_norm(emb, packed['emb_ln_g'], packed['emb_ln_b'], LN_EPS)
    x = x.astype(jnp.float32)
    return fused_forward(x, attention_masks.astype(jnp.float32), packed)  # (B, 1)


# -------------------------------- main --------------------------------------
if __name__ == "__main__":
    key = jax.random.PRNGKey(0)
    k_param, k_ids = jax.random.split(key)

    params = init_params(k_param)
    packed = pack_params(params)
    input_ids = jax.random.randint(k_ids, (B, S), 0, VOCAB, dtype=jnp.int32)
    attention_masks = jnp.ones((B, S), jnp.float32)

    out = model_bigbird_forward(packed, input_ids, attention_masks)
    out = jax.block_until_ready(out)
    assert out.shape == (B, 1) and out.dtype == jnp.float32
    print("KERNEL_OK")
</pallas_src>

<mosaic_0001>
module attributes {stable_mosaic.version = 11 : i64} {
  func.func @fused_forward_kernel(%arg0: memref<2x8x32xf32, #tpu.memory_space<vmem>>, %arg1: memref<2x8xf32, #tpu.memory_space<vmem>>, %arg2: memref<4x32x96xbf16, #tpu.memory_space<vmem>>, %arg3: memref<4x32x32xbf16, #tpu.memory_space<vmem>>, %arg4: memref<4x32x64xbf16, #tpu.memory_space<vmem>>, %arg5: memref<4x64x32xbf16, #tpu.memory_space<vmem>>, %arg6: memref<4x8x128xf32, #tpu.memory_space<vmem>>, %arg7: memref<128x32xbf16, #tpu.memory_space<vmem>>, %arg8: memref<32x16xbf16, #tpu.memory_space<vmem>>, %arg9: memref<10x128xf32, #tpu.memory_space<vmem>>, %arg10: memref<2x1xf32, #tpu.memory_space<vmem>>) attributes {dimension_semantics = [], scalar_prefetch = 0 : i64, scratch_operands = 0 : i64, tpu.core_type = #tpu.core_type<tc>} {
    %c0 = arith.constant 0 : index
    %c0_0 = arith.constant 0 : index
    %c0_1 = arith.constant 0 : index
    %0 = vector.load %arg0[%c0, %c0_0, %c0_1] : memref<2x8x32xf32, #tpu.memory_space<vmem>>, vector<2x8x32xf32>
    %c0_2 = arith.constant 0 : index
    %c0_3 = arith.constant 0 : index
    %1 = vector.load %arg1[%c0_2, %c0_3] : memref<2x8xf32, #tpu.memory_space<vmem>>, vector<2x8xf32>
    %c0_4 = arith.constant 0 : index
    %c0_5 = arith.constant 0 : index
    %c0_6 = arith.constant 0 : index
    %2 = vector.load %arg6[%c0_4, %c0_5, %c0_6] : memref<4x8x128xf32, #tpu.memory_space<vmem>>, vector<4x8x128xf32>
    %c0_7 = arith.constant 0 : index
    %c0_8 = arith.constant 0 : index
    %3 = vector.load %arg9[%c0_7, %c0_8] : memref<10x128xf32, #tpu.memory_space<vmem>>, vector<10x128xf32>
    %cst = arith.constant 1.000000e+00 : f32
    %4 = vector.broadcast %cst : f32 to vector<2x8xf32>
    %5 = arith.subf %4, %1 : vector<2x8xf32>
    %cst_9 = arith.constant -1.000000e+09 : f32
    %6 = vector.broadcast %cst_9 : f32 to vector<2x8xf32>
    %7 = arith.mulf %5, %6 : vector<2x8xf32>
    %8 = vector.shape_cast %7 : vector<2x8xf32> to vector<2x1x8xf32>
    %cst_10 = arith.constant 8.000000e+00 : f32
    %9 = math.sqrt %cst_10 : f32
    %cst_11 = arith.constant 1.000000e+00 : f32
    %10 = arith.divf %cst_11, %9 : f32
    %11 = arith.truncf %0 : vector<2x8x32xf32> to vector<2x8x32xbf16>
    %c0_12 = arith.constant 0 : index
    %c0_13 = arith.constant 0 : index
    %c0_14 = arith.constant 0 : index
    %12 = vector.load %arg2[%c0_12, %c0_13, %c0_14] : memref<4x32x96xbf16, #tpu.memory_space<vmem>>, vector<1x32x96xbf16>
    %13 = vector.shape_cast %12 : vector<1x32x96xbf16> to vector<32x96xbf16>
    "tpu.trace_start"() <{level = 10 : i32, message = "bsh,hk->bsk"}> : () -> ()
    %cst_15 = arith.constant dense<0.000000e+00> : vector<2x8x96xf32>
    %14 = tpu.matmul %11, %13, %cst_15 {dimension_numbers = #tpu.dot_dimension_numbers<[2], [0], [0, 1], [1], [0, 0, 0, 1, 1, 1], [], []>} : vector<2x8x32xbf16>, vector<32x96xbf16>, vector<2x8x96xf32> -> vector<2x8x96xf32>
    "tpu.trace_stop"() : () -> ()
    %15 = vector.extract_strided_slice %2 {offsets = [0, 0, 0], sizes = [1, 1, 96], strides = [1, 1, 1]} : vector<4x8x128xf32> to vector<1x1x96xf32>
    %16 = vector.shape_cast %15 : vector<1x1x96xf32> to vector<96xf32>
    %17 = vector.shape_cast %16 : vector<96xf32> to vector<1x1x96xf32>
    %18 = vector.broadcast %17 : vector<1x1x96xf32> to vector<2x8x96xf32>
    %19 = arith.addf %14, %18 : vector<2x8x96xf32>
    %20 = vector.extract_strided_slice %19 {offsets = [0, 0, 0], sizes = [2, 8, 8], strides = [1, 1, 1]} : vector<2x8x96xf32> to vector<2x8x8xf32>
    %21 = vector.extract_strided_slice %19 {offsets = [0, 0, 32], sizes = [2, 8, 8], strides = [1, 1, 1]} : vector<2x8x96xf32> to vector<2x8x8xf32>
    %22 = vector.extract_strided_slice %19 {offsets = [0, 0, 64], sizes = [2, 8, 8], strides = [1, 1, 1]} : vector<2x8x96xf32> to vector<2x8x8xf32>
    %23 = arith.truncf %20 : vector<2x8x8xf32> to vector<2x8x8xbf16>
    %24 = arith.truncf %21 : vector<2x8x8xf32> to vector<2x8x8xbf16>
    "tpu.trace_start"() <{level = 10 : i32, message = "bqd,bkd->bqk"}> : () -> ()
    %cst_16 = arith.constant dense<0.000000e+00> : vector<2x8x8xf32>
    %25 = tpu.matmul %23, %24, %cst_16 {dimension_numbers = #tpu.dot_dimension_numbers<[2], [2], [1], [1], [0, 0, 0, 1, 1, 1], [0], [0]>} : vector<2x8x8xbf16>, vector<2x8x8xbf16>, vector<2x8x8xf32> -> vector<2x8x8xf32>
    "tpu.trace_stop"() : () -> ()
    %26 = vector.broadcast %10 : f32 to vector<2x8x8xf32>
    %27 = arith.mulf %25, %26 : vector<2x8x8xf32>
    %28 = vector.broadcast %8 : vector<2x1x8xf32> to vector<2x8x8xf32>
    %29 = arith.addf %27, %28 : vector<2x8x8xf32>
    %cst_17 = arith.constant dense<0xFF800000> : vector<2x8xf32>
    %30 = vector.multi_reduction <maximumf>, %29, %cst_17 [2] : vector<2x8x8xf32> to vector<2x8xf32>
    %31 = vector.shape_cast %30 : vector<2x8xf32> to vector<2x8x1xf32>
    %32 = vector.broadcast %31 : vector<2x8x1xf32> to vector<2x8x8xf32>
    %33 = arith.subf %29, %32 : vector<2x8x8xf32>
    %34 = math.exp %33 : vector<2x8x8xf32>
    %cst_18 = arith.constant dense<0.000000e+00> : vector<2x8xf32>
    %35 = vector.multi_reduction <add>, %34, %cst_18 [2] : vector<2x8x8xf32> to vector<2x8xf32>
    %36 = vector.shape_cast %35 : vector<2x8xf32> to vector<2x8x1xf32>
    %37 = tpu.reciprocal %36 {approx = true} : vector<2x8x1xf32> -> vector<2x8x1xf32>
    %38 = vector.broadcast %37 : vector<2x8x1xf32> to vector<2x8x8xf32>
    %39 = arith.mulf %34, %38 : vector<2x8x8xf32>
    %40 = arith.truncf %39 : vector<2x8x8xf32> to vector<2x8x8xbf16>
    %41 = arith.truncf %22 : vector<2x8x8xf32> to vector<2x8x8xbf16>
    "tpu.trace_start"() <{level = 10 : i32, message = "bqk,bkd->bqd"}> : () -> ()
    %cst_19 = arith.constant dense<0.000000e+00> : vector<2x8x8xf32>
    %42 = tpu.matmul %40, %41, %cst_19 {dimension_numbers = #tpu.dot_dimension_numbers<[2], [1], [1], [2], [0, 0, 0, 1, 1, 2], [0], [0]>} : vector<2x8x8xbf16>, vector<2x8x8xbf16>, vector<2x8x8xf32> -> vector<2x8x8xf32>
    "tpu.trace_stop"() : () -> ()
    %43 = vector.extract_strided_slice %19 {offsets = [0, 0, 8], sizes = [2, 8, 8], strides = [1, 1, 1]} : vector<2x8x96xf32> to vector<2x8x8xf32>
    %44 = vector.extract_strided_slice %19 {offsets = [0, 0, 40], sizes = [2, 8, 8], strides = [1, 1, 1]} : vector<2x8x96xf32> to vector<2x8x8xf32>
    %45 = vector.extract_strided_slice %19 {offsets = [0, 0, 72], sizes = [2, 8, 8], strides = [1, 1, 1]} : vector<2x8x96xf32> to vector<2x8x8xf32>
    %46 = arith.truncf %43 : vector<2x8x8xf32> to vector<2x8x8xbf16>
    %47 = arith.truncf %44 : vector<2x8x8xf32> to vector<2x8x8xbf16>
    "tpu.trace_start"() <{level = 10 : i32, message = "bqd,bkd->bqk"}> : () -> ()
    %cst_20 = arith.constant dense<0.000000e+00> : vector<2x8x8xf32>
    %48 = tpu.matmul %46, %47, %cst_20 {dimension_numbers = #tpu.dot_dimension_numbers<[2], [2], [1], [1], [0, 0, 0, 1, 1, 1], [0], [0]>} : vector<2x8x8xbf16>, vector<2x8x8xbf16>, vector<2x8x8xf32> -> vector<2x8x8xf32>
    "tpu.trace_stop"() : () -> ()
    %49 = vector.broadcast %10 : f32 to vector<2x8x8xf32>
    %50 = arith.mulf %48, %49 : vector<2x8x8xf32>
    %51 = vector.broadcast %8 : vector<2x1x8xf32> to vector<2x8x8xf32>
    %52 = arith.addf %50, %51 : vector<2x8x8xf32>
    %cst_21 = arith.constant dense<0xFF800000> : vector<2x8xf32>
    %53 = vector.multi_reduction <maximumf>, %52, %cst_21 [2] : vector<2x8x8xf32> to vector<2x8xf32>
    %54 = vector.shape_cast %53 : vector<2x8xf32> to vector<2x8x1xf32>
    %55 = vector.broadcast %54 : vector<2x8x1xf32> to vector<2x8x8xf32>
    %56 = arith.subf %52, %55 : vector<2x8x8xf32>
    %57 = math.exp %56 : vector<2x8x8xf32>
    %cst_22 = arith.constant dense<0.000000e+00> : vector<2x8xf32>
    %58 = vector.multi_reduction <add>, %57, %cst_22 [2] : vector<2x8x8xf32> to vector<2x8xf32>
    %59 = vector.shape_cast %58 : vector<2x8xf32> to vector<2x8x1xf32>
    %60 = tpu.reciprocal %59 {approx = true} : vector<2x8x1xf32> -> vector<2x8x1xf32>
    %61 = vector.broadcast %60 : vector<2x8x1xf32> to vector<2x8x8xf32>
    %62 = arith.mulf %57, %61 : vector<2x8x8xf32>
    %63 = arith.truncf %62 : vector<2x8x8xf32> to vector<2x8x8xbf16>
    %64 = arith.truncf %45 : vector<2x8x8xf32> to vector<2x8x8xbf16>
    "tpu.trace_start"() <{level = 10 : i32, message = "bqk,bkd->bqd"}> : () -> ()
    %cst_23 = arith.constant dense<0.000000e+00> : vector<2x8x8xf32>
    %65 = tpu.matmul %63, %64, %cst_23 {dimension_numbers = #tpu.dot_dimension_numbers<[2], [1], [1], [2], [0, 0, 0, 1, 1, 2], [0], [0]>} : vector<2x8x8xbf16>, vector<2x8x8xbf16>, vector<2x8x8xf32> -> vector<2x8x8xf32>
    "tpu.trace_stop"() : () -> ()
    %66 = vector.extract_strided_slice %19 {offsets = [0, 0, 16], sizes = [2, 8, 8], strides = [1, 1, 1]} : vector<2x8x96xf32> to vector<2x8x8xf32>
    %67 = vector.extract_strided_slice %19 {offsets = [0, 0, 48], sizes = [2, 8, 8], strides = [1, 1, 1]} : vector<2x8x96xf32> to vector<2x8x8xf32>
    %68 = vector.extract_strided_slice %19 {offsets = [0, 0, 80], sizes = [2, 8, 8], strides = [1, 1, 1]} : vector<2x8x96xf32> to vector<2x8x8xf32>
    %69 = arith.truncf %66 : vector<2x8x8xf32> to vector<2x8x8xbf16>
    %70 = arith.truncf %67 : vector<2x8x8xf32> to vector<2x8x8xbf16>
    "tpu.trace_start"() <{level = 10 : i32, message = "bqd,bkd->bqk"}> : () -> ()
    %cst_24 = arith.constant dense<0.000000e+00> : vector<2x8x8xf32>
    %71 = tpu.matmul %69, %70, %cst_24 {dimension_numbers = #tpu.dot_dimension_numbers<[2], [2], [1], [1], [0, 0, 0, 1, 1, 1], [0], [0]>} : vector<2x8x8xbf16>, vector<2x8x8xbf16>, vector<2x8x8xf32> -> vector<2x8x8xf32>
    "tpu.trace_stop"() : () -> ()
    %72 = vector.broadcast %10 : f32 to vector<2x8x8xf32>
    %73 = arith.mulf %71, %72 : vector<2x8x8xf32>
    %74 = vector.broadcast %8 : vector<2x1x8xf32> to vector<2x8x8xf32>
    %75 = arith.addf %73, %74 : vector<2x8x8xf32>
    %cst_25 = arith.constant dense<0xFF800000> : vector<2x8xf32>
    %76 = vector.multi_reduction <maximumf>, %75, %cst_25 [2] : vector<2x8x8xf32> to vector<2x8xf32>
    %77 = vector.shape_cast %76 : vector<2x8xf32> to vector<2x8x1xf32>
    %78 = vector.broadcast %77 : vector<2x8x1xf32> to vector<2x8x8xf32>
    %79 = arith.subf %75, %78 : vector<2x8x8xf32>
    %80 = math.exp %79 : vector<2x8x8xf32>
    %cst_26 = arith.constant dense<0.000000e+00> : vector<2x8xf32>
    %81 = vector.multi_reduction <add>, %80, %cst_26 [2] : vector<2x8x8xf32> to vector<2x8xf32>
    %82 = vector.shape_cast %81 : vector<2x8xf32> to vector<2x8x1xf32>
    %83 = tpu.reciprocal %82 {approx = true} : vector<2x8x1xf32> -> vector<2x8x1xf32>
    %84 = vector.broadcast %83 : vector<2x8x1xf32> to vector<2x8x8xf32>
    %85 = arith.mulf %80, %84 : vector<2x8x8xf32>
    %86 = arith.truncf %85 : vector<2x8x8xf32> to vector<2x8x8xbf16>
    %87 = arith.truncf %68 : vector<2x8x8xf32> to vector<2x8x8xbf16>
    "tpu.trace_start"() <{level = 10 : i32, message = "bqk,bkd->bqd"}> : () -> ()
    %cst_27 = arith.constant dense<0.000000e+00> : vector<2x8x8xf32>
    %88 = tpu.matmul %86, %87, %cst_27 {dimension_numbers = #tpu.dot_dimension_numbers<[2], [1], [1], [2], [0, 0, 0, 1, 1, 2], [0], [0]>} : vector<2x8x8xbf16>, vector<2x8x8xbf16>, vector<2x8x8xf32> -> vector<2x8x8xf32>
    "tpu.trace_stop"() : () -> ()
    %89 = vector.extract_strided_slice %19 {offsets = [0, 0, 24], sizes = [2, 8, 8], strides = [1, 1, 1]} : vector<2x8x96xf32> to vector<2x8x8xf32>
    %90 = vector.extract_strided_slice %19 {offsets = [0, 0, 56], sizes = [2, 8, 8], strides = [1, 1, 1]} : vector<2x8x96xf32> to vector<2x8x8xf32>
    %91 = vector.extract_strided_slice %19 {offsets = [0, 0, 88], sizes = [2, 8, 8], strides = [1, 1, 1]} : vector<2x8x96xf32> to vector<2x8x8xf32>
    %92 = arith.truncf %89 : vector<2x8x8xf32> to vector<2x8x8xbf16>
    %93 = arith.truncf %90 : vector<2x8x8xf32> to vector<2x8x8xbf16>
    "tpu.trace_start"() <{level = 10 : i32, message = "bqd,bkd->bqk"}> : () -> ()
    %cst_28 = arith.constant dense<0.000000e+00> : vector<2x8x8xf32>
    %94 = tpu.matmul %92, %93, %cst_28 {dimension_numbers = #tpu.dot_dimension_numbers<[2], [2], [1], [1], [0, 0, 0, 1, 1, 1], [0], [0]>} : vector<2x8x8xbf16>, vector<2x8x8xbf16>, vector<2x8x8xf32> -> vector<2x8x8xf32>
    "tpu.trace_stop"() : () -> ()
    %95 = vector.broadcast %10 : f32 to vector<2x8x8xf32>
    %96 = arith.mulf %94, %95 : vector<2x8x8xf32>
    %97 = vector.broadcast %8 : vector<2x1x8xf32> to vector<2x8x8xf32>
    %98 = arith.addf %96, %97 : vector<2x8x8xf32>
    %cst_29 = arith.constant dense<0xFF800000> : vector<2x8xf32>
    %99 = vector.multi_reduction <maximumf>, %98, %cst_29 [2] : vector<2x8x8xf32> to vector<2x8xf32>
    %100 = vector.shape_cast %99 : vector<2x8xf32> to vector<2x8x1xf32>
    %101 = vector.broadcast %100 : vector<2x8x1xf32> to vector<2x8x8xf32>
    %102 = arith.subf %98, %101 : vector<2x8x8xf32>
    %103 = math.exp %102 : vector<2x8x8xf32>
    %cst_30 = arith.constant dense<0.000000e+00> : vector<2x8xf32>
    %104 = vector.multi_reduction <add>, %103, %cst_30 [2] : vector<2x8x8xf32> to vector<2x8xf32>
    %105 = vector.shape_cast %104 : vector<2x8xf32> to vector<2x8x1xf32>
    %106 = tpu.reciprocal %105 {approx = true} : vector<2x8x1xf32> -> vector<2x8x1xf32>
    %107 = vector.broadcast %106 : vector<2x8x1xf32> to vector<2x8x8xf32>
    %108 = arith.mulf %103, %107 : vector<2x8x8xf32>
    %109 = arith.truncf %108 : vector<2x8x8xf32> to vector<2x8x8xbf16>
    %110 = arith.truncf %91 : vector<2x8x8xf32> to vector<2x8x8xbf16>
    "tpu.trace_start"() <{level = 10 : i32, message = "bqk,bkd->bqd"}> : () -> ()
    %cst_31 = arith.constant dense<0.000000e+00> : vector<2x8x8xf32>
    %111 = tpu.matmul %109, %110, %cst_31 {dimension_numbers = #tpu.dot_dimension_numbers<[2], [1], [1], [2], [0, 0, 0, 1, 1, 2], [0], [0]>} : vector<2x8x8xbf16>, vector<2x8x8xbf16>, vector<2x8x8xf32> -> vector<2x8x8xf32>
    "tpu.trace_stop"() : () -> ()
    %112 = tpu.concatenate %42, %65, %88, %111 in 2 : vector<2x8x8xf32>, vector<2x8x8xf32>, vector<2x8x8xf32>, vector<2x8x8xf32> -> vector<2x8x32xf32>
    %113 = arith.truncf %112 : vector<2x8x32xf32> to vector<2x8x32xbf16>
    %c0_32 = arith.constant 0 : index
    %c0_33 = arith.constant 0 : index
    %c0_34 = arith.constant 0 : index
    %114 = vector.load %arg3[%c0_32, %c0_33, %c0_34] : memref<4x32x32xbf16, #tpu.memory_space<vmem>>, vector<1x32x32xbf16>
    %115 = vector.shape_cast %114 : vector<1x32x32xbf16> to vector<32x32xbf16>
    "tpu.trace_start"() <{level = 10 : i32, message = "bsh,hk->bsk"}> : () -> ()
    %cst_35 = arith.constant dense<0.000000e+00> : vector<2x8x32xf32>
    %116 = tpu.matmul %113, %115, %cst_35 {dimension_numbers = #tpu.dot_dimension_numbers<[2], [0], [0, 1], [1], [0, 0, 0, 1, 1, 1], [], []>} : vector<2x8x32xbf16>, vector<32x32xbf16>, vector<2x8x32xf32> -> vector<2x8x32xf32>
    "tpu.trace_stop"() : () -> ()
    %117 = vector.extract_strided_slice %2 {offsets = [0, 1, 0], sizes = [1, 1, 32], strides = [1, 1, 1]} : vector<4x8x128xf32> to vector<1x1x32xf32>
    %118 = vector.shape_cast %117 : vector<1x1x32xf32> to vector<32xf32>
    %119 = vector.shape_cast %118 : vector<32xf32> to vector<1x1x32xf32>
    %120 = vector.broadcast %119 : vector<1x1x32xf32> to vector<2x8x32xf32>
    %121 = arith.addf %116, %120 : vector<2x8x32xf32>
    %122 = arith.addf %0, %121 : vector<2x8x32xf32>
    %123 = vector.extract_strided_slice %2 {offsets = [0, 2, 0], sizes = [1, 1, 32], strides = [1, 1, 1]} : vector<4x8x128xf32> to vector<1x1x32xf32>
    %124 = vector.shape_cast %123 : vector<1x1x32xf32> to vector<32xf32>
    %125 = vector.extract_strided_slice %2 {offsets = [0, 3, 0], sizes = [1, 1, 32], strides = [1, 1, 1]} : vector<4x8x128xf32> to vector<1x1x32xf32>
    %126 = vector.shape_cast %125 : vector<1x1x32xf32> to vector<32xf32>
    %cst_36 = arith.constant dense<0.000000e+00> : vector<2x8xf32>
    %127 = vector.multi_reduction <add>, %122, %cst_36 [2] : vector<2x8x32xf32> to vector<2x8xf32>
    %128 = vector.shape_cast %127 : vector<2x8xf32> to vector<2x8x1xf32>
    %cst_37 = arith.constant 3.200000e+01 : f32
    %129 = vector.broadcast %cst_37 : f32 to vector<2x8x1xf32>
    %130 = arith.divf %128, %129 : vector<2x8x1xf32>
    %131 = vector.broadcast %130 : vector<2x8x1xf32> to vector<2x8x32xf32>
    %132 = arith.subf %122, %131 : vector<2x8x32xf32>
    %133 = arith.mulf %132, %132 : vector<2x8x32xf32>
    %cst_38 = arith.constant dense<0.000000e+00> : vector<2x8xf32>
    %134 = vector.multi_reduction <add>, %133, %cst_38 [2] : vector<2x8x32xf32> to vector<2x8xf32>
    %135 = vector.shape_cast %134 : vector<2x8xf32> to vector<2x8x1xf32>
    %cst_39 = arith.constant 3.200000e+01 : f32
    %136 = vector.broadcast %cst_39 : f32 to vector<2x8x1xf32>
    %137 = arith.divf %135, %136 : vector<2x8x1xf32>
    %138 = vector.broadcast %130 : vector<2x8x1xf32> to vector<2x8x32xf32>
    %139 = arith.subf %122, %138 : vector<2x8x32xf32>
    %cst_40 = arith.constant 9.99999996E-13 : f32
    %140 = vector.broadcast %cst_40 : f32 to vector<2x8x1xf32>
    %141 = arith.addf %137, %140 : vector<2x8x1xf32>
    %142 = math.rsqrt %141 : vector<2x8x1xf32>
    %143 = vector.broadcast %142 : vector<2x8x1xf32> to vector<2x8x32xf32>
    %144 = arith.mulf %139, %143 : vector<2x8x32xf32>
    %145 = vector.shape_cast %124 : vector<32xf32> to vector<1x1x32xf32>
    %146 = vector.broadcast %145 : vector<1x1x32xf32> to vector<2x8x32xf32>
    %147 = arith.mulf %144, %146 : vector<2x8x32xf32>
    %148 = vector.shape_cast %126 : vector<32xf32> to vector<1x1x32xf32>
    %149 = vector.broadcast %148 : vector<1x1x32xf32> to vector<2x8x32xf32>
    %150 = arith.addf %147, %149 : vector<2x8x32xf32>
    %151 = arith.truncf %150 : vector<2x8x32xf32> to vector<2x8x32xbf16>
    %c0_41 = arith.constant 0 : index
    %c0_42 = arith.constant 0 : index
    %c0_43 = arith.constant 0 : index
    %152 = vector.load %arg4[%c0_41, %c0_42, %c0_43] : memref<4x32x64xbf16, #tpu.memory_space<vmem>>, vector<1x32x64xbf16>
    %153 = vector.shape_cast %152 : vector<1x32x64xbf16> to vector<32x64xbf16>
    "tpu.trace_start"() <{level = 10 : i32, message = "bsh,hf->bsf"}> : () -> ()
    %cst_44 = arith.constant dense<0.000000e+00> : vector<2x8x64xf32>
    %154 = tpu.matmul %151, %153, %cst_44 {dimension_numbers = #tpu.dot_dimension_numbers<[2], [0], [0, 1], [1], [0, 0, 0, 1, 1, 1], [], []>} : vector<2x8x32xbf16>, vector<32x64xbf16>, vector<2x8x64xf32> -> vector<2x8x64xf32>
    "tpu.trace_stop"() : () -> ()
    %155 = vector.extract_strided_slice %2 {offsets = [0, 4, 0], sizes = [1, 1, 64], strides = [1, 1, 1]} : vector<4x8x128xf32> to vector<1x1x64xf32>
    %156 = vector.shape_cast %155 : vector<1x1x64xf32> to vector<64xf32>
    %157 = vector.shape_cast %156 : vector<64xf32> to vector<1x1x64xf32>
    %158 = vector.broadcast %157 : vector<1x1x64xf32> to vector<2x8x64xf32>
    %159 = arith.addf %154, %158 : vector<2x8x64xf32>
    %160 = arith.mulf %159, %159 : vector<2x8x64xf32>
    %161 = arith.mulf %159, %160 : vector<2x8x64xf32>
    %cst_45 = arith.constant 4.471500e-02 : f32
    %162 = vector.broadcast %cst_45 : f32 to vector<2x8x64xf32>
    %163 = arith.mulf %162, %161 : vector<2x8x64xf32>
    %164 = arith.addf %159, %163 : vector<2x8x64xf32>
    %cst_46 = arith.constant 0.797884583 : f32
    %165 = vector.broadcast %cst_46 : f32 to vector<2x8x64xf32>
    %166 = arith.mulf %165, %164 : vector<2x8x64xf32>
    %167 = math.tanh %166 : vector<2x8x64xf32>
    %cst_47 = arith.constant 1.000000e+00 : f32
    %168 = vector.broadcast %cst_47 : f32 to vector<2x8x64xf32>
    %169 = arith.addf %168, %167 : vector<2x8x64xf32>
    %cst_48 = arith.constant 5.000000e-01 : f32
    %170 = vector.broadcast %cst_48 : f32 to vector<2x8x64xf32>
    %171 = arith.mulf %170, %169 : vector<2x8x64xf32>
    %172 = arith.mulf %159, %171 : vector<2x8x64xf32>
    %173 = arith.truncf %172 : vector<2x8x64xf32> to vector<2x8x64xbf16>
    %c0_49 = arith.constant 0 : index
    %c0_50 = arith.constant 0 : index
    %c0_51 = arith.constant 0 : index
    %174 = vector.load %arg5[%c0_49, %c0_50, %c0_51] : memref<4x64x32xbf16, #tpu.memory_space<vmem>>, vector<1x64x32xbf16>
    %175 = vector.shape_cast %174 : vector<1x64x32xbf16> to vector<64x32xbf16>
    "tpu.trace_start"() <{level = 10 : i32, message = "bsf,fh->bsh"}> : () -> ()
    %cst_52 = arith.constant dense<0.000000e+00> : vector<2x8x32xf32>
    %176 = tpu.matmul %173, %175, %cst_52 {dimension_numbers = #tpu.dot_dimension_numbers<[2], [0], [0, 1], [1], [0, 0, 0, 1, 1, 1], [], []>} : vector<2x8x64xbf16>, vector<64x32xbf16>, vector<2x8x32xf32> -> vector<2x8x32xf32>
    "tpu.trace_stop"() : () -> ()
    %177 = vector.extract_strided_slice %2 {offsets = [0, 5, 0], sizes = [1, 1, 32], strides = [1, 1, 1]} : vector<4x8x128xf32> to vector<1x1x32xf32>
    %178 = vector.shape_cast %177 : vector<1x1x32xf32> to vector<32xf32>
    %179 = vector.shape_cast %178 : vector<32xf32> to vector<1x1x32xf32>
    %180 = vector.broadcast %179 : vector<1x1x32xf32> to vector<2x8x32xf32>
    %181 = arith.addf %176, %180 : vector<2x8x32xf32>
    %182 = arith.addf %150, %181 : vector<2x8x32xf32>
    %183 = vector.extract_strided_slice %2 {offsets = [0, 6, 0], sizes = [1, 1, 32], strides = [1, 1, 1]} : vector<4x8x128xf32> to vector<1x1x32xf32>
    %184 = vector.shape_cast %183 : vector<1x1x32xf32> to vector<32xf32>
    %185 = vector.extract_strided_slice %2 {offsets = [0, 7, 0], sizes = [1, 1, 32], strides = [1, 1, 1]} : vector<4x8x128xf32> to vector<1x1x32xf32>
    %186 = vector.shape_cast %185 : vector<1x1x32xf32> to vector<32xf32>
    %cst_53 = arith.constant dense<0.000000e+00> : vector<2x8xf32>
    %187 = vector.multi_reduction <add>, %182, %cst_53 [2] : vector<2x8x32xf32> to vector<2x8xf32>
    %188 = vector.shape_cast %187 : vector<2x8xf32> to vector<2x8x1xf32>
    %cst_54 = arith.constant 3.200000e+01 : f32
    %189 = vector.broadcast %cst_54 : f32 to vector<2x8x1xf32>
    %190 = arith.divf %188, %189 : vector<2x8x1xf32>
    %191 = vector.broadcast %190 : vector<2x8x1xf32> to vector<2x8x32xf32>
    %192 = arith.subf %182, %191 : vector<2x8x32xf32>
    %193 = arith.mulf %192, %192 : vector<2x8x32xf32>
    %cst_55 = arith.constant dense<0.000000e+00> : vector<2x8xf32>
    %194 = vector.multi_reduction <add>, %193, %cst_55 [2] : vector<2x8x32xf32> to vector<2x8xf32>
    %195 = vector.shape_cast %194 : vector<2x8xf32> to vector<2x8x1xf32>
    %cst_56 = arith.constant 3.200000e+01 : f32
    %196 = vector.broadcast %cst_56 : f32 to vector<2x8x1xf32>
    %197 = arith.divf %195, %196 : vector<2x8x1xf32>
    %198 = vector.broadcast %190 : vector<2x8x1xf32> to vector<2x8x32xf32>
    %199 = arith.subf %182, %198 : vector<2x8x32xf32>
    %cst_57 = arith.constant 9.99999996E-13 : f32
    %200 = vector.broadcast %cst_57 : f32 to vector<2x8x1xf32>
    %201 = arith.addf %197, %200 : vector<2x8x1xf32>
    %202 = math.rsqrt %201 : vector<2x8x1xf32>
    %203 = vector.broadcast %202 : vector<2x8x1xf32> to vector<2x8x32xf32>
    %204 = arith.mulf %199, %203 : vector<2x8x32xf32>
    %205 = vector.shape_cast %184 : vector<32xf32> to vector<1x1x32xf32>
    %206 = vector.broadcast %205 : vector<1x1x32xf32> to vector<2x8x32xf32>
    %207 = arith.mulf %204, %206 : vector<2x8x32xf32>
    %208 = vector.shape_cast %186 : vector<32xf32> to vector<1x1x32xf32>
    %209 = vector.broadcast %208 : vector<1x1x32xf32> to vector<2x8x32xf32>
    %210 = arith.addf %207, %209 : vector<2x8x32xf32>
    %211 = vector.extract_strided_slice %210 {offsets = [0, 0, 0], sizes = [2, 1, 32], strides = [1, 1, 1]} : vector<2x8x32xf32> to vector<2x1x32xf32>
    %212 = vector.shape_cast %211 : vector<2x1x32xf32> to vector<2x32xf32>
    %213 = arith.truncf %210 : vector<2x8x32xf32> to vector<2x8x32xbf16>
    %c1 = arith.constant 1 : index
    %c0_58 = arith.constant 0 : index
    %c0_59 = arith.constant 0 : index
    %214 = vector.load %arg2[%c1, %c0_58, %c0_59] : memref<4x32x96xbf16, #tpu.memory_space<vmem>>, vector<1x32x96xbf16>
    %215 = vector.shape_cast %214 : vector<1x32x96xbf16> to vector<32x96xbf16>
    "tpu.trace_start"() <{level = 10 : i32, message = "bsh,hk->bsk"}> : () -> ()
    %cst_60 = arith.constant dense<0.000000e+00> : vector<2x8x96xf32>
    %216 = tpu.matmul %213, %215, %cst_60 {dimension_numbers = #tpu.dot_dimension_numbers<[2], [0], [0, 1], [1], [0, 0, 0, 1, 1, 1], [], []>} : vector<2x8x32xbf16>, vector<32x96xbf16>, vector<2x8x96xf32> -> vector<2x8x96xf32>
    "tpu.trace_stop"() : () -> ()
    %217 = vector.extract_strided_slice %2 {offsets = [1, 0, 0], sizes = [1, 1, 96], strides = [1, 1, 1]} : vector<4x8x128xf32> to vector<1x1x96xf32>
    %218 = vector.shape_cast %217 : vector<1x1x96xf32> to vector<96xf32>
    %219 = vector.shape_cast %218 : vector<96xf32> to vector<1x1x96xf32>
    %220 = vector.broadcast %219 : vector<1x1x96xf32> to vector<2x8x96xf32>
    %221 = arith.addf %216, %220 : vector<2x8x96xf32>
    %222 = vector.extract_strided_slice %221 {offsets = [0, 0, 0], sizes = [2, 8, 8], strides = [1, 1, 1]} : vector<2x8x96xf32> to vector<2x8x8xf32>
    %223 = vector.extract_strided_slice %221 {offsets = [0, 0, 32], sizes = [2, 8, 8], strides = [1, 1, 1]} : vector<2x8x96xf32> to vector<2x8x8xf32>
    %224 = vector.extract_strided_slice %221 {offsets = [0, 0, 64], sizes = [2, 8, 8], strides = [1, 1, 1]} : vector<2x8x96xf32> to vector<2x8x8xf32>
    %225 = arith.truncf %222 : vector<2x8x8xf32> to vector<2x8x8xbf16>
    %226 = arith.truncf %223 : vector<2x8x8xf32> to vector<2x8x8xbf16>
    "tpu.trace_start"() <{level = 10 : i32, message = "bqd,bkd->bqk"}> : () -> ()
    %cst_61 = arith.constant dense<0.000000e+00> : vector<2x8x8xf32>
    %227 = tpu.matmul %225, %226, %cst_61 {dimension_numbers = #tpu.dot_dimension_numbers<[2], [2], [1], [1], [0, 0, 0, 1, 1, 1], [0], [0]>} : vector<2x8x8xbf16>, vector<2x8x8xbf16>, vector<2x8x8xf32> -> vector<2x8x8xf32>
    "tpu.trace_stop"() : () -> ()
    %228 = vector.broadcast %10 : f32 to vector<2x8x8xf32>
    %229 = arith.mulf %227, %228 : vector<2x8x8xf32>
    %230 = vector.broadcast %8 : vector<2x1x8xf32> to vector<2x8x8xf32>
    %231 = arith.addf %229, %230 : vector<2x8x8xf32>
    %cst_62 = arith.constant dense<0xFF800000> : vector<2x8xf32>
    %232 = vector.multi_reduction <maximumf>, %231, %cst_62 [2] : vector<2x8x8xf32> to vector<2x8xf32>
    %233 = vector.shape_cast %232 : vector<2x8xf32> to vector<2x8x1xf32>
    %234 = vector.broadcast %233 : vector<2x8x1xf32> to vector<2x8x8xf32>
    %235 = arith.subf %231, %234 : vector<2x8x8xf32>
    %236 = math.exp %235 : vector<2x8x8xf32>
    %cst_63 = arith.constant dense<0.000000e+00> : vector<2x8xf32>
    %237 = vector.multi_reduction <add>, %236, %cst_63 [2] : vector<2x8x8xf32> to vector<2x8xf32>
    %238 = vector.shape_cast %237 : vector<2x8xf32> to vector<2x8x1xf32>
    %239 = tpu.reciprocal %238 {approx = true} : vector<2x8x1xf32> -> vector<2x8x1xf32>
    %240 = vector.broadcast %239 : vector<2x8x1xf32> to vector<2x8x8xf32>
    %241 = arith.mulf %236, %240 : vector<2x8x8xf32>
    %242 = arith.truncf %241 : vector<2x8x8xf32> to vector<2x8x8xbf16>
    %243 = arith.truncf %224 : vector<2x8x8xf32> to vector<2x8x8xbf16>
    "tpu.trace_start"() <{level = 10 : i32, message = "bqk,bkd->bqd"}> : () -> ()
    %cst_64 = arith.constant dense<0.000000e+00> : vector<2x8x8xf32>
    %244 = tpu.matmul %242, %243, %cst_64 {dimension_numbers = #tpu.dot_dimension_numbers<[2], [1], [1], [2], [0, 0, 0, 1, 1, 2], [0], [0]>} : vector<2x8x8xbf16>, vector<2x8x8xbf16>, vector<2x8x8xf32> -> vector<2x8x8xf32>
    "tpu.trace_stop"() : () -> ()
    %245 = vector.extract_strided_slice %221 {offsets = [0, 0, 8], sizes = [2, 8, 8], strides = [1, 1, 1]} : vector<2x8x96xf32> to vector<2x8x8xf32>
    %246 = vector.extract_strided_slice %221 {offsets = [0, 0, 40], sizes = [2, 8, 8], strides = [1, 1, 1]} : vector<2x8x96xf32> to vector<2x8x8xf32>
    %247 = vector.extract_strided_slice %221 {offsets = [0, 0, 72], sizes = [2, 8, 8], strides = [1, 1, 1]} : vector<2x8x96xf32> to vector<2x8x8xf32>
    %248 = arith.truncf %245 : vector<2x8x8xf32> to vector<2x8x8xbf16>
    %249 = arith.truncf %246 : vector<2x8x8xf32> to vector<2x8x8xbf16>
    "tpu.trace_start"() <{level = 10 : i32, message = "bqd,bkd->bqk"}> : () -> ()
    %cst_65 = arith.constant dense<0.000000e+00> : vector<2x8x8xf32>
    %250 = tpu.matmul %248, %249, %cst_65 {dimension_numbers = #tpu.dot_dimension_numbers<[2], [2], [1], [1], [0, 0, 0, 1, 1, 1], [0], [0]>} : vector<2x8x8xbf16>, vector<2x8x8xbf16>, vector<2x8x8xf32> -> vector<2x8x8xf32>
    "tpu.trace_stop"() : () -> ()
    %251 = vector.broadcast %10 : f32 to vector<2x8x8xf32>
    %252 = arith.mulf %250, %251 : vector<2x8x8xf32>
    %253 = vector.broadcast %8 : vector<2x1x8xf32> to vector<2x8x8xf32>
    %254 = arith.addf %252, %253 : vector<2x8x8xf32>
    %cst_66 = arith.constant dense<0xFF800000> : vector<2x8xf32>
    %255 = vector.multi_reduction <maximumf>, %254, %cst_66 [2] : vector<2x8x8xf32> to vector<2x8xf32>
    %256 = vector.shape_cast %255 : vector<2x8xf32> to vector<2x8x1xf32>
    %257 = vector.broadcast %256 : vector<2x8x1xf32> to vector<2x8x8xf32>
    %258 = arith.subf %254, %257 : vector<2x8x8xf32>
    %259 = math.exp %258 : vector<2x8x8xf32>
    %cst_67 = arith.constant dense<0.000000e+00> : vector<2x8xf32>
    %260 = vector.multi_reduction <add>, %259, %cst_67 [2] : vector<2x8x8xf32> to vector<2x8xf32>
    %261 = vector.shape_cast %260 : vector<2x8xf32> to vector<2x8x1xf32>
    %262 = tpu.reciprocal %261 {approx = true} : vector<2x8x1xf32> -> vector<2x8x1xf32>
    %263 = vector.broadcast %262 : vector<2x8x1xf32> to vector<2x8x8xf32>
    %264 = arith.mulf %259, %263 : vector<2x8x8xf32>
    %265 = arith.truncf %264 : vector<2x8x8xf32> to vector<2x8x8xbf16>
    %266 = arith.truncf %247 : vector<2x8x8xf32> to vector<2x8x8xbf16>
    "tpu.trace_start"() <{level = 10 : i32, message = "bqk,bkd->bqd"}> : () -> ()
    %cst_68 = arith.constant dense<0.000000e+00> : vector<2x8x8xf32>
    %267 = tpu.matmul %265, %266, %cst_68 {dimension_numbers = #tpu.dot_dimension_numbers<[2], [1], [1], [2], [0, 0, 0, 1, 1, 2], [0], [0]>} : vector<2x8x8xbf16>, vector<2x8x8xbf16>, vector<2x8x8xf32> -> vector<2x8x8xf32>
    "tpu.trace_stop"() : () -> ()
    %268 = vector.extract_strided_slice %221 {offsets = [0, 0, 16], sizes = [2, 8, 8], strides = [1, 1, 1]} : vector<2x8x96xf32> to vector<2x8x8xf32>
    %269 = vector.extract_strided_slice %221 {offsets = [0, 0, 48], sizes = [2, 8, 8], strides = [1, 1, 1]} : vector<2x8x96xf32> to vector<2x8x8xf32>
    %270 = vector.extract_strided_slice %221 {offsets = [0, 0, 80], sizes = [2, 8, 8], strides = [1, 1, 1]} : vector<2x8x96xf32> to vector<2x8x8xf32>
    %271 = arith.truncf %268 : vector<2x8x8xf32> to vector<2x8x8xbf16>
    %272 = arith.truncf %269 : vector<2x8x8xf32> to vector<2x8x8xbf16>
    "tpu.trace_start"() <{level = 10 : i32, message = "bqd,bkd->bqk"}> : () -> ()
    %cst_69 = arith.constant dense<0.000000e+00> : vector<2x8x8xf32>
    %273 = tpu.matmul %271, %272, %cst_69 {dimension_numbers = #tpu.dot_dimension_numbers<[2], [2], [1], [1], [0, 0, 0, 1, 1, 1], [0], [0]>} : vector<2x8x8xbf16>, vector<2x8x8xbf16>, vector<2x8x8xf32> -> vector<2x8x8xf32>
    "tpu.trace_stop"() : () -> ()
    %274 = vector.broadcast %10 : f32 to vector<2x8x8xf32>
    %275 = arith.mulf %273, %274 : vector<2x8x8xf32>
    %276 = vector.broadcast %8 : vector<2x1x8xf32> to vector<2x8x8xf32>
    %277 = arith.addf %275, %276 : vector<2x8x8xf32>
    %cst_70 = arith.constant dense<0xFF800000> : vector<2x8xf32>
    %278 = vector.multi_reduction <maximumf>, %277, %cst_70 [2] : vector<2x8x8xf32> to vector<2x8xf32>
    %279 = vector.shape_cast %278 : vector<2x8xf32> to vector<2x8x1xf32>
    %280 = vector.broadcast %279 : vector<2x8x1xf32> to vector<2x8x8xf32>
    %281 = arith.subf %277, %280 : vector<2x8x8xf32>
    %282 = math.exp %281 : vector<2x8x8xf32>
    %cst_71 = arith.constant dense<0.000000e+00> : vector<2x8xf32>
    %283 = vector.multi_reduction <add>, %282, %cst_71 [2] : vector<2x8x8xf32> to vector<2x8xf32>
    %284 = vector.shape_cast %283 : vector<2x8xf32> to vector<2x8x1xf32>
    %285 = tpu.reciprocal %284 {approx = true} : vector<2x8x1xf32> -> vector<2x8x1xf32>
    %286 = vector.broadcast %285 : vector<2x8x1xf32> to vector<2x8x8xf32>
    %287 = arith.mulf %282, %286 : vector<2x8x8xf32>
    %288 = arith.truncf %287 : vector<2x8x8xf32> to vector<2x8x8xbf16>
    %289 = arith.truncf %270 : vector<2x8x8xf32> to vector<2x8x8xbf16>
    "tpu.trace_start"() <{level = 10 : i32, message = "bqk,bkd->bqd"}> : () -> ()
    %cst_72 = arith.constant dense<0.000000e+00> : vector<2x8x8xf32>
    %290 = tpu.matmul %288, %289, %cst_72 {dimension_numbers = #tpu.dot_dimension_numbers<[2], [1], [1], [2], [0, 0, 0, 1, 1, 2], [0], [0]>} : vector<2x8x8xbf16>, vector<2x8x8xbf16>, vector<2x8x8xf32> -> vector<2x8x8xf32>
    "tpu.trace_stop"() : () -> ()
    %291 = vector.extract_strided_slice %221 {offsets = [0, 0, 24], sizes = [2, 8, 8], strides = [1, 1, 1]} : vector<2x8x96xf32> to vector<2x8x8xf32>
    %292 = vector.extract_strided_slice %221 {offsets = [0, 0, 56], sizes = [2, 8, 8], strides = [1, 1, 1]} : vector<2x8x96xf32> to vector<2x8x8xf32>
    %293 = vector.extract_strided_slice %221 {offsets = [0, 0, 88], sizes = [2, 8, 8], strides = [1, 1, 1]} : vector<2x8x96xf32> to vector<2x8x8xf32>
    %294 = arith.truncf %291 : vector<2x8x8xf32> to vector<2x8x8xbf16>
    %295 = arith.truncf %292 : vector<2x8x8xf32> to vector<2x8x8xbf16>
    "tpu.trace_start"() <{level = 10 : i32, message = "bqd,bkd->bqk"}> : () -> ()
    %cst_73 = arith.constant dense<0.000000e+00> : vector<2x8x8xf32>
    %296 = tpu.matmul %294, %295, %cst_73 {dimension_numbers = #tpu.dot_dimension_numbers<[2], [2], [1], [1], [0, 0, 0, 1, 1, 1], [0], [0]>} : vector<2x8x8xbf16>, vector<2x8x8xbf16>, vector<2x8x8xf32> -> vector<2x8x8xf32>
    "tpu.trace_stop"() : () -> ()
    %297 = vector.broadcast %10 : f32 to vector<2x8x8xf32>
    %298 = arith.mulf %296, %297 : vector<2x8x8xf32>
    %299 = vector.broadcast %8 : vector<2x1x8xf32> to vector<2x8x8xf32>
    %300 = arith.addf %298, %299 : vector<2x8x8xf32>
    %cst_74 = arith.constant dense<0xFF800000> : vector<2x8xf32>
    %301 = vector.multi_reduction <maximumf>, %300, %cst_74 [2] : vector<2x8x8xf32> to vector<2x8xf32>
    %302 = vector.shape_cast %301 : vector<2x8xf32> to vector<2x8x1xf32>
    %303 = vector.broadcast %302 : vector<2x8x1xf32> to vector<2x8x8xf32>
    %304 = arith.subf %300, %303 : vector<2x8x8xf32>
    %305 = math.exp %304 : vector<2x8x8xf32>
    %cst_75 = arith.constant dense<0.000000e+00> : vector<2x8xf32>
    %306 = vector.multi_reduction <add>, %305, %cst_75 [2] : vector<2x8x8xf32> to vector<2x8xf32>
    %307 = vector.shape_cast %306 : vector<2x8xf32> to vector<2x8x1xf32>
    %308 = tpu.reciprocal %307 {approx = true} : vector<2x8x1xf32> -> vector<2x8x1xf32>
    %309 = vector.broadcast %308 : vector<2x8x1xf32> to vector<2x8x8xf32>
    %310 = arith.mulf %305, %309 : vector<2x8x8xf32>
    %311 = arith.truncf %310 : vector<2x8x8xf32> to vector<2x8x8xbf16>
    %312 = arith.truncf %293 : vector<2x8x8xf32> to vector<2x8x8xbf16>
    "tpu.trace_start"() <{level = 10 : i32, message = "bqk,bkd->bqd"}> : () -> ()
    %cst_76 = arith.constant dense<0.000000e+00> : vector<2x8x8xf32>
    %313 = tpu.matmul %311, %312, %cst_76 {dimension_numbers = #tpu.dot_dimension_numbers<[2], [1], [1], [2], [0, 0, 0, 1, 1, 2], [0], [0]>} : vector<2x8x8xbf16>, vector<2x8x8xbf16>, vector<2x8x8xf32> -> vector<2x8x8xf32>
    "tpu.trace_stop"() : () -> ()
    %314 = tpu.concatenate %244, %267, %290, %313 in 2 : vector<2x8x8xf32>, vector<2x8x8xf32>, vector<2x8x8xf32>, vector<2x8x8xf32> -> vector<2x8x32xf32>
    %315 = arith.truncf %314 : vector<2x8x32xf32> to vector<2x8x32xbf16>
    %c1_77 = arith.constant 1 : index
    %c0_78 = arith.constant 0 : index
    %c0_79 = arith.constant 0 : index
    %316 = vector.load %arg3[%c1_77, %c0_78, %c0_79] : memref<4x32x32xbf16, #tpu.memory_space<vmem>>, vector<1x32x32xbf16>
    %317 = vector.shape_cast %316 : vector<1x32x32xbf16> to vector<32x32xbf16>
    "tpu.trace_start"() <{level = 10 : i32, message = "bsh,hk->bsk"}> : () -> ()
    %cst_80 = arith.constant dense<0.000000e+00> : vector<2x8x32xf32>
    %318 = tpu.matmul %315, %317, %cst_80 {dimension_numbers = #tpu.dot_dimension_numbers<[2], [0], [0, 1], [1], [0, 0, 0, 1, 1, 1], [], []>} : vector<2x8x32xbf16>, vector<32x32xbf16>, vector<2x8x32xf32> -> vector<2x8x32xf32>
    "tpu.trace_stop"() : () -> ()
    %319 = vector.extract_strided_slice %2 {offsets = [1, 1, 0], sizes = [1, 1, 32], strides = [1, 1, 1]} : vector<4x8x128xf32> to vector<1x1x32xf32>
    %320 = vector.shape_cast %319 : vector<1x1x32xf32> to vector<32xf32>
    %321 = vector.shape_cast %320 : vector<32xf32> to vector<1x1x32xf32>
    %322 = vector.broadcast %321 : vector<1x1x32xf32> to vector<2x8x32xf32>
    %323 = arith.addf %318, %322 : vector<2x8x32xf32>
    %324 = arith.addf %210, %323 : vector<2x8x32xf32>
    %325 = vector.extract_strided_slice %2 {offsets = [1, 2, 0], sizes = [1, 1, 32], strides = [1, 1, 1]} : vector<4x8x128xf32> to vector<1x1x32xf32>
    %326 = vector.shape_cast %325 : vector<1x1x32xf32> to vector<32xf32>
    %327 = vector.extract_strided_slice %2 {offsets = [1, 3, 0], sizes = [1, 1, 32], strides = [1, 1, 1]} : vector<4x8x128xf32> to vector<1x1x32xf32>
    %328 = vector.shape_cast %327 : vector<1x1x32xf32> to vector<32xf32>
    %cst_81 = arith.constant dense<0.000000e+00> : vector<2x8xf32>
    %329 = vector.multi_reduction <add>, %324, %cst_81 [2] : vector<2x8x32xf32> to vector<2x8xf32>
    %330 = vector.shape_cast %329 : vector<2x8xf32> to vector<2x8x1xf32>
    %cst_82 = arith.constant 3.200000e+01 : f32
    %331 = vector.broadcast %cst_82 : f32 to vector<2x8x1xf32>
    %332 = arith.divf %330, %331 : vector<2x8x1xf32>
    %333 = vector.broadcast %332 : vector<2x8x1xf32> to vector<2x8x32xf32>
    %334 = arith.subf %324, %333 : vector<2x8x32xf32>
    %335 = arith.mulf %334, %334 : vector<2x8x32xf32>
    %cst_83 = arith.constant dense<0.000000e+00> : vector<2x8xf32>
    %336 = vector.multi_reduction <add>, %335, %cst_83 [2] : vector<2x8x32xf32> to vector<2x8xf32>
    %337 = vector.shape_cast %336 : vector<2x8xf32> to vector<2x8x1xf32>
    %cst_84 = arith.constant 3.200000e+01 : f32
    %338 = vector.broadcast %cst_84 : f32 to vector<2x8x1xf32>
    %339 = arith.divf %337, %338 : vector<2x8x1xf32>
    %340 = vector.broadcast %332 : vector<2x8x1xf32> to vector<2x8x32xf32>
    %341 = arith.subf %324, %340 : vector<2x8x32xf32>
    %cst_85 = arith.constant 9.99999996E-13 : f32
    %342 = vector.broadcast %cst_85 : f32 to vector<2x8x1xf32>
    %343 = arith.addf %339, %342 : vector<2x8x1xf32>
    %344 = math.rsqrt %343 : vector<2x8x1xf32>
    %345 = vector.broadcast %344 : vector<2x8x1xf32> to vector<2x8x32xf32>
    %346 = arith.mulf %341, %345 : vector<2x8x32xf32>
    %347 = vector.shape_cast %326 : vector<32xf32> to vector<1x1x32xf32>
    %348 = vector.broadcast %347 : vector<1x1x32xf32> to vector<2x8x32xf32>
    %349 = arith.mulf %346, %348 : vector<2x8x32xf32>
    %350 = vector.shape_cast %328 : vector<32xf32> to vector<1x1x32xf32>
    %351 = vector.broadcast %350 : vector<1x1x32xf32> to vector<2x8x32xf32>
    %352 = arith.addf %349, %351 : vector<2x8x32xf32>
    %353 = arith.truncf %352 : vector<2x8x32xf32> to vector<2x8x32xbf16>
    %c1_86 = arith.constant 1 : index
    %c0_87 = arith.constant 0 : index
    %c0_88 = arith.constant 0 : index
    %354 = vector.load %arg4[%c1_86, %c0_87, %c0_88] : memref<4x32x64xbf16, #tpu.memory_space<vmem>>, vector<1x32x64xbf16>
    %355 = vector.shape_cast %354 : vector<1x32x64xbf16> to vector<32x64xbf16>
    "tpu.trace_start"() <{level = 10 : i32, message = "bsh,hf->bsf"}> : () -> ()
    %cst_89 = arith.constant dense<0.000000e+00> : vector<2x8x64xf32>
    %356 = tpu.matmul %353, %355, %cst_89 {dimension_numbers = #tpu.dot_dimension_numbers<[2], [0], [0, 1], [1], [0, 0, 0, 1, 1, 1], [], []>} : vector<2x8x32xbf16>, vector<32x64xbf16>, vector<2x8x64xf32> -> vector<2x8x64xf32>
    "tpu.trace_stop"() : () -> ()
    %357 = vector.extract_strided_slice %2 {offsets = [1, 4, 0], sizes = [1, 1, 64], strides = [1, 1, 1]} : vector<4x8x128xf32> to vector<1x1x64xf32>
    %358 = vector.shape_cast %357 : vector<1x1x64xf32> to vector<64xf32>
    %359 = vector.shape_cast %358 : vector<64xf32> to vector<1x1x64xf32>
    %360 = vector.broadcast %359 : vector<1x1x64xf32> to vector<2x8x64xf32>
    %361 = arith.addf %356, %360 : vector<2x8x64xf32>
    %362 = arith.mulf %361, %361 : vector<2x8x64xf32>
    %363 = arith.mulf %361, %362 : vector<2x8x64xf32>
    %cst_90 = arith.constant 4.471500e-02 : f32
    %364 = vector.broadcast %cst_90 : f32 to vector<2x8x64xf32>
    %365 = arith.mulf %364, %363 : vector<2x8x64xf32>
    %366 = arith.addf %361, %365 : vector<2x8x64xf32>
    %cst_91 = arith.constant 0.797884583 : f32
    %367 = vector.broadcast %cst_91 : f32 to vector<2x8x64xf32>
    %368 = arith.mulf %367, %366 : vector<2x8x64xf32>
    %369 = math.tanh %368 : vector<2x8x64xf32>
    %cst_92 = arith.constant 1.000000e+00 : f32
    %370 = vector.broadcast %cst_92 : f32 to vector<2x8x64xf32>
    %371 = arith.addf %370, %369 : vector<2x8x64xf32>
    %cst_93 = arith.constant 5.000000e-01 : f32
    %372 = vector.broadcast %cst_93 : f32 to vector<2x8x64xf32>
    %373 = arith.mulf %372, %371 : vector<2x8x64xf32>
    %374 = arith.mulf %361, %373 : vector<2x8x64xf32>
    %375 = arith.truncf %374 : vector<2x8x64xf32> to vector<2x8x64xbf16>
    %c1_94 = arith.constant 1 : index
    %c0_95 = arith.constant 0 : index
    %c0_96 = arith.constant 0 : index
    %376 = vector.load %arg5[%c1_94, %c0_95, %c0_96] : memref<4x64x32xbf16, #tpu.memory_space<vmem>>, vector<1x64x32xbf16>
    %377 = vector.shape_cast %376 : vector<1x64x32xbf16> to vector<64x32xbf16>
    "tpu.trace_start"() <{level = 10 : i32, message = "bsf,fh->bsh"}> : () -> ()
    %cst_97 = arith.constant dense<0.000000e+00> : vector<2x8x32xf32>
    %378 = tpu.matmul %375, %377, %cst_97 {dimension_numbers = #tpu.dot_dimension_numbers<[2], [0], [0, 1], [1], [0, 0, 0, 1, 1, 1], [], []>} : vector<2x8x64xbf16>, vector<64x32xbf16>, vector<2x8x32xf32> -> vector<2x8x32xf32>
    "tpu.trace_stop"() : () -> ()
    %379 = vector.extract_strided_slice %2 {offsets = [1, 5, 0], sizes = [1, 1, 32], strides = [1, 1, 1]} : vector<4x8x128xf32> to vector<1x1x32xf32>
    %380 = vector.shape_cast %379 : vector<1x1x32xf32> to vector<32xf32>
    %381 = vector.shape_cast %380 : vector<32xf32> to vector<1x1x32xf32>
    %382 = vector.broadcast %381 : vector<1x1x32xf32> to vector<2x8x32xf32>
    %383 = arith.addf %378, %382 : vector<2x8x32xf32>
    %384 = arith.addf %352, %383 : vector<2x8x32xf32>
    %385 = vector.extract_strided_slice %2 {offsets = [1, 6, 0], sizes = [1, 1, 32], strides = [1, 1, 1]} : vector<4x8x128xf32> to vector<1x1x32xf32>
    %386 = vector.shape_cast %385 : vector<1x1x32xf32> to vector<32xf32>
    %387 = vector.extract_strided_slice %2 {offsets = [1, 7, 0], sizes = [1, 1, 32], strides = [1, 1, 1]} : vector<4x8x128xf32> to vector<1x1x32xf32>
    %388 = vector.shape_cast %387 : vector<1x1x32xf32> to vector<32xf32>
    %cst_98 = arith.constant dense<0.000000e+00> : vector<2x8xf32>
    %389 = vector.multi_reduction <add>, %384, %cst_98 [2] : vector<2x8x32xf32> to vector<2x8xf32>
    %390 = vector.shape_cast %389 : vector<2x8xf32> to vector<2x8x1xf32>
    %cst_99 = arith.constant 3.200000e+01 : f32
    %391 = vector.broadcast %cst_99 : f32 to vector<2x8x1xf32>
    %392 = arith.divf %390, %391 : vector<2x8x1xf32>
    %393 = vector.broadcast %392 : vector<2x8x1xf32> to vector<2x8x32xf32>
    %394 = arith.subf %384, %393 : vector<2x8x32xf32>
    %395 = arith.mulf %394, %394 : vector<2x8x32xf32>
    %cst_100 = arith.constant dense<0.000000e+00> : vector<2x8xf32>
    %396 = vector.multi_reduction <add>, %395, %cst_100 [2] : vector<2x8x32xf32> to vector<2x8xf32>
    %397 = vector.shape_cast %396 : vector<2x8xf32> to vector<2x8x1xf32>
    %cst_101 = arith.constant 3.200000e+01 : f32
    %398 = vector.broadcast %cst_101 : f32 to vector<2x8x1xf32>
    %399 = arith.divf %397, %398 : vector<2x8x1xf32>
    %400 = vector.broadcast %392 : vector<2x8x1xf32> to vector<2x8x32xf32>
    %401 = arith.subf %384, %400 : vector<2x8x32xf32>
    %cst_102 = arith.constant 9.99999996E-13 : f32
    %402 = vector.broadcast %cst_102 : f32 to vector<2x8x1xf32>
    %403 = arith.addf %399, %402 : vector<2x8x1xf32>
    %404 = math.rsqrt %403 : vector<2x8x1xf32>
    %405 = vector.broadcast %404 : vector<2x8x1xf32> to vector<2x8x32xf32>
    %406 = arith.mulf %401, %405 : vector<2x8x32xf32>
    %407 = vector.shape_cast %386 : vector<32xf32> to vector<1x1x32xf32>
    %408 = vector.broadcast %407 : vector<1x1x32xf32> to vector<2x8x32xf32>
    %409 = arith.mulf %406, %408 : vector<2x8x32xf32>
    %410 = vector.shape_cast %388 : vector<32xf32> to vector<1x1x32xf32>
    %411 = vector.broadcast %410 : vector<1x1x32xf32> to vector<2x8x32xf32>
    %412 = arith.addf %409, %411 : vector<2x8x32xf32>
    %413 = vector.extract_strided_slice %412 {offsets = [0, 0, 0], sizes = [2, 1, 32], strides = [1, 1, 1]} : vector<2x8x32xf32> to vector<2x1x32xf32>
    %414 = vector.shape_cast %413 : vector<2x1x32xf32> to vector<2x32xf32>
    %415 = arith.truncf %412 : vector<2x8x32xf32> to vector<2x8x32xbf16>
    %c2 = arith.constant 2 : index
    %c0_103 = arith.constant 0 : index
    %c0_104 = arith.constant 0 : index
    %416 = vector.load %arg2[%c2, %c0_103, %c0_104] : memref<4x32x96xbf16, #tpu.memory_space<vmem>>, vector<1x32x96xbf16>
    %417 = vector.shape_cast %416 : vector<1x32x96xbf16> to vector<32x96xbf16>
    "tpu.trace_start"() <{level = 10 : i32, message = "bsh,hk->bsk"}> : () -> ()
    %cst_105 = arith.constant dense<0.000000e+00> : vector<2x8x96xf32>
    %418 = tpu.matmul %415, %417, %cst_105 {dimension_numbers = #tpu.dot_dimension_numbers<[2], [0], [0, 1], [1], [0, 0, 0, 1, 1, 1], [], []>} : vector<2x8x32xbf16>, vector<32x96xbf16>, vector<2x8x96xf32> -> vector<2x8x96xf32>
    "tpu.trace_stop"() : () -> ()
    %419 = vector.extract_strided_slice %2 {offsets = [2, 0, 0], sizes = [1, 1, 96], strides = [1, 1, 1]} : vector<4x8x128xf32> to vector<1x1x96xf32>
    %420 = vector.shape_cast %419 : vector<1x1x96xf32> to vector<96xf32>
    %421 = vector.shape_cast %420 : vector<96xf32> to vector<1x1x96xf32>
    %422 = vector.broadcast %421 : vector<1x1x96xf32> to vector<2x8x96xf32>
    %423 = arith.addf %418, %422 : vector<2x8x96xf32>
    %424 = vector.extract_strided_slice %423 {offsets = [0, 0, 0], sizes = [2, 8, 8], strides = [1, 1, 1]} : vector<2x8x96xf32> to vector<2x8x8xf32>
    %425 = vector.extract_strided_slice %423 {offsets = [0, 0, 32], sizes = [2, 8, 8], strides = [1, 1, 1]} : vector<2x8x96xf32> to vector<2x8x8xf32>
    %426 = vector.extract_strided_slice %423 {offsets = [0, 0, 64], sizes = [2, 8, 8], strides = [1, 1, 1]} : vector<2x8x96xf32> to vector<2x8x8xf32>
    %427 = arith.truncf %424 : vector<2x8x8xf32> to vector<2x8x8xbf16>
    %428 = arith.truncf %425 : vector<2x8x8xf32> to vector<2x8x8xbf16>
    "tpu.trace_start"() <{level = 10 : i32, message = "bqd,bkd->bqk"}> : () -> ()
    %cst_106 = arith.constant dense<0.000000e+00> : vector<2x8x8xf32>
    %429 = tpu.matmul %427, %428, %cst_106 {dimension_numbers = #tpu.dot_dimension_numbers<[2], [2], [1], [1], [0, 0, 0, 1, 1, 1], [0], [0]>} : vector<2x8x8xbf16>, vector<2x8x8xbf16>, vector<2x8x8xf32> -> vector<2x8x8xf32>
    "tpu.trace_stop"() : () -> ()
    %430 = vector.broadcast %10 : f32 to vector<2x8x8xf32>
    %431 = arith.mulf %429, %430 : vector<2x8x8xf32>
    %432 = vector.broadcast %8 : vector<2x1x8xf32> to vector<2x8x8xf32>
    %433 = arith.addf %431, %432 : vector<2x8x8xf32>
    %cst_107 = arith.constant dense<0xFF800000> : vector<2x8xf32>
    %434 = vector.multi_reduction <maximumf>, %433, %cst_107 [2] : vector<2x8x8xf32> to vector<2x8xf32>
    %435 = vector.shape_cast %434 : vector<2x8xf32> to vector<2x8x1xf32>
    %436 = vector.broadcast %435 : vector<2x8x1xf32> to vector<2x8x8xf32>
    %437 = arith.subf %433, %436 : vector<2x8x8xf32>
    %438 = math.exp %437 : vector<2x8x8xf32>
    %cst_108 = arith.constant dense<0.000000e+00> : vector<2x8xf32>
    %439 = vector.multi_reduction <add>, %438, %cst_108 [2] : vector<2x8x8xf32> to vector<2x8xf32>
    %440 = vector.shape_cast %439 : vector<2x8xf32> to vector<2x8x1xf32>
    %441 = tpu.reciprocal %440 {approx = true} : vector<2x8x1xf32> -> vector<2x8x1xf32>
    %442 = vector.broadcast %441 : vector<2x8x1xf32> to vector<2x8x8xf32>
    %443 = arith.mulf %438, %442 : vector<2x8x8xf32>
    %444 = arith.truncf %443 : vector<2x8x8xf32> to vector<2x8x8xbf16>
    %445 = arith.truncf %426 : vector<2x8x8xf32> to vector<2x8x8xbf16>
    "tpu.trace_start"() <{level = 10 : i32, message = "bqk,bkd->bqd"}> : () -> ()
    %cst_109 = arith.constant dense<0.000000e+00> : vector<2x8x8xf32>
    %446 = tpu.matmul %444, %445, %cst_109 {dimension_numbers = #tpu.dot_dimension_numbers<[2], [1], [1], [2], [0, 0, 0, 1, 1, 2], [0], [0]>} : vector<2x8x8xbf16>, vector<2x8x8xbf16>, vector<2x8x8xf32> -> vector<2x8x8xf32>
    "tpu.trace_stop"() : () -> ()
    %447 = vector.extract_strided_slice %423 {offsets = [0, 0, 8], sizes = [2, 8, 8], strides = [1, 1, 1]} : vector<2x8x96xf32> to vector<2x8x8xf32>
    %448 = vector.extract_strided_slice %423 {offsets = [0, 0, 40], sizes = [2, 8, 8], strides = [1, 1, 1]} : vector<2x8x96xf32> to vector<2x8x8xf32>
    %449 = vector.extract_strided_slice %423 {offsets = [0, 0, 72], sizes = [2, 8, 8], strides = [1, 1, 1]} : vector<2x8x96xf32> to vector<2x8x8xf32>
    %450 = arith.truncf %447 : vector<2x8x8xf32> to vector<2x8x8xbf16>
    %451 = arith.truncf %448 : vector<2x8x8xf32> to vector<2x8x8xbf16>
    "tpu.trace_start"() <{level = 10 : i32, message = "bqd,bkd->bqk"}> : () -> ()
    %cst_110 = arith.constant dense<0.000000e+00> : vector<2x8x8xf32>
    %452 = tpu.matmul %450, %451, %cst_110 {dimension_numbers = #tpu.dot_dimension_numbers<[2], [2], [1], [1], [0, 0, 0, 1, 1, 1], [0], [0]>} : vector<2x8x8xbf16>, vector<2x8x8xbf16>, vector<2x8x8xf32> -> vector<2x8x8xf32>
    "tpu.trace_stop"() : () -> ()
    %453 = vector.broadcast %10 : f32 to vector<2x8x8xf32>
    %454 = arith.mulf %452, %453 : vector<2x8x8xf32>
    %455 = vector.broadcast %8 : vector<2x1x8xf32> to vector<2x8x8xf32>
    %456 = arith.addf %454, %455 : vector<2x8x8xf32>
    %cst_111 = arith.constant dense<0xFF800000> : vector<2x8xf32>
    %457 = vector.multi_reduction <maximumf>, %456, %cst_111 [2] : vector<2x8x8xf32> to vector<2x8xf32>
    %458 = vector.shape_cast %457 : vector<2x8xf32> to vector<2x8x1xf32>
    %459 = vector.broadcast %458 : vector<2x8x1xf32> to vector<2x8x8xf32>
    %460 = arith.subf %456, %459 : vector<2x8x8xf32>
    %461 = math.exp %460 : vector<2x8x8xf32>
    %cst_112 = arith.constant dense<0.000000e+00> : vector<2x8xf32>
    %462 = vector.multi_reduction <add>, %461, %cst_112 [2] : vector<2x8x8xf32> to vector<2x8xf32>
    %463 = vector.shape_cast %462 : vector<2x8xf32> to vector<2x8x1xf32>
    %464 = tpu.reciprocal %463 {approx = true} : vector<2x8x1xf32> -> vector<2x8x1xf32>
    %465 = vector.broadcast %464 : vector<2x8x1xf32> to vector<2x8x8xf32>
    %466 = arith.mulf %461, %465 : vector<2x8x8xf32>
    %467 = arith.truncf %466 : vector<2x8x8xf32> to vector<2x8x8xbf16>
    %468 = arith.truncf %449 : vector<2x8x8xf32> to vector<2x8x8xbf16>
    "tpu.trace_start"() <{level = 10 : i32, message = "bqk,bkd->bqd"}> : () -> ()
    %cst_113 = arith.constant dense<0.000000e+00> : vector<2x8x8xf32>
    %469 = tpu.matmul %467, %468, %cst_113 {dimension_numbers = #tpu.dot_dimension_numbers<[2], [1], [1], [2], [0, 0, 0, 1, 1, 2], [0], [0]>} : vector<2x8x8xbf16>, vector<2x8x8xbf16>, vector<2x8x8xf32> -> vector<2x8x8xf32>
    "tpu.trace_stop"() : () -> ()
    %470 = vector.extract_strided_slice %423 {offsets = [0, 0, 16], sizes = [2, 8, 8], strides = [1, 1, 1]} : vector<2x8x96xf32> to vector<2x8x8xf32>
    %471 = vector.extract_strided_slice %423 {offsets = [0, 0, 48], sizes = [2, 8, 8], strides = [1, 1, 1]} : vector<2x8x96xf32> to vector<2x8x8xf32>
    %472 = vector.extract_strided_slice %423 {offsets = [0, 0, 80], sizes = [2, 8, 8], strides = [1, 1, 1]} : vector<2x8x96xf32> to vector<2x8x8xf32>
    %473 = arith.truncf %470 : vector<2x8x8xf32> to vector<2x8x8xbf16>
    %474 = arith.truncf %471 : vector<2x8x8xf32> to vector<2x8x8xbf16>
    "tpu.trace_start"() <{level = 10 : i32, message = "bqd,bkd->bqk"}> : () -> ()
    %cst_114 = arith.constant dense<0.000000e+00> : vector<2x8x8xf32>
    %475 = tpu.matmul %473, %474, %cst_114 {dimension_numbers = #tpu.dot_dimension_numbers<[2], [2], [1], [1], [0, 0, 0, 1, 1, 1], [0], [0]>} : vector<2x8x8xbf16>, vector<2x8x8xbf16>, vector<2x8x8xf32> -> vector<2x8x8xf32>
    "tpu.trace_stop"() : () -> ()
    %476 = vector.broadcast %10 : f32 to vector<2x8x8xf32>
    %477 = arith.mulf %475, %476 : vector<2x8x8xf32>
    %478 = vector.broadcast %8 : vector<2x1x8xf32> to vector<2x8x8xf32>
    %479 = arith.addf %477, %478 : vector<2x8x8xf32>
    %cst_115 = arith.constant dense<0xFF800000> : vector<2x8xf32>
    %480 = vector.multi_reduction <maximumf>, %479, %cst_115 [2] : vector<2x8x8xf32> to vector<2x8xf32>
    %481 = vector.shape_cast %480 : vector<2x8xf32> to vector<2x8x1xf32>
    %482 = vector.broadcast %481 : vector<2x8x1xf32> to vector<2x8x8xf32>
    %483 = arith.subf %479, %482 : vector<2x8x8xf32>
    %484 = math.exp %483 : vector<2x8x8xf32>
    %cst_116 = arith.constant dense<0.000000e+00> : vector<2x8xf32>
    %485 = vector.multi_reduction <add>, %484, %cst_116 [2] : vector<2x8x8xf32> to vector<2x8xf32>
    %486 = vector.shape_cast %485 : vector<2x8xf32> to vector<2x8x1xf32>
    %487 = tpu.reciprocal %486 {approx = true} : vector<2x8x1xf32> -> vector<2x8x1xf32>
    %488 = vector.broadcast %487 : vector<2x8x1xf32> to vector<2x8x8xf32>
    %489 = arith.mulf %484, %488 : vector<2x8x8xf32>
    %490 = arith.truncf %489 : vector<2x8x8xf32> to vector<2x8x8xbf16>
    %491 = arith.truncf %472 : vector<2x8x8xf32> to vector<2x8x8xbf16>
    "tpu.trace_start"() <{level = 10 : i32, message = "bqk,bkd->bqd"}> : () -> ()
    %cst_117 = arith.constant dense<0.000000e+00> : vector<2x8x8xf32>
    %492 = tpu.matmul %490, %491, %cst_117 {dimension_numbers = #tpu.dot_dimension_numbers<[2], [1], [1], [2], [0, 0, 0, 1, 1, 2], [0], [0]>} : vector<2x8x8xbf16>, vector<2x8x8xbf16>, vector<2x8x8xf32> -> vector<2x8x8xf32>
    "tpu.trace_stop"() : () -> ()
    %493 = vector.extract_strided_slice %423 {offsets = [0, 0, 24], sizes = [2, 8, 8], strides = [1, 1, 1]} : vector<2x8x96xf32> to vector<2x8x8xf32>
    %494 = vector.extract_strided_slice %423 {offsets = [0, 0, 56], sizes = [2, 8, 8], strides = [1, 1, 1]} : vector<2x8x96xf32> to vector<2x8x8xf32>
    %495 = vector.extract_strided_slice %423 {offsets = [0, 0, 88], sizes = [2, 8, 8], strides = [1, 1, 1]} : vector<2x8x96xf32> to vector<2x8x8xf32>
    %496 = arith.truncf %493 : vector<2x8x8xf32> to vector<2x8x8xbf16>
    %497 = arith.truncf %494 : vector<2x8x8xf32> to vector<2x8x8xbf16>
    "tpu.trace_start"() <{level = 10 : i32, message = "bqd,bkd->bqk"}> : () -> ()
    %cst_118 = arith.constant dense<0.000000e+00> : vector<2x8x8xf32>
    %498 = tpu.matmul %496, %497, %cst_118 {dimension_numbers = #tpu.dot_dimension_numbers<[2], [2], [1], [1], [0, 0, 0, 1, 1, 1], [0], [0]>} : vector<2x8x8xbf16>, vector<2x8x8xbf16>, vector<2x8x8xf32> -> vector<2x8x8xf32>
    "tpu.trace_stop"() : () -> ()
    %499 = vector.broadcast %10 : f32 to vector<2x8x8xf32>
    %500 = arith.mulf %498, %499 : vector<2x8x8xf32>
    %501 = vector.broadcast %8 : vector<2x1x8xf32> to vector<2x8x8xf32>
    %502 = arith.addf %500, %501 : vector<2x8x8xf32>
    %cst_119 = arith.constant dense<0xFF800000> : vector<2x8xf32>
    %503 = vector.multi_reduction <maximumf>, %502, %cst_119 [2] : vector<2x8x8xf32> to vector<2x8xf32>
    %504 = vector.shape_cast %503 : vector<2x8xf32> to vector<2x8x1xf32>
    %505 = vector.broadcast %504 : vector<2x8x1xf32> to vector<2x8x8xf32>
    %506 = arith.subf %502, %505 : vector<2x8x8xf32>
    %507 = math.exp %506 : vector<2x8x8xf32>
    %cst_120 = arith.constant dense<0.000000e+00> : vector<2x8xf32>
    %508 = vector.multi_reduction <add>, %507, %cst_120 [2] : vector<2x8x8xf32> to vector<2x8xf32>
    %509 = vector.shape_cast %508 : vector<2x8xf32> to vector<2x8x1xf32>
    %510 = tpu.reciprocal %509 {approx = true} : vector<2x8x1xf32> -> vector<2x8x1xf32>
    %511 = vector.broadcast %510 : vector<2x8x1xf32> to vector<2x8x8xf32>
    %512 = arith.mulf %507, %511 : vector<2x8x8xf32>
    %513 = arith.truncf %512 : vector<2x8x8xf32> to vector<2x8x8xbf16>
    %514 = arith.truncf %495 : vector<2x8x8xf32> to vector<2x8x8xbf16>
    "tpu.trace_start"() <{level = 10 : i32, message = "bqk,bkd->bqd"}> : () -> ()
    %cst_121 = arith.constant dense<0.000000e+00> : vector<2x8x8xf32>
    %515 = tpu.matmul %513, %514, %cst_121 {dimension_numbers = #tpu.dot_dimension_numbers<[2], [1], [1], [2], [0, 0, 0, 1, 1, 2], [0], [0]>} : vector<2x8x8xbf16>, vector<2x8x8xbf16>, vector<2x8x8xf32> -> vector<2x8x8xf32>
    "tpu.trace_stop"() : () -> ()
    %516 = tpu.concatenate %446, %469, %492, %515 in 2 : vector<2x8x8xf32>, vector<2x8x8xf32>, vector<2x8x8xf32>, vector<2x8x8xf32> -> vector<2x8x32xf32>
    %517 = arith.truncf %516 : vector<2x8x32xf32> to vector<2x8x32xbf16>
    %c2_122 = arith.constant 2 : index
    %c0_123 = arith.constant 0 : index
    %c0_124 = arith.constant 0 : index
    %518 = vector.load %arg3[%c2_122, %c0_123, %c0_124] : memref<4x32x32xbf16, #tpu.memory_space<vmem>>, vector<1x32x32xbf16>
    %519 = vector.shape_cast %518 : vector<1x32x32xbf16> to vector<32x32xbf16>
    "tpu.trace_start"() <{level = 10 : i32, message = "bsh,hk->bsk"}> : () -> ()
    %cst_125 = arith.constant dense<0.000000e+00> : vector<2x8x32xf32>
    %520 = tpu.matmul %517, %519, %cst_125 {dimension_numbers = #tpu.dot_dimension_numbers<[2], [0], [0, 1], [1], [0, 0, 0, 1, 1, 1], [], []>} : vector<2x8x32xbf16>, vector<32x32xbf16>, vector<2x8x32xf32> -> vector<2x8x32xf32>
    "tpu.trace_stop"() : () -> ()
    %521 = vector.extract_strided_slice %2 {offsets = [2, 1, 0], sizes = [1, 1, 32], strides = [1, 1, 1]} : vector<4x8x128xf32> to vector<1x1x32xf32>
    %522 = vector.shape_cast %521 : vector<1x1x32xf32> to vector<32xf32>
    %523 = vector.shape_cast %522 : vector<32xf32> to vector<1x1x32xf32>
    %524 = vector.broadcast %523 : vector<1x1x32xf32> to vector<2x8x32xf32>
    %525 = arith.addf %520, %524 : vector<2x8x32xf32>
    %526 = arith.addf %412, %525 : vector<2x8x32xf32>
    %527 = vector.extract_strided_slice %2 {offsets = [2, 2, 0], sizes = [1, 1, 32], strides = [1, 1, 1]} : vector<4x8x128xf32> to vector<1x1x32xf32>
    %528 = vector.shape_cast %527 : vector<1x1x32xf32> to vector<32xf32>
    %529 = vector.extract_strided_slice %2 {offsets = [2, 3, 0], sizes = [1, 1, 32], strides = [1, 1, 1]} : vector<4x8x128xf32> to vector<1x1x32xf32>
    %530 = vector.shape_cast %529 : vector<1x1x32xf32> to vector<32xf32>
    %cst_126 = arith.constant dense<0.000000e+00> : vector<2x8xf32>
    %531 = vector.multi_reduction <add>, %526, %cst_126 [2] : vector<2x8x32xf32> to vector<2x8xf32>
    %532 = vector.shape_cast %531 : vector<2x8xf32> to vector<2x8x1xf32>
    %cst_127 = arith.constant 3.200000e+01 : f32
    %533 = vector.broadcast %cst_127 : f32 to vector<2x8x1xf32>
    %534 = arith.divf %532, %533 : vector<2x8x1xf32>
    %535 = vector.broadcast %534 : vector<2x8x1xf32> to vector<2x8x32xf32>
    %536 = arith.subf %526, %535 : vector<2x8x32xf32>
    %537 = arith.mulf %536, %536 : vector<2x8x32xf32>
    %cst_128 = arith.constant dense<0.000000e+00> : vector<2x8xf32>
    %538 = vector.multi_reduction <add>, %537, %cst_128 [2] : vector<2x8x32xf32> to vector<2x8xf32>
    %539 = vector.shape_cast %538 : vector<2x8xf32> to vector<2x8x1xf32>
    %cst_129 = arith.constant 3.200000e+01 : f32
    %540 = vector.broadcast %cst_129 : f32 to vector<2x8x1xf32>
    %541 = arith.divf %539, %540 : vector<2x8x1xf32>
    %542 = vector.broadcast %534 : vector<2x8x1xf32> to vector<2x8x32xf32>
    %543 = arith.subf %526, %542 : vector<2x8x32xf32>
    %cst_130 = arith.constant 9.99999996E-13 : f32
    %544 = vector.broadcast %cst_130 : f32 to vector<2x8x1xf32>
    %545 = arith.addf %541, %544 : vector<2x8x1xf32>
    %546 = math.rsqrt %545 : vector<2x8x1xf32>
    %547 = vector.broadcast %546 : vector<2x8x1xf32> to vector<2x8x32xf32>
    %548 = arith.mulf %543, %547 : vector<2x8x32xf32>
    %549 = vector.shape_cast %528 : vector<32xf32> to vector<1x1x32xf32>
    %550 = vector.broadcast %549 : vector<1x1x32xf32> to vector<2x8x32xf32>
    %551 = arith.mulf %548, %550 : vector<2x8x32xf32>
    %552 = vector.shape_cast %530 : vector<32xf32> to vector<1x1x32xf32>
    %553 = vector.broadcast %552 : vector<1x1x32xf32> to vector<2x8x32xf32>
    %554 = arith.addf %551, %553 : vector<2x8x32xf32>
    %555 = arith.truncf %554 : vector<2x8x32xf32> to vector<2x8x32xbf16>
    %c2_131 = arith.constant 2 : index
    %c0_132 = arith.constant 0 : index
    %c0_133 = arith.constant 0 : index
    %556 = vector.load %arg4[%c2_131, %c0_132, %c0_133] : memref<4x32x64xbf16, #tpu.memory_space<vmem>>, vector<1x32x64xbf16>
    %557 = vector.shape_cast %556 : vector<1x32x64xbf16> to vector<32x64xbf16>
    "tpu.trace_start"() <{level = 10 : i32, message = "bsh,hf->bsf"}> : () -> ()
    %cst_134 = arith.constant dense<0.000000e+00> : vector<2x8x64xf32>
    %558 = tpu.matmul %555, %557, %cst_134 {dimension_numbers = #tpu.dot_dimension_numbers<[2], [0], [0, 1], [1], [0, 0, 0, 1, 1, 1], [], []>} : vector<2x8x32xbf16>, vector<32x64xbf16>, vector<2x8x64xf32> -> vector<2x8x64xf32>
    "tpu.trace_stop"() : () -> ()
    %559 = vector.extract_strided_slice %2 {offsets = [2, 4, 0], sizes = [1, 1, 64], strides = [1, 1, 1]} : vector<4x8x128xf32> to vector<1x1x64xf32>
    %560 = vector.shape_cast %559 : vector<1x1x64xf32> to vector<64xf32>
    %561 = vector.shape_cast %560 : vector<64xf32> to vector<1x1x64xf32>
    %562 = vector.broadcast %561 : vector<1x1x64xf32> to vector<2x8x64xf32>
    %563 = arith.addf %558, %562 : vector<2x8x64xf32>
    %564 = arith.mulf %563, %563 : vector<2x8x64xf32>
    %565 = arith.mulf %563, %564 : vector<2x8x64xf32>
    %cst_135 = arith.constant 4.471500e-02 : f32
    %566 = vector.broadcast %cst_135 : f32 to vector<2x8x64xf32>
    %567 = arith.mulf %566, %565 : vector<2x8x64xf32>
    %568 = arith.addf %563, %567 : vector<2x8x64xf32>
    %cst_136 = arith.constant 0.797884583 : f32
    %569 = vector.broadcast %cst_136 : f32 to vector<2x8x64xf32>
    %570 = arith.mulf %569, %568 : vector<2x8x64xf32>
    %571 = math.tanh %570 : vector<2x8x64xf32>
    %cst_137 = arith.constant 1.000000e+00 : f32
    %572 = vector.broadcast %cst_137 : f32 to vector<2x8x64xf32>
    %573 = arith.addf %572, %571 : vector<2x8x64xf32>
    %cst_138 = arith.constant 5.000000e-01 : f32
    %574 = vector.broadcast %cst_138 : f32 to vector<2x8x64xf32>
    %575 = arith.mulf %574, %573 : vector<2x8x64xf32>
    %576 = arith.mulf %563, %575 : vector<2x8x64xf32>
    %577 = arith.truncf %576 : vector<2x8x64xf32> to vector<2x8x64xbf16>
    %c2_139 = arith.constant 2 : index
    %c0_140 = arith.constant 0 : index
    %c0_141 = arith.constant 0 : index
    %578 = vector.load %arg5[%c2_139, %c0_140, %c0_141] : memref<4x64x32xbf16, #tpu.memory_space<vmem>>, vector<1x64x32xbf16>
    %579 = vector.shape_cast %578 : vector<1x64x32xbf16> to vector<64x32xbf16>
    "tpu.trace_start"() <{level = 10 : i32, message = "bsf,fh->bsh"}> : () -> ()
    %cst_142 = arith.constant dense<0.000000e+00> : vector<2x8x32xf32>
    %580 = tpu.matmul %577, %579, %cst_142 {dimension_numbers = #tpu.dot_dimension_numbers<[2], [0], [0, 1], [1], [0, 0, 0, 1, 1, 1], [], []>} : vector<2x8x64xbf16>, vector<64x32xbf16>, vector<2x8x32xf32> -> vector<2x8x32xf32>
    "tpu.trace_stop"() : () -> ()
    %581 = vector.extract_strided_slice %2 {offsets = [2, 5, 0], sizes = [1, 1, 32], strides = [1, 1, 1]} : vector<4x8x128xf32> to vector<1x1x32xf32>
    %582 = vector.shape_cast %581 : vector<1x1x32xf32> to vector<32xf32>
    %583 = vector.shape_cast %582 : vector<32xf32> to vector<1x1x32xf32>
    %584 = vector.broadcast %583 : vector<1x1x32xf32> to vector<2x8x32xf32>
    %585 = arith.addf %580, %584 : vector<2x8x32xf32>
    %586 = arith.addf %554, %585 : vector<2x8x32xf32>
    %587 = vector.extract_strided_slice %2 {offsets = [2, 6, 0], sizes = [1, 1, 32], strides = [1, 1, 1]} : vector<4x8x128xf32> to vector<1x1x32xf32>
    %588 = vector.shape_cast %587 : vector<1x1x32xf32> to vector<32xf32>
    %589 = vector.extract_strided_slice %2 {offsets = [2, 7, 0], sizes = [1, 1, 32], strides = [1, 1, 1]} : vector<4x8x128xf32> to vector<1x1x32xf32>
    %590 = vector.shape_cast %589 : vector<1x1x32xf32> to vector<32xf32>
    %cst_143 = arith.constant dense<0.000000e+00> : vector<2x8xf32>
    %591 = vector.multi_reduction <add>, %586, %cst_143 [2] : vector<2x8x32xf32> to vector<2x8xf32>
    %592 = vector.shape_cast %591 : vector<2x8xf32> to vector<2x8x1xf32>
    %cst_144 = arith.constant 3.200000e+01 : f32
    %593 = vector.broadcast %cst_144 : f32 to vector<2x8x1xf32>
    %594 = arith.divf %592, %593 : vector<2x8x1xf32>
    %595 = vector.broadcast %594 : vector<2x8x1xf32> to vector<2x8x32xf32>
    %596 = arith.subf %586, %595 : vector<2x8x32xf32>
    %597 = arith.mulf %596, %596 : vector<2x8x32xf32>
    %cst_145 = arith.constant dense<0.000000e+00> : vector<2x8xf32>
    %598 = vector.multi_reduction <add>, %597, %cst_145 [2] : vector<2x8x32xf32> to vector<2x8xf32>
    %599 = vector.shape_cast %598 : vector<2x8xf32> to vector<2x8x1xf32>
    %cst_146 = arith.constant 3.200000e+01 : f32
    %600 = vector.broadcast %cst_146 : f32 to vector<2x8x1xf32>
    %601 = arith.divf %599, %600 : vector<2x8x1xf32>
    %602 = vector.broadcast %594 : vector<2x8x1xf32> to vector<2x8x32xf32>
    %603 = arith.subf %586, %602 : vector<2x8x32xf32>
    %cst_147 = arith.constant 9.99999996E-13 : f32
    %604 = vector.broadcast %cst_147 : f32 to vector<2x8x1xf32>
    %605 = arith.addf %601, %604 : vector<2x8x1xf32>
    %606 = math.rsqrt %605 : vector<2x8x1xf32>
    %607 = vector.broadcast %606 : vector<2x8x1xf32> to vector<2x8x32xf32>
    %608 = arith.mulf %603, %607 : vector<2x8x32xf32>
    %609 = vector.shape_cast %588 : vector<32xf32> to vector<1x1x32xf32>
    %610 = vector.broadcast %609 : vector<1x1x32xf32> to vector<2x8x32xf32>
    %611 = arith.mulf %608, %610 : vector<2x8x32xf32>
    %612 = vector.shape_cast %590 : vector<32xf32> to vector<1x1x32xf32>
    %613 = vector.broadcast %612 : vector<1x1x32xf32> to vector<2x8x32xf32>
    %614 = arith.addf %611, %613 : vector<2x8x32xf32>
    %615 = vector.extract_strided_slice %614 {offsets = [0, 0, 0], sizes = [2, 1, 32], strides = [1, 1, 1]} : vector<2x8x32xf32> to vector<2x1x32xf32>
    %616 = vector.shape_cast %615 : vector<2x1x32xf32> to vector<2x32xf32>
    %617 = arith.truncf %614 : vector<2x8x32xf32> to vector<2x8x32xbf16>
    %c3 = arith.constant 3 : index
    %c0_148 = arith.constant 0 : index
    %c0_149 = arith.constant 0 : index
    %618 = vector.load %arg2[%c3, %c0_148, %c0_149] : memref<4x32x96xbf16, #tpu.memory_space<vmem>>, vector<1x32x96xbf16>
    %619 = vector.shape_cast %618 : vector<1x32x96xbf16> to vector<32x96xbf16>
    "tpu.trace_start"() <{level = 10 : i32, message = "bsh,hk->bsk"}> : () -> ()
    %cst_150 = arith.constant dense<0.000000e+00> : vector<2x8x96xf32>
    %620 = tpu.matmul %617, %619, %cst_150 {dimension_numbers = #tpu.dot_dimension_numbers<[2], [0], [0, 1], [1], [0, 0, 0, 1, 1, 1], [], []>} : vector<2x8x32xbf16>, vector<32x96xbf16>, vector<2x8x96xf32> -> vector<2x8x96xf32>
    "tpu.trace_stop"() : () -> ()
    %621 = vector.extract_strided_slice %2 {offsets = [3, 0, 0], sizes = [1, 1, 96], strides = [1, 1, 1]} : vector<4x8x128xf32> to vector<1x1x96xf32>
    %622 = vector.shape_cast %621 : vector<1x1x96xf32> to vector<96xf32>
    %623 = vector.shape_cast %622 : vector<96xf32> to vector<1x1x96xf32>
    %624 = vector.broadcast %623 : vector<1x1x96xf32> to vector<2x8x96xf32>
    %625 = arith.addf %620, %624 : vector<2x8x96xf32>
    %626 = vector.extract_strided_slice %625 {offsets = [0, 0, 0], sizes = [2, 8, 8], strides = [1, 1, 1]} : vector<2x8x96xf32> to vector<2x8x8xf32>
    %627 = vector.extract_strided_slice %625 {offsets = [0, 0, 32], sizes = [2, 8, 8], strides = [1, 1, 1]} : vector<2x8x96xf32> to vector<2x8x8xf32>
    %628 = vector.extract_strided_slice %625 {offsets = [0, 0, 64], sizes = [2, 8, 8], strides = [1, 1, 1]} : vector<2x8x96xf32> to vector<2x8x8xf32>
    %629 = arith.truncf %626 : vector<2x8x8xf32> to vector<2x8x8xbf16>
    %630 = arith.truncf %627 : vector<2x8x8xf32> to vector<2x8x8xbf16>
    "tpu.trace_start"() <{level = 10 : i32, message = "bqd,bkd->bqk"}> : () -> ()
    %cst_151 = arith.constant dense<0.000000e+00> : vector<2x8x8xf32>
    %631 = tpu.matmul %629, %630, %cst_151 {dimension_numbers = #tpu.dot_dimension_numbers<[2], [2], [1], [1], [0, 0, 0, 1, 1, 1], [0], [0]>} : vector<2x8x8xbf16>, vector<2x8x8xbf16>, vector<2x8x8xf32> -> vector<2x8x8xf32>
    "tpu.trace_stop"() : () -> ()
    %632 = vector.broadcast %10 : f32 to vector<2x8x8xf32>
    %633 = arith.mulf %631, %632 : vector<2x8x8xf32>
    %634 = vector.broadcast %8 : vector<2x1x8xf32> to vector<2x8x8xf32>
    %635 = arith.addf %633, %634 : vector<2x8x8xf32>
    %cst_152 = arith.constant dense<0xFF800000> : vector<2x8xf32>
    %636 = vector.multi_reduction <maximumf>, %635, %cst_152 [2] : vector<2x8x8xf32> to vector<2x8xf32>
    %637 = vector.shape_cast %636 : vector<2x8xf32> to vector<2x8x1xf32>
    %638 = vector.broadcast %637 : vector<2x8x1xf32> to vector<2x8x8xf32>
    %639 = arith.subf %635, %638 : vector<2x8x8xf32>
    %640 = math.exp %639 : vector<2x8x8xf32>
    %cst_153 = arith.constant dense<0.000000e+00> : vector<2x8xf32>
    %641 = vector.multi_reduction <add>, %640, %cst_153 [2] : vector<2x8x8xf32> to vector<2x8xf32>
    %642 = vector.shape_cast %641 : vector<2x8xf32> to vector<2x8x1xf32>
    %643 = tpu.reciprocal %642 {approx = true} : vector<2x8x1xf32> -> vector<2x8x1xf32>
    %644 = vector.broadcast %643 : vector<2x8x1xf32> to vector<2x8x8xf32>
    %645 = arith.mulf %640, %644 : vector<2x8x8xf32>
    %646 = arith.truncf %645 : vector<2x8x8xf32> to vector<2x8x8xbf16>
    %647 = arith.truncf %628 : vector<2x8x8xf32> to vector<2x8x8xbf16>
    "tpu.trace_start"() <{level = 10 : i32, message = "bqk,bkd->bqd"}> : () -> ()
    %cst_154 = arith.constant dense<0.000000e+00> : vector<2x8x8xf32>
    %648 = tpu.matmul %646, %647, %cst_154 {dimension_numbers = #tpu.dot_dimension_numbers<[2], [1], [1], [2], [0, 0, 0, 1, 1, 2], [0], [0]>} : vector<2x8x8xbf16>, vector<2x8x8xbf16>, vector<2x8x8xf32> -> vector<2x8x8xf32>
    "tpu.trace_stop"() : () -> ()
    %649 = vector.extract_strided_slice %625 {offsets = [0, 0, 8], sizes = [2, 8, 8], strides = [1, 1, 1]} : vector<2x8x96xf32> to vector<2x8x8xf32>
    %650 = vector.extract_strided_slice %625 {offsets = [0, 0, 40], sizes = [2, 8, 8], strides = [1, 1, 1]} : vector<2x8x96xf32> to vector<2x8x8xf32>
    %651 = vector.extract_strided_slice %625 {offsets = [0, 0, 72], sizes = [2, 8, 8], strides = [1, 1, 1]} : vector<2x8x96xf32> to vector<2x8x8xf32>
    %652 = arith.truncf %649 : vector<2x8x8xf32> to vector<2x8x8xbf16>
    %653 = arith.truncf %650 : vector<2x8x8xf32> to vector<2x8x8xbf16>
    "tpu.trace_start"() <{level = 10 : i32, message = "bqd,bkd->bqk"}> : () -> ()
    %cst_155 = arith.constant dense<0.000000e+00> : vector<2x8x8xf32>
    %654 = tpu.matmul %652, %653, %cst_155 {dimension_numbers = #tpu.dot_dimension_numbers<[2], [2], [1], [1], [0, 0, 0, 1, 1, 1], [0], [0]>} : vector<2x8x8xbf16>, vector<2x8x8xbf16>, vector<2x8x8xf32> -> vector<2x8x8xf32>
    "tpu.trace_stop"() : () -> ()
    %655 = vector.broadcast %10 : f32 to vector<2x8x8xf32>
    %656 = arith.mulf %654, %655 : vector<2x8x8xf32>
    %657 = vector.broadcast %8 : vector<2x1x8xf32> to vector<2x8x8xf32>
    %658 = arith.addf %656, %657 : vector<2x8x8xf32>
    %cst_156 = arith.constant dense<0xFF800000> : vector<2x8xf32>
    %659 = vector.multi_reduction <maximumf>, %658, %cst_156 [2] : vector<2x8x8xf32> to vector<2x8xf32>
    %660 = vector.shape_cast %659 : vector<2x8xf32> to vector<2x8x1xf32>
    %661 = vector.broadcast %660 : vector<2x8x1xf32> to vector<2x8x8xf32>
    %662 = arith.subf %658, %661 : vector<2x8x8xf32>
    %663 = math.exp %662 : vector<2x8x8xf32>
    %cst_157 = arith.constant dense<0.000000e+00> : vector<2x8xf32>
    %664 = vector.multi_reduction <add>, %663, %cst_157 [2] : vector<2x8x8xf32> to vector<2x8xf32>
    %665 = vector.shape_cast %664 : vector<2x8xf32> to vector<2x8x1xf32>
    %666 = tpu.reciprocal %665 {approx = true} : vector<2x8x1xf32> -> vector<2x8x1xf32>
    %667 = vector.broadcast %666 : vector<2x8x1xf32> to vector<2x8x8xf32>
    %668 = arith.mulf %663, %667 : vector<2x8x8xf32>
    %669 = arith.truncf %668 : vector<2x8x8xf32> to vector<2x8x8xbf16>
    %670 = arith.truncf %651 : vector<2x8x8xf32> to vector<2x8x8xbf16>
    "tpu.trace_start"() <{level = 10 : i32, message = "bqk,bkd->bqd"}> : () -> ()
    %cst_158 = arith.constant dense<0.000000e+00> : vector<2x8x8xf32>
    %671 = tpu.matmul %669, %670, %cst_158 {dimension_numbers = #tpu.dot_dimension_numbers<[2], [1], [1], [2], [0, 0, 0, 1, 1, 2], [0], [0]>} : vector<2x8x8xbf16>, vector<2x8x8xbf16>, vector<2x8x8xf32> -> vector<2x8x8xf32>
    "tpu.trace_stop"() : () -> ()
    %672 = vector.extract_strided_slice %625 {offsets = [0, 0, 16], sizes = [2, 8, 8], strides = [1, 1, 1]} : vector<2x8x96xf32> to vector<2x8x8xf32>
    %673 = vector.extract_strided_slice %625 {offsets = [0, 0, 48], sizes = [2, 8, 8], strides = [1, 1, 1]} : vector<2x8x96xf32> to vector<2x8x8xf32>
    %674 = vector.extract_strided_slice %625 {offsets = [0, 0, 80], sizes = [2, 8, 8], strides = [1, 1, 1]} : vector<2x8x96xf32> to vector<2x8x8xf32>
    %675 = arith.truncf %672 : vector<2x8x8xf32> to vector<2x8x8xbf16>
    %676 = arith.truncf %673 : vector<2x8x8xf32> to vector<2x8x8xbf16>
    "tpu.trace_start"() <{level = 10 : i32, message = "bqd,bkd->bqk"}> : () -> ()
    %cst_159 = arith.constant dense<0.000000e+00> : vector<2x8x8xf32>
    %677 = tpu.matmul %675, %676, %cst_159 {dimension_numbers = #tpu.dot_dimension_numbers<[2], [2], [1], [1], [0, 0, 0, 1, 1, 1], [0], [0]>} : vector<2x8x8xbf16>, vector<2x8x8xbf16>, vector<2x8x8xf32> -> vector<2x8x8xf32>
    "tpu.trace_stop"() : () -> ()
    %678 = vector.broadcast %10 : f32 to vector<2x8x8xf32>
    %679 = arith.mulf %677, %678 : vector<2x8x8xf32>
    %680 = vector.broadcast %8 : vector<2x1x8xf32> to vector<2x8x8xf32>
    %681 = arith.addf %679, %680 : vector<2x8x8xf32>
    %cst_160 = arith.constant dense<0xFF800000> : vector<2x8xf32>
    %682 = vector.multi_reduction <maximumf>, %681, %cst_160 [2] : vector<2x8x8xf32> to vector<2x8xf32>
    %683 = vector.shape_cast %682 : vector<2x8xf32> to vector<2x8x1xf32>
    %684 = vector.broadcast %683 : vector<2x8x1xf32> to vector<2x8x8xf32>
    %685 = arith.subf %681, %684 : vector<2x8x8xf32>
    %686 = math.exp %685 : vector<2x8x8xf32>
    %cst_161 = arith.constant dense<0.000000e+00> : vector<2x8xf32>
    %687 = vector.multi_reduction <add>, %686, %cst_161 [2] : vector<2x8x8xf32> to vector<2x8xf32>
    %688 = vector.shape_cast %687 : vector<2x8xf32> to vector<2x8x1xf32>
    %689 = tpu.reciprocal %688 {approx = true} : vector<2x8x1xf32> -> vector<2x8x1xf32>
    %690 = vector.broadcast %689 : vector<2x8x1xf32> to vector<2x8x8xf32>
    %691 = arith.mulf %686, %690 : vector<2x8x8xf32>
    %692 = arith.truncf %691 : vector<2x8x8xf32> to vector<2x8x8xbf16>
    %693 = arith.truncf %674 : vector<2x8x8xf32> to vector<2x8x8xbf16>
    "tpu.trace_start"() <{level = 10 : i32, message = "bqk,bkd->bqd"}> : () -> ()
    %cst_162 = arith.constant dense<0.000000e+00> : vector<2x8x8xf32>
    %694 = tpu.matmul %692, %693, %cst_162 {dimension_numbers = #tpu.dot_dimension_numbers<[2], [1], [1], [2], [0, 0, 0, 1, 1, 2], [0], [0]>} : vector<2x8x8xbf16>, vector<2x8x8xbf16>, vector<2x8x8xf32> -> vector<2x8x8xf32>
    "tpu.trace_stop"() : () -> ()
    %695 = vector.extract_strided_slice %625 {offsets = [0, 0, 24], sizes = [2, 8, 8], strides = [1, 1, 1]} : vector<2x8x96xf32> to vector<2x8x8xf32>
    %696 = vector.extract_strided_slice %625 {offsets = [0, 0, 56], sizes = [2, 8, 8], strides = [1, 1, 1]} : vector<2x8x96xf32> to vector<2x8x8xf32>
    %697 = vector.extract_strided_slice %625 {offsets = [0, 0, 88], sizes = [2, 8, 8], strides = [1, 1, 1]} : vector<2x8x96xf32> to vector<2x8x8xf32>
    %698 = arith.truncf %695 : vector<2x8x8xf32> to vector<2x8x8xbf16>
    %699 = arith.truncf %696 : vector<2x8x8xf32> to vector<2x8x8xbf16>
    "tpu.trace_start"() <{level = 10 : i32, message = "bqd,bkd->bqk"}> : () -> ()
    %cst_163 = arith.constant dense<0.000000e+00> : vector<2x8x8xf32>
    %700 = tpu.matmul %698, %699, %cst_163 {dimension_numbers = #tpu.dot_dimension_numbers<[2], [2], [1], [1], [0, 0, 0, 1, 1, 1], [0], [0]>} : vector<2x8x8xbf16>, vector<2x8x8xbf16>, vector<2x8x8xf32> -> vector<2x8x8xf32>
    "tpu.trace_stop"() : () -> ()
    %701 = vector.broadcast %10 : f32 to vector<2x8x8xf32>
    %702 = arith.mulf %700, %701 : vector<2x8x8xf32>
    %703 = vector.broadcast %8 : vector<2x1x8xf32> to vector<2x8x8xf32>
    %704 = arith.addf %702, %703 : vector<2x8x8xf32>
    %cst_164 = arith.constant dense<0xFF800000> : vector<2x8xf32>
    %705 = vector.multi_reduction <maximumf>, %704, %cst_164 [2] : vector<2x8x8xf32> to vector<2x8xf32>
    %706 = vector.shape_cast %705 : vector<2x8xf32> to vector<2x8x1xf32>
    %707 = vector.broadcast %706 : vector<2x8x1xf32> to vector<2x8x8xf32>
    %708 = arith.subf %704, %707 : vector<2x8x8xf32>
    %709 = math.exp %708 : vector<2x8x8xf32>
    %cst_165 = arith.constant dense<0.000000e+00> : vector<2x8xf32>
    %710 = vector.multi_reduction <add>, %709, %cst_165 [2] : vector<2x8x8xf32> to vector<2x8xf32>
    %711 = vector.shape_cast %710 : vector<2x8xf32> to vector<2x8x1xf32>
    %712 = tpu.reciprocal %711 {approx = true} : vector<2x8x1xf32> -> vector<2x8x1xf32>
    %713 = vector.broadcast %712 : vector<2x8x1xf32> to vector<2x8x8xf32>
    %714 = arith.mulf %709, %713 : vector<2x8x8xf32>
    %715 = arith.truncf %714 : vector<2x8x8xf32> to vector<2x8x8xbf16>
    %716 = arith.truncf %697 : vector<2x8x8xf32> to vector<2x8x8xbf16>
    "tpu.trace_start"() <{level = 10 : i32, message = "bqk,bkd->bqd"}> : () -> ()
    %cst_166 = arith.constant dense<0.000000e+00> : vector<2x8x8xf32>
    %717 = tpu.matmul %715, %716, %cst_166 {dimension_numbers = #tpu.dot_dimension_numbers<[2], [1], [1], [2], [0, 0, 0, 1, 1, 2], [0], [0]>} : vector<2x8x8xbf16>, vector<2x8x8xbf16>, vector<2x8x8xf32> -> vector<2x8x8xf32>
    "tpu.trace_stop"() : () -> ()
    %718 = tpu.concatenate %648, %671, %694, %717 in 2 : vector<2x8x8xf32>, vector<2x8x8xf32>, vector<2x8x8xf32>, vector<2x8x8xf32> -> vector<2x8x32xf32>
    %719 = arith.truncf %718 : vector<2x8x32xf32> to vector<2x8x32xbf16>
    %c3_167 = arith.constant 3 : index
    %c0_168 = arith.constant 0 : index
    %c0_169 = arith.constant 0 : index
    %720 = vector.load %arg3[%c3_167, %c0_168, %c0_169] : memref<4x32x32xbf16, #tpu.memory_space<vmem>>, vector<1x32x32xbf16>
    %721 = vector.shape_cast %720 : vector<1x32x32xbf16> to vector<32x32xbf16>
    "tpu.trace_start"() <{level = 10 : i32, message = "bsh,hk->bsk"}> : () -> ()
    %cst_170 = arith.constant dense<0.000000e+00> : vector<2x8x32xf32>
    %722 = tpu.matmul %719, %721, %cst_170 {dimension_numbers = #tpu.dot_dimension_numbers<[2], [0], [0, 1], [1], [0, 0, 0, 1, 1, 1], [], []>} : vector<2x8x32xbf16>, vector<32x32xbf16>, vector<2x8x32xf32> -> vector<2x8x32xf32>
    "tpu.trace_stop"() : () -> ()
    %723 = vector.extract_strided_slice %2 {offsets = [3, 1, 0], sizes = [1, 1, 32], strides = [1, 1, 1]} : vector<4x8x128xf32> to vector<1x1x32xf32>
    %724 = vector.shape_cast %723 : vector<1x1x32xf32> to vector<32xf32>
    %725 = vector.shape_cast %724 : vector<32xf32> to vector<1x1x32xf32>
    %726 = vector.broadcast %725 : vector<1x1x32xf32> to vector<2x8x32xf32>
    %727 = arith.addf %722, %726 : vector<2x8x32xf32>
    %728 = arith.addf %614, %727 : vector<2x8x32xf32>
    %729 = vector.extract_strided_slice %2 {offsets = [3, 2, 0], sizes = [1, 1, 32], strides = [1, 1, 1]} : vector<4x8x128xf32> to vector<1x1x32xf32>
    %730 = vector.shape_cast %729 : vector<1x1x32xf32> to vector<32xf32>
    %731 = vector.extract_strided_slice %2 {offsets = [3, 3, 0], sizes = [1, 1, 32], strides = [1, 1, 1]} : vector<4x8x128xf32> to vector<1x1x32xf32>
    %732 = vector.shape_cast %731 : vector<1x1x32xf32> to vector<32xf32>
    %cst_171 = arith.constant dense<0.000000e+00> : vector<2x8xf32>
    %733 = vector.multi_reduction <add>, %728, %cst_171 [2] : vector<2x8x32xf32> to vector<2x8xf32>
    %734 = vector.shape_cast %733 : vector<2x8xf32> to vector<2x8x1xf32>
    %cst_172 = arith.constant 3.200000e+01 : f32
    %735 = vector.broadcast %cst_172 : f32 to vector<2x8x1xf32>
    %736 = arith.divf %734, %735 : vector<2x8x1xf32>
    %737 = vector.broadcast %736 : vector<2x8x1xf32> to vector<2x8x32xf32>
    %738 = arith.subf %728, %737 : vector<2x8x32xf32>
    %739 = arith.mulf %738, %738 : vector<2x8x32xf32>
    %cst_173 = arith.constant dense<0.000000e+00> : vector<2x8xf32>
    %740 = vector.multi_reduction <add>, %739, %cst_173 [2] : vector<2x8x32xf32> to vector<2x8xf32>
    %741 = vector.shape_cast %740 : vector<2x8xf32> to vector<2x8x1xf32>
    %cst_174 = arith.constant 3.200000e+01 : f32
    %742 = vector.broadcast %cst_174 : f32 to vector<2x8x1xf32>
    %743 = arith.divf %741, %742 : vector<2x8x1xf32>
    %744 = vector.broadcast %736 : vector<2x8x1xf32> to vector<2x8x32xf32>
    %745 = arith.subf %728, %744 : vector<2x8x32xf32>
    %cst_175 = arith.constant 9.99999996E-13 : f32
    %746 = vector.broadcast %cst_175 : f32 to vector<2x8x1xf32>
    %747 = arith.addf %743, %746 : vector<2x8x1xf32>
    %748 = math.rsqrt %747 : vector<2x8x1xf32>
    %749 = vector.broadcast %748 : vector<2x8x1xf32> to vector<2x8x32xf32>
    %750 = arith.mulf %745, %749 : vector<2x8x32xf32>
    %751 = vector.shape_cast %730 : vector<32xf32> to vector<1x1x32xf32>
    %752 = vector.broadcast %751 : vector<1x1x32xf32> to vector<2x8x32xf32>
    %753 = arith.mulf %750, %752 : vector<2x8x32xf32>
    %754 = vector.shape_cast %732 : vector<32xf32> to vector<1x1x32xf32>
    %755 = vector.broadcast %754 : vector<1x1x32xf32> to vector<2x8x32xf32>
    %756 = arith.addf %753, %755 : vector<2x8x32xf32>
    %757 = arith.truncf %756 : vector<2x8x32xf32> to vector<2x8x32xbf16>
    %c3_176 = arith.constant 3 : index
    %c0_177 = arith.constant 0 : index
    %c0_178 = arith.constant 0 : index
    %758 = vector.load %arg4[%c3_176, %c0_177, %c0_178] : memref<4x32x64xbf16, #tpu.memory_space<vmem>>, vector<1x32x64xbf16>
    %759 = vector.shape_cast %758 : vector<1x32x64xbf16> to vector<32x64xbf16>
    "tpu.trace_start"() <{level = 10 : i32, message = "bsh,hf->bsf"}> : () -> ()
    %cst_179 = arith.constant dense<0.000000e+00> : vector<2x8x64xf32>
    %760 = tpu.matmul %757, %759, %cst_179 {dimension_numbers = #tpu.dot_dimension_numbers<[2], [0], [0, 1], [1], [0, 0, 0, 1, 1, 1], [], []>} : vector<2x8x32xbf16>, vector<32x64xbf16>, vector<2x8x64xf32> -> vector<2x8x64xf32>
    "tpu.trace_stop"() : () -> ()
    %761 = vector.extract_strided_slice %2 {offsets = [3, 4, 0], sizes = [1, 1, 64], strides = [1, 1, 1]} : vector<4x8x128xf32> to vector<1x1x64xf32>
    %762 = vector.shape_cast %761 : vector<1x1x64xf32> to vector<64xf32>
    %763 = vector.shape_cast %762 : vector<64xf32> to vector<1x1x64xf32>
    %764 = vector.broadcast %763 : vector<1x1x64xf32> to vector<2x8x64xf32>
    %765 = arith.addf %760, %764 : vector<2x8x64xf32>
    %766 = arith.mulf %765, %765 : vector<2x8x64xf32>
    %767 = arith.mulf %765, %766 : vector<2x8x64xf32>
    %cst_180 = arith.constant 4.471500e-02 : f32
    %768 = vector.broadcast %cst_180 : f32 to vector<2x8x64xf32>
    %769 = arith.mulf %768, %767 : vector<2x8x64xf32>
    %770 = arith.addf %765, %769 : vector<2x8x64xf32>
    %cst_181 = arith.constant 0.797884583 : f32
    %771 = vector.broadcast %cst_181 : f32 to vector<2x8x64xf32>
    %772 = arith.mulf %771, %770 : vector<2x8x64xf32>
    %773 = math.tanh %772 : vector<2x8x64xf32>
    %cst_182 = arith.constant 1.000000e+00 : f32
    %774 = vector.broadcast %cst_182 : f32 to vector<2x8x64xf32>
    %775 = arith.addf %774, %773 : vector<2x8x64xf32>
    %cst_183 = arith.constant 5.000000e-01 : f32
    %776 = vector.broadcast %cst_183 : f32 to vector<2x8x64xf32>
    %777 = arith.mulf %776, %775 : vector<2x8x64xf32>
    %778 = arith.mulf %765, %777 : vector<2x8x64xf32>
    %779 = arith.truncf %778 : vector<2x8x64xf32> to vector<2x8x64xbf16>
    %c3_184 = arith.constant 3 : index
    %c0_185 = arith.constant 0 : index
    %c0_186 = arith.constant 0 : index
    %780 = vector.load %arg5[%c3_184, %c0_185, %c0_186] : memref<4x64x32xbf16, #tpu.memory_space<vmem>>, vector<1x64x32xbf16>
    %781 = vector.shape_cast %780 : vector<1x64x32xbf16> to vector<64x32xbf16>
    "tpu.trace_start"() <{level = 10 : i32, message = "bsf,fh->bsh"}> : () -> ()
    %cst_187 = arith.constant dense<0.000000e+00> : vector<2x8x32xf32>
    %782 = tpu.matmul %779, %781, %cst_187 {dimension_numbers = #tpu.dot_dimension_numbers<[2], [0], [0, 1], [1], [0, 0, 0, 1, 1, 1], [], []>} : vector<2x8x64xbf16>, vector<64x32xbf16>, vector<2x8x32xf32> -> vector<2x8x32xf32>
    "tpu.trace_stop"() : () -> ()
    %783 = vector.extract_strided_slice %2 {offsets = [3, 5, 0], sizes = [1, 1, 32], strides = [1, 1, 1]} : vector<4x8x128xf32> to vector<1x1x32xf32>
    %784 = vector.shape_cast %783 : vector<1x1x32xf32> to vector<32xf32>
    %785 = vector.shape_cast %784 : vector<32xf32> to vector<1x1x32xf32>
    %786 = vector.broadcast %785 : vector<1x1x32xf32> to vector<2x8x32xf32>
    %787 = arith.addf %782, %786 : vector<2x8x32xf32>
    %788 = arith.addf %756, %787 : vector<2x8x32xf32>
    %789 = vector.extract_strided_slice %2 {offsets = [3, 6, 0], sizes = [1, 1, 32], strides = [1, 1, 1]} : vector<4x8x128xf32> to vector<1x1x32xf32>
    %790 = vector.shape_cast %789 : vector<1x1x32xf32> to vector<32xf32>
    %791 = vector.extract_strided_slice %2 {offsets = [3, 7, 0], sizes = [1, 1, 32], strides = [1, 1, 1]} : vector<4x8x128xf32> to vector<1x1x32xf32>
    %792 = vector.shape_cast %791 : vector<1x1x32xf32> to vector<32xf32>
    %cst_188 = arith.constant dense<0.000000e+00> : vector<2x8xf32>
    %793 = vector.multi_reduction <add>, %788, %cst_188 [2] : vector<2x8x32xf32> to vector<2x8xf32>
    %794 = vector.shape_cast %793 : vector<2x8xf32> to vector<2x8x1xf32>
    %cst_189 = arith.constant 3.200000e+01 : f32
    %795 = vector.broadcast %cst_189 : f32 to vector<2x8x1xf32>
    %796 = arith.divf %794, %795 : vector<2x8x1xf32>
    %797 = vector.broadcast %796 : vector<2x8x1xf32> to vector<2x8x32xf32>
    %798 = arith.subf %788, %797 : vector<2x8x32xf32>
    %799 = arith.mulf %798, %798 : vector<2x8x32xf32>
    %cst_190 = arith.constant dense<0.000000e+00> : vector<2x8xf32>
    %800 = vector.multi_reduction <add>, %799, %cst_190 [2] : vector<2x8x32xf32> to vector<2x8xf32>
    %801 = vector.shape_cast %800 : vector<2x8xf32> to vector<2x8x1xf32>
    %cst_191 = arith.constant 3.200000e+01 : f32
    %802 = vector.broadcast %cst_191 : f32 to vector<2x8x1xf32>
    %803 = arith.divf %801, %802 : vector<2x8x1xf32>
    %804 = vector.broadcast %796 : vector<2x8x1xf32> to vector<2x8x32xf32>
    %805 = arith.subf %788, %804 : vector<2x8x32xf32>
    %cst_192 = arith.constant 9.99999996E-13 : f32
    %806 = vector.broadcast %cst_192 : f32 to vector<2x8x1xf32>
    %807 = arith.addf %803, %806 : vector<2x8x1xf32>
    %808 = math.rsqrt %807 : vector<2x8x1xf32>
    %809 = vector.broadcast %808 : vector<2x8x1xf32> to vector<2x8x32xf32>
    %810 = arith.mulf %805, %809 : vector<2x8x32xf32>
    %811 = vector.shape_cast %790 : vector<32xf32> to vector<1x1x32xf32>
    %812 = vector.broadcast %811 : vector<1x1x32xf32> to vector<2x8x32xf32>
    %813 = arith.mulf %810, %812 : vector<2x8x32xf32>
    %814 = vector.shape_cast %792 : vector<32xf32> to vector<1x1x32xf32>
    %815 = vector.broadcast %814 : vector<1x1x32xf32> to vector<2x8x32xf32>
    %816 = arith.addf %813, %815 : vector<2x8x32xf32>
    %817 = vector.extract_strided_slice %816 {offsets = [0, 0, 0], sizes = [2, 1, 32], strides = [1, 1, 1]} : vector<2x8x32xf32> to vector<2x1x32xf32>
    %818 = vector.shape_cast %817 : vector<2x1x32xf32> to vector<2x32xf32>
    %819 = tpu.concatenate %212, %414, %616, %818 in 1 : vector<2x32xf32>, vector<2x32xf32>, vector<2x32xf32>, vector<2x32xf32> -> vector<2x128xf32>
    %820 = arith.truncf %819 : vector<2x128xf32> to vector<2x128xbf16>
    %c0_193 = arith.constant 0 : index
    %c0_194 = arith.constant 0 : index
    %821 = vector.load %arg7[%c0_193, %c0_194] : memref<128x32xbf16, #tpu.memory_space<vmem>>, vector<128x32xbf16>
    %cst_195 = arith.constant dense<0.000000e+00> : vector<2x32xf32>
    %822 = tpu.matmul %820, %821, %cst_195 {dimension_numbers = #tpu.dot_dimension_numbers<[1], [0], [0], [1], [0, 0, 1, 1], [], []>} : vector<2x128xbf16>, vector<128x32xbf16>, vector<2x32xf32> -> vector<2x32xf32>
    %823 = vector.extract_strided_slice %3 {offsets = [0, 0], sizes = [1, 32], strides = [1, 1]} : vector<10x128xf32> to vector<1x32xf32>
    %824 = vector.shape_cast %823 : vector<1x32xf32> to vector<32xf32>
    %825 = vector.shape_cast %824 : vector<32xf32> to vector<1x32xf32>
    %826 = vector.broadcast %825 : vector<1x32xf32> to vector<2x32xf32>
    %827 = arith.addf %822, %826 : vector<2x32xf32>
    %828 = vector.extract_strided_slice %3 {offsets = [1, 0], sizes = [1, 32], strides = [1, 1]} : vector<10x128xf32> to vector<1x32xf32>
    %829 = vector.shape_cast %828 : vector<1x32xf32> to vector<32xf32>
    %830 = vector.extract_strided_slice %3 {offsets = [2, 0], sizes = [1, 32], strides = [1, 1]} : vector<10x128xf32> to vector<1x32xf32>
    %831 = vector.shape_cast %830 : vector<1x32xf32> to vector<32xf32>
    %cst_196 = arith.constant dense<0.000000e+00> : vector<2xf32>
    %832 = vector.multi_reduction <add>, %827, %cst_196 [1] : vector<2x32xf32> to vector<2xf32>
    %833 = vector.shape_cast %832 : vector<2xf32> to vector<2x1xf32>
    %cst_197 = arith.constant 3.200000e+01 : f32
    %834 = vector.broadcast %cst_197 : f32 to vector<2x1xf32>
    %835 = arith.divf %833, %834 : vector<2x1xf32>
    %836 = vector.broadcast %835 : vector<2x1xf32> to vector<2x32xf32>
    %837 = arith.subf %827, %836 : vector<2x32xf32>
    %838 = arith.mulf %837, %837 : vector<2x32xf32>
    %cst_198 = arith.constant dense<0.000000e+00> : vector<2xf32>
    %839 = vector.multi_reduction <add>, %838, %cst_198 [1] : vector<2x32xf32> to vector<2xf32>
    %840 = vector.shape_cast %839 : vector<2xf32> to vector<2x1xf32>
    %cst_199 = arith.constant 3.200000e+01 : f32
    %841 = vector.broadcast %cst_199 : f32 to vector<2x1xf32>
    %842 = arith.divf %840, %841 : vector<2x1xf32>
    %843 = vector.broadcast %835 : vector<2x1xf32> to vector<2x32xf32>
    %844 = arith.subf %827, %843 : vector<2x32xf32>
    %cst_200 = arith.constant 9.99999974E-6 : f32
    %845 = vector.broadcast %cst_200 : f32 to vector<2x1xf32>
    %846 = arith.addf %842, %845 : vector<2x1xf32>
    %847 = math.rsqrt %846 : vector<2x1xf32>
    %848 = vector.broadcast %847 : vector<2x1xf32> to vector<2x32xf32>
    %849 = arith.mulf %844, %848 : vector<2x32xf32>
    %850 = vector.shape_cast %829 : vector<32xf32> to vector<1x32xf32>
    %851 = vector.broadcast %850 : vector<1x32xf32> to vector<2x32xf32>
    %852 = arith.mulf %849, %851 : vector<2x32xf32>
    %853 = vector.shape_cast %831 : vector<32xf32> to vector<1x32xf32>
    %854 = vector.broadcast %853 : vector<1x32xf32> to vector<2x32xf32>
    %855 = arith.addf %852, %854 : vector<2x32xf32>
    %cst_201 = arith.constant 2.000000e+01 : f32
    %856 = vector.broadcast %cst_201 : f32 to vector<2x32xf32>
    %857 = arith.cmpf ogt, %855, %856 : vector<2x32xf32>
    %cst_202 = arith.constant 2.000000e+01 : f32
    %858 = vector.broadcast %cst_202 : f32 to vector<2x32xf32>
    %859 = arith.minimumf %855, %858 : vector<2x32xf32>
    %860 = math.exp %859 : vector<2x32xf32>
    %861 = math.log1p %860 : vector<2x32xf32>
    %862 = arith.select %857, %855, %861 : vector<2x32xi1>, vector<2x32xf32>
    %863 = math.tanh %862 : vector<2x32xf32>
    %864 = arith.mulf %855, %863 : vector<2x32xf32>
    %865 = arith.truncf %864 : vector<2x32xf32> to vector<2x32xbf16>
    %c0_203 = arith.constant 0 : index
    %c0_204 = arith.constant 0 : index
    %866 = vector.load %arg8[%c0_203, %c0_204] : memref<32x16xbf16, #tpu.memory_space<vmem>>, vector<32x16xbf16>
    %cst_205 = arith.constant dense<0.000000e+00> : vector<2x16xf32>
    %867 = tpu.matmul %865, %866, %cst_205 {dimension_numbers = #tpu.dot_dimension_numbers<[1], [0], [0], [1], [0, 0, 1, 1], [], []>} : vector<2x32xbf16>, vector<32x16xbf16>, vector<2x16xf32> -> vector<2x16xf32>
    %868 = vector.extract_strided_slice %3 {offsets = [3, 0], sizes = [1, 16], strides = [1, 1]} : vector<10x128xf32> to vector<1x16xf32>
    %869 = vector.shape_cast %868 : vector<1x16xf32> to vector<16xf32>
    %870 = vector.shape_cast %869 : vector<16xf32> to vector<1x16xf32>
    %871 = vector.broadcast %870 : vector<1x16xf32> to vector<2x16xf32>
    %872 = arith.addf %867, %871 : vector<2x16xf32>
    %873 = vector.extract_strided_slice %3 {offsets = [4, 0], sizes = [1, 16], strides = [1, 1]} : vector<10x128xf32> to vector<1x16xf32>
    %874 = vector.shape_cast %873 : vector<1x16xf32> to vector<16xf32>
    %875 = vector.extract_strided_slice %3 {offsets = [5, 0], sizes = [1, 16], strides = [1, 1]} : vector<10x128xf32> to vector<1x16xf32>
    %876 = vector.shape_cast %875 : vector<1x16xf32> to vector<16xf32>
    %cst_206 = arith.constant dense<0.000000e+00> : vector<2xf32>
    %877 = vector.multi_reduction <add>, %872, %cst_206 [1] : vector<2x16xf32> to vector<2xf32>
    %878 = vector.shape_cast %877 : vector<2xf32> to vector<2x1xf32>
    %cst_207 = arith.constant 1.600000e+01 : f32
    %879 = vector.broadcast %cst_207 : f32 to vector<2x1xf32>
    %880 = arith.divf %878, %879 : vector<2x1xf32>
    %881 = vector.broadcast %880 : vector<2x1xf32> to vector<2x16xf32>
    %882 = arith.subf %872, %881 : vector<2x16xf32>
    %883 = arith.mulf %882, %882 : vector<2x16xf32>
    %cst_208 = arith.constant dense<0.000000e+00> : vector<2xf32>
    %884 = vector.multi_reduction <add>, %883, %cst_208 [1] : vector<2x16xf32> to vector<2xf32>
    %885 = vector.shape_cast %884 : vector<2xf32> to vector<2x1xf32>
    %cst_209 = arith.constant 1.600000e+01 : f32
    %886 = vector.broadcast %cst_209 : f32 to vector<2x1xf32>
    %887 = arith.divf %885, %886 : vector<2x1xf32>
    %888 = vector.broadcast %880 : vector<2x1xf32> to vector<2x16xf32>
    %889 = arith.subf %872, %888 : vector<2x16xf32>
    %cst_210 = arith.constant 9.99999974E-6 : f32
    %890 = vector.broadcast %cst_210 : f32 to vector<2x1xf32>
    %891 = arith.addf %887, %890 : vector<2x1xf32>
    %892 = math.rsqrt %891 : vector<2x1xf32>
    %893 = vector.broadcast %892 : vector<2x1xf32> to vector<2x16xf32>
    %894 = arith.mulf %889, %893 : vector<2x16xf32>
    %895 = vector.shape_cast %874 : vector<16xf32> to vector<1x16xf32>
    %896 = vector.broadcast %895 : vector<1x16xf32> to vector<2x16xf32>
    %897 = arith.mulf %894, %896 : vector<2x16xf32>
    %898 = vector.shape_cast %876 : vector<16xf32> to vector<1x16xf32>
    %899 = vector.broadcast %898 : vector<1x16xf32> to vector<2x16xf32>
    %900 = arith.addf %897, %899 : vector<2x16xf32>
    %cst_211 = arith.constant 2.000000e+01 : f32
    %901 = vector.broadcast %cst_211 : f32 to vector<2x16xf32>
    %902 = arith.cmpf ogt, %900, %901 : vector<2x16xf32>
    %cst_212 = arith.constant 2.000000e+01 : f32
    %903 = vector.broadcast %cst_212 : f32 to vector<2x16xf32>
    %904 = arith.minimumf %900, %903 : vector<2x16xf32>
    %905 = math.exp %904 : vector<2x16xf32>
    %906 = math.log1p %905 : vector<2x16xf32>
    %907 = arith.select %902, %900, %906 : vector<2x16xi1>, vector<2x16xf32>
    %908 = math.tanh %907 : vector<2x16xf32>
    %909 = arith.mulf %900, %908 : vector<2x16xf32>
    %910 = vector.extract_strided_slice %3 {offsets = [6, 0], sizes = [1, 16], strides = [1, 1]} : vector<10x128xf32> to vector<1x16xf32>
    %911 = vector.shape_cast %910 : vector<1x16xf32> to vector<16xf32>
    %912 = vector.shape_cast %911 : vector<16xf32> to vector<1x16xf32>
    %913 = vector.broadcast %912 : vector<1x16xf32> to vector<2x16xf32>
    %914 = arith.mulf %909, %913 : vector<2x16xf32>
    %cst_213 = arith.constant dense<0.000000e+00> : vector<2xf32>
    %915 = vector.multi_reduction <add>, %914, %cst_213 [1] : vector<2x16xf32> to vector<2xf32>
    %916 = vector.shape_cast %915 : vector<2xf32> to vector<2x1xf32>
    %917 = vector.extract_strided_slice %3 {offsets = [7, 0], sizes = [1, 1], strides = [1, 1]} : vector<10x128xf32> to vector<1x1xf32>
    %918 = vector.shape_cast %917 : vector<1x1xf32> to vector<1xf32>
    %919 = vector.shape_cast %918 : vector<1xf32> to vector<1x1xf32>
    %920 = vector.broadcast %919 : vector<1x1xf32> to vector<2x1xf32>
    %921 = arith.addf %916, %920 : vector<2x1xf32>
    %922 = vector.extract_strided_slice %3 {offsets = [8, 0], sizes = [1, 1], strides = [1, 1]} : vector<10x128xf32> to vector<1x1xf32>
    %923 = vector.shape_cast %922 : vector<1x1xf32> to vector<1xf32>
    %924 = vector.extract_strided_slice %3 {offsets = [9, 0], sizes = [1, 1], strides = [1, 1]} : vector<10x128xf32> to vector<1x1xf32>
    %925 = vector.shape_cast %924 : vector<1x1xf32> to vector<1xf32>
    %cst_214 = arith.constant dense<0.000000e+00> : vector<2xf32>
    %926 = vector.multi_reduction <add>, %921, %cst_214 [1] : vector<2x1xf32> to vector<2xf32>
    %927 = vector.shape_cast %926 : vector<2xf32> to vector<2x1xf32>
    %cst_215 = arith.constant 1.000000e+00 : f32
    %928 = vector.broadcast %cst_215 : f32 to vector<2x1xf32>
    %929 = arith.divf %927, %928 : vector<2x1xf32>
    %930 = arith.subf %921, %929 : vector<2x1xf32>
    %931 = arith.mulf %930, %930 : vector<2x1xf32>
    %cst_216 = arith.constant dense<0.000000e+00> : vector<2xf32>
    %932 = vector.multi_reduction <add>, %931, %cst_216 [1] : vector<2x1xf32> to vector<2xf32>
    %933 = vector.shape_cast %932 : vector<2xf32> to vector<2x1xf32>
    %cst_217 = arith.constant 1.000000e+00 : f32
    %934 = vector.broadcast %cst_217 : f32 to vector<2x1xf32>
    %935 = arith.divf %933, %934 : vector<2x1xf32>
    %936 = arith.subf %921, %929 : vector<2x1xf32>
    %cst_218 = arith.constant 9.99999974E-6 : f32
    %937 = vector.broadcast %cst_218 : f32 to vector<2x1xf32>
    %938 = arith.addf %935, %937 : vector<2x1xf32>
    %939 = math.rsqrt %938 : vector<2x1xf32>
    %940 = arith.mulf %936, %939 : vector<2x1xf32>
    %941 = vector.shape_cast %923 : vector<1xf32> to vector<1x1xf32>
    %942 = vector.broadcast %941 : vector<1x1xf32> to vector<2x1xf32>
    %943 = arith.mulf %940, %942 : vector<2x1xf32>
    %944 = vector.shape_cast %925 : vector<1xf32> to vector<1x1xf32>
    %945 = vector.broadcast %944 : vector<1x1xf32> to vector<2x1xf32>
    %946 = arith.addf %943, %945 : vector<2x1xf32>
    %c0_219 = arith.constant 0 : index
    %c0_220 = arith.constant 0 : index
    %947 = vector.load %arg10[%c0_219, %c0_220] : memref<2x1xf32, #tpu.memory_space<vmem>>, vector<2x1xf32>
    tpu.vector_store %arg10[%c0_219, %c0_220], %946 {strides = array<i32>} : memref<2x1xf32, #tpu.memory_space<vmem>>, vector<2x1xf32>,
    return
  }
}

</mosaic_0001>

<bundles_post_ra>
// kernel: tpu_custom_call.1
= control target key start
LH: loop header
LB: loop body
LE: loop exit
PB: predicated region body
PF: predicated region fallthrough
CT: control target
= control target key end

     0   :  { %15 = vsyncpa [#allocation3], 0  ;;  %s7056_s13 = smov [#allocation2]   ;;  %s8341_s0 = inlined_call_operand.hbm [shape: f32[2,8,32], index: 0, kind: input, shape index: {}]   ;;  %s8342_s1 = inlined_call_operand.vmem [shape: f32[2,8], index: 1, kind: input, shape index: {}]   ;;  %s8343_s2 = inlined_call_operand.vmem [shape: bf16[4,32,96], index: 2, kind: input, shape index: {}]   ;;  %s8344_s3 = inlined_call_operand.vmem [shape: bf16[4,32,32], index: 3, kind: input, shape index: {}]   ;;  %s8345_s4 = inlined_call_operand.vmem [shape: bf16[4,32,64], index: 4, kind: input, shape index: {}]   ;;  %s8346_s5 = inlined_call_operand.vmem [shape: bf16[4,64,32], index: 5, kind: input, shape index: {}]   ;;  %s8347_s6 = inlined_call_operand.vmem [shape: f32[4,8,128], index: 6, kind: input, shape index: {}]   ;;  %s8348_s7 = inlined_call_operand.vmem [shape: bf16[128,32], index: 7, kind: input, shape index: {}]   ;;  %s8349_s8 = inlined_call_operand.vmem [shape: bf16[32,16], index: 8, kind: input, shape index: {}]   ;;  %s8350_s9 = inlined_call_operand.vmem [shape: f32[10,128], index: 9, kind: input, shape index: {}]   ;;  %s8351_s10 = inlined_call_operand.vmem [shape: f32[2,1], index: 10, kind: output, shape index: {}]  }
   0x1   :  { %s21_s14 = sshll.u32 %s7056_s13, 4  ;;  %s7032_s17 = scalar_lea.hbm %s8341_s0, 256  ;;  %s22_s14 = int_to_ptr.vmem [resolvable:$true] %s21_s14 }
   0x2   :  { %p7033_p0 = scmp.ne.s32.totalorder %s8341_s0, %s7032_s17  ;;  %p7036_p1 = scmp.lt.u32.totalorder %s7032_s17, %s8341_s0 }
   0x4   :  { %p7038_p2 = pnand %p7036_p1, %p7033_p0 }
   0x6   :  { %7041 = shalt.err (!%p7038_p2)
}
   0x7   :  { %s7042_s22 = scalar_lea.vmem %s22_s14, 256  ;;  %p7047_p4 = scmp.lt.s32.totalorder %s22_s14, %s22_s14 }
   0x8   :  { %p7043_p3 = scmp.ne.s32.totalorder %s22_s14, %s7042_s22  ;;  %p7048_p5 = scmp.lt.s32.totalorder %s7042_s22, %s7042_s22 }
   0xa   :  { %p7049_p6 = por %p7048_p5, %p7047_p4 }
   0xc   :  { %p7050_p7 = pnand %p7049_p6, %p7043_p3 }
   0xe   :  { %7053 = shalt.err (!%p7050_p7)
}
   0xf   :  { %s7057_s23 = smov 128   ;;  %s7058_s24 = smov 8  }
  0x10   :  { %27 = dma.hbm_to_vmem [thread:$0]  %s8341_s0, 256, %s22_s14, [#allocation3], %s7057_s23, %s7057_s23, %s7058_s24  }
  0x11   :  { %7054 = dma.done.wait [#allocation3], 256  }
  0x12   :  { %7055 = vsyncadd [#allocation3], 4294967040  ;;  %v7059_v0 = vmov 0.0   ;;  %vm7060_vm0 = vmmov 0   ;;  %v6786_v1 = vld [vmem:[%s8343_s2] sm:$0xff]   ;;  %v6787_v2 = vld [vmem:[%s8343_s2 + $0x8] sm:$0xff]   ;;  %v65_v6 = vlaneseq }
  0x13   :  { %6150 = vmatprep.subr.bf16.mxu0 %v7059_v0  ;;  %6154 = vmatprep.mubr.msk.bf16.mxu0 %vm7060_vm0, %v7059_v0  ;;  %v7156_v3 = vld [vmem:[#allocation2] sm:$0xff]  ;;  %v7158_v4 = vld [vmem:[#allocation2 + $0x8] sm:$0xff]  ;;  %vm111_vm1 = vcmask 261120   ;;  %s7061_s12 = smov 96   ;;  %vm161_vm2 = vcmask 64512   ;;  %s7064_s15 = smov 88  }
  0x14   :  { %6158 = vmatprep.subr.bf16.mxu1 %v7059_v0  ;;  %6160 = vmatprep.mubr.msk.bf16.mxu1 %vm7060_vm0, %v7059_v0  ;;  %v5938_v5 = vpack.c.bf16 %v7158_v4, %v7156_v3  ;;  %v7167_v7 = vshrl.u32 %v65_v6, 7  ;;  %v7175_v9 = vld [vmem:[%s8347_s6] sm:$0xff]  ;;  %v7062_v23 = vmov 1966171168   ;;  %vm300_vm3 = vcmask 1043456   ;;  %s7065_s16 = smov 120  }
  0x15   :  { %6151 = vmatpush3.bf16.msra.mxu0 %v6786_v1  ;;  %v63_v24 = vunpack.c.l.s4 %v7062_v23  ;;  %v52_v25 = vld [vmem:[%s8342_s1] sm:$0x3]  ;;  %s7063_s1 = smov 64   ;;  %s7066_s17 = smov 56   ;;  %vm1090_vm4 = vcmask 130048   ;;  %vm1093_vm5 = vcmask 195584  }
  0x16   :  { %6152 = vmatprep.subr.bf16.mxu0 %v7059_v0  ;;  %v7170_v8 = vsub.s32 0, %v7167_v7  ;;  %v59_v26 = vsub.f32 1.0, %v52_v25  ;;  %s7067_s18 = smov 80   ;;  %s7068_s19 = smov 112   ;;  %vm1340_vm6 = vcmask 523264   ;;  %vm5412_vm7 = vcmask 1041409  }
  0x17   :  { %v64_v27 = vunpack.c.0.s8 %v63_v24  ;;  %s7069_s20 = smov 48   ;;  %s7070_s21 = smov 72   ;;  %vm5438_vm8 = vcmask 785408   ;;  %vm5549_vm9 = vcmask 254976   ;;  %vm5653_vm12 = vcmask 123904  }
  0x18   :  { %v93_v10 = vrot.slane %v7175_v9, %v7170_v8  ;;  %v60_v28 = vmul.f32 -1e+09, %v59_v26  ;;  %s7071_s22 = smov 104   ;;  %s7072_s23 = smov 40   ;;  %vm5724_vm15 = vcmask 1024  }
  0x19   :  { %6153 = vmatpush3.bf16.msra.mxu0 %v6787_v2  ;;  %v67_v29 = vsub.s32 %v64_v27, %v7167_v7  ;;  %s7073_s25 = smov 16   ;;  %s7074_s29 = smov 24  }
  0x1a   :  { %6164 = vmatprep.subr.bf16.mxu0 %v7059_v0 }
  0x1b   :  { %v68_v30 = vrot.slane %v60_v28, %v67_v29 }
  0x1c   :  { %6155 = vmatmul.mubr.msk.bf16.vlgmr.msra.gmra.mrb[0].mxu0 %vm111_vm1, %v5938_v5 }
  0x1d   :  { %6166 = vmatprep.mubr.msk.bf16.mxu0 %vm7060_vm0, %v7059_v0  ;;  %v69_v31 = vcombine.high %v68_v30, %v68_v30  ;;  %v76_v32 = vrot.slane %v68_v30, %v67_v29 }
  0x1f   :  { %v83_v33 = vrot.slane %v69_v31, %v67_v29  ;;  %v7204_v34 = vrot.slane %v76_v32, %v7170_v8 }
  0x21   :  { %v7207_v39 = vrot.slane %v83_v33, %v7170_v8 }
  0xef   :  { %v149_v11 = vpop.f32.mrb[0].mxu0 }
  0xf0   :  { %v150_v12 = vadd.f32 %v149_v11, %v93_v10  ;;  %v6156_v13 = vpop.f32.mrb[1].mxu0 }
  0xf1   :  { %v152_v14 = vpop.f32.mrb[2].mxu0 }
  0xf2   :  { %v7179_v15 = vpack.c.bf16 %v150_v12, %v150_v12  ;;  %v153_v16 = vadd.f32 %v152_v14, %v93_v10  ;;  %v6157_v17 = vpop.f32.mrb[3].mxu0 }
  0xf4   :  { %159 = vrot.lane.b32.xlu0 %v7179_v15, %s7061_s12  ;;  %v7183_v18 = vpack.c.bf16 %v153_v16, %v153_v16 }
  0xf8   :  { %209 = vrot.lane.b32.xlu0 %v7183_v18, %s7061_s12 }
 0x166   :  { %v160_v19 = vpop.permute.xlu0 %159 }
 0x167   :  { %v166_v20 = vsel %vm161_vm2, %v160_v19, 0 }
 0x168   :  { %6159 = vmatpush3.bf16.xpose.msra.mxu1 %v166_v20 }
 0x169   :  { %6170 = vmatprep.subr.bf16.mxu1 %v7059_v0 }
 0x16a   :  { %v210_v21 = vpop.permute.xlu0 %209 }
 0x16b   :  { %v215_v22 = vsel %vm161_vm2, %v210_v21, 0 }
 0x16c   :  { %6165 = vmatpush3.bf16.xpose.msra.mxu0 %v215_v22 }
 0x16d   :  { %6176 = vmatprep.subr.bf16.mxu0 %v7059_v0 }
 0x16f   :  { %6161 = vmatmul.mubr.msk.bf16.vlgmr.msra.gmra.mrb[0].mxu1 %vm161_vm2, %v7179_v15 }
 0x170   :  { %6172 = vmatprep.mubr.msk.bf16.mxu1 %vm7060_vm0, %v7059_v0 }
 0x173   :  { %6167 = vmatmul.mubr.msk.bf16.vlgmr.msra.gmra.mrb[4].mxu0 %vm161_vm2, %v7183_v18 }
 0x174   :  { %6178 = vmatprep.mubr.msk.bf16.mxu0 %vm7060_vm0, %v7059_v0 }
 0x242   :  { %v202_v35 = vpop.f32.mrb[0].mxu1 }
 0x243   :  { %v257_v36 = vmul.f32 0.35355338, %v202_v35  ;;  %v6162_v37 = vpop.f32.mrb[1].mxu1 }
 0x244   :  { %v205_v38 = vpop.f32.mrb[2].mxu1 }
 0x245   :  { %v6163_v40 = vpop.f32.mrb[3].mxu1  ;;  %v269_v41 = vadd.f32 %v7204_v34, %v257_v36 }
 0x246   :  { %v251_v42 = vpop.f32.mrb[4].mxu0 }
 0x247   :  { %v258_v43 = vmul.f32 0.35355338, %v251_v42  ;;  %v6168_v44 = vpop.f32.mrb[5].mxu0  ;;  %v271_v45 = vsel %vm161_vm2, %v269_v41, -inf }
 0x248   :  { %272 = vmax.xlane.f32.xlu1 %v271_v45  ;;  %v254_v46 = vpop.f32.mrb[6].mxu0 }
 0x249   :  { %v6169_v47 = vpop.f32.mrb[7].mxu0  ;;  %v270_v48 = vadd.f32 %v7207_v39, %v258_v43 }
 0x24b   :  { %v274_v49 = vsel %vm161_vm2, %v270_v48, -inf }
 0x24c   :  { %275 = vmax.xlane.f32.xlu1 %v274_v49 }
 0x25d   :  { %295 = vrot.lane.b32.xlu1 %v7179_v15, %s7063_s1 }
 0x261   :  { %344 = vrot.lane.b32.xlu1 %v7183_v18, %s7063_s1 }
 0x265   :  { %394 = vrot.lane.b32.xlu1 %v7179_v15, %s7064_s15 }
 0x2d5   :  { %v273_v50 = vpop.xlane.xlu1 %272 }
 0x2d6   :  { %v277_v51 = vsub.f32 %v269_v41, %v273_v50 }
 0x2d8   :  { %v279_v52 = vmul.f32 1.442695, %v277_v51 }
 0x2d9   :  { %v276_v53 = vpop.xlane.xlu1 %275 }
 0x2da   :  { %6836 = vpow2.f32 %v279_v52  ;;  %v278_v54 = vsub.f32 %v270_v48, %v276_v53 }
 0x2dc   :  { %v281_v55 = vmul.f32 1.442695, %v278_v54 }
 0x2dd   :  { %v296_v56 = vpop.permute.xlu1 %295 }
 0x2de   :  { %6838 = vpow2.f32 %v281_v55  ;;  %v302_v57 = vsel %vm300_vm3, %v296_v56, 0 }
 0x2df   :  { %6171 = vmatpush3.bf16.msra.mxu1 %v302_v57 }
 0x2e0   :  { %6182 = vmatprep.subr.bf16.mxu1 %v7059_v0 }
 0x2e1   :  { %v345_v58 = vpop.permute.xlu1 %344 }
 0x2e2   :  { %v350_v59 = vsel %vm300_vm3, %v345_v58, 0 }
 0x2e3   :  { %6177 = vmatpush3.bf16.msra.mxu0 %v350_v59 }
 0x2e4   :  { %v6837_v60 = vpop.eup %6836  ;;  %6188 = vmatprep.subr.bf16.mxu0 %v7059_v0 }
 0x2e5   :  { %v283_v61 = vsel %vm161_vm2, %v6837_v60, 0.0  ;;  %v395_v1 = vpop.permute.xlu1 %394 }
 0x2e6   :  { %284 = vadd.xlane.f32.xlu0 %v283_v61  ;;  %v400_v13 = vsel %vm161_vm2, %v395_v1, 0 }
 0x2e8   :  { %v6839_v62 = vpop.eup %6838 }
 0x2e9   :  { %v286_v63 = vsel %vm161_vm2, %v6839_v62, 0.0 }
 0x2ea   :  { %287 = vadd.xlane.f32.xlu1 %v286_v63 }
 0x2fb   :  { %444 = vrot.lane.b32.xlu1 %v7183_v18, %s7064_s15 }
 0x2fc   :  { %392 = vrot.lane.b32.xlu0 %v7179_v15, %s7065_s16 }
 0x2ff   :  { %442 = vrot.lane.b32.xlu1 %v7183_v18, %s7065_s16 }
 0x373   :  { %v285_v2 = vpop.xlane.xlu0 %284 }
 0x374   :  { %6840 = vrcp.f32 %v285_v2 }
 0x377   :  { %v288_v5 = vpop.xlane.xlu1 %287  ;;  %v393_v20 = vpop.permute.xlu0 %392 }
 0x378   :  { %6842 = vrcp.f32 %v288_v5 }
 0x37b   :  { %v445_v16 = vpop.permute.xlu1 %444 }
 0x37c   :  { %v450_v19 = vsel %vm161_vm2, %v445_v16, 0 }
 0x37e   :  { %v6841_v6 = vpop.eup %6840 }
 0x37f   :  { %v291_v10 = vmul.f32 %v6841_v6, %v6837_v60  ;;  %v443_v21 = vpop.permute.xlu1 %442 }
 0x381   :  { %v293_v11 = vpack.c.bf16 %v291_v10, %v291_v10 }
 0x382   :  { %v6843_v12 = vpop.eup %6842 }
 0x383   :  { %6173 = vmatmul.mubr.msk.bf16.vlgmr.msra.gmra.mrb[4].mxu1 %vm161_vm2, %v293_v11  ;;  %v292_v14 = vmul.f32 %v6843_v12, %v6839_v62 }
 0x384   :  { %6183 = vmatpush3.bf16.xpose.msra.mxu1 %v400_v13  ;;  %6184 = vmatprep.mubr.msk.bf16.mxu1 %vm7060_vm0, %v7059_v0 }
 0x385   :  { %v294_v17 = vpack.c.bf16 %v292_v14, %v292_v14  ;;  %6194 = vmatprep.subr.bf16.mxu1 %v7059_v0 }
 0x387   :  { %6179 = vmatmul.mubr.msk.bf16.vlgmr.msra.gmra.mrb[8].mxu0 %vm161_vm2, %v294_v17 }
 0x388   :  { %6189 = vmatpush3.bf16.xpose.msra.mxu0 %v450_v19  ;;  %6190 = vmatprep.mubr.msk.bf16.mxu0 %vm7060_vm0, %v7059_v0 }
 0x389   :  { %6200 = vmatprep.subr.bf16.mxu0 %v7059_v0 }
 0x38b   :  { %6185 = vmatmul.mubr.msk.bf16.vlgmr.msra.gmra.mrb[8].mxu1 %vm161_vm2, %v393_v20 }
 0x38c   :  { %6196 = vmatprep.mubr.msk.bf16.mxu1 %vm7060_vm0, %v7059_v0 }
 0x38f   :  { %6191 = vmatmul.mubr.msk.bf16.vlgmr.msra.gmra.mrb[12].mxu0 %vm161_vm2, %v443_v21 }
 0x390   :  { %6202 = vmatprep.mubr.msk.bf16.mxu0 %vm7060_vm0, %v7059_v0 }
 0x456   :  { %v7247_v22 = vpop.f32.mrb[4].mxu1 }
 0x457   :  { %v6174_v23 = vpop.f32.mrb[5].mxu1 }
 0x458   :  { %v341_v24 = vpop.f32.mrb[6].mxu1 }
 0x459   :  { %v6175_v25 = vpop.f32.mrb[7].mxu1 }
 0x45a   :  { %v7249_v26 = vpop.f32.mrb[8].mxu0 }
 0x45b   :  { %v6180_v27 = vpop.f32.mrb[9].mxu0 }
 0x45c   :  { %v389_v28 = vpop.f32.mrb[10].mxu0 }
 0x45d   :  { %v6181_v29 = vpop.f32.mrb[11].mxu0 }
 0x45e   :  { %v436_v30 = vpop.f32.mrb[8].mxu1 }
 0x45f   :  { %v492_v31 = vmul.f32 0.35355338, %v436_v30  ;;  %v6186_v32 = vpop.f32.mrb[9].mxu1 }
 0x460   :  { %v439_v33 = vpop.f32.mrb[10].mxu1 }
 0x461   :  { %v6187_v35 = vpop.f32.mrb[11].mxu1  ;;  %v494_v36 = vadd.f32 %v492_v31, %v7204_v34 }
 0x462   :  { %v486_v37 = vpop.f32.mrb[12].mxu0 }
 0x463   :  { %v493_v38 = vmul.f32 0.35355338, %v486_v37  ;;  %v6192_v40 = vpop.f32.mrb[13].mxu0  ;;  %v496_v41 = vsel %vm161_vm2, %v494_v36, -inf }
 0x464   :  { %497 = vmax.xlane.f32.xlu1 %v496_v41  ;;  %v489_v42 = vpop.f32.mrb[14].mxu0 }
 0x465   :  { %v6193_v43 = vpop.f32.mrb[15].mxu0  ;;  %v495_v44 = vadd.f32 %v493_v38, %v7207_v39 }
 0x467   :  { %v499_v45 = vsel %vm161_vm2, %v495_v44, -inf }
 0x468   :  { %500 = vmax.xlane.f32.xlu0 %v499_v45 }
 0x475   :  { %520 = vrot.lane.b32.xlu1 %v7179_v15, %s7066_s17 }
 0x479   :  { %618 = vrot.lane.b32.xlu1 %v7179_v15, %s7067_s18 }
 0x47e   :  { %568 = vrot.lane.b32.xlu0 %v7183_v18, %s7066_s17 }
 0x482   :  { %616 = vrot.lane.b32.xlu0 %v7179_v15, %s7068_s19 }
 0x4f1   :  { %v498_v46 = vpop.xlane.xlu1 %497 }
 0x4f2   :  { %v502_v47 = vsub.f32 %v494_v36, %v498_v46 }
 0x4f4   :  { %v504_v48 = vmul.f32 1.442695, %v502_v47 }
 0x4f5   :  { %v521_v49 = vpop.permute.xlu1 %520  ;;  %v501_v50 = vpop.xlane.xlu0 %500 }
 0x4f6   :  { %6844 = vpow2.f32 %v504_v48  ;;  %v526_v51 = vsel %vm300_vm3, %v521_v49, 0  ;;  %v503_v52 = vsub.f32 %v495_v44, %v501_v50 }
 0x4f7   :  { %6195 = vmatpush3.bf16.msra.mxu1 %v526_v51 }
 0x4f8   :  { %v506_v53 = vmul.f32 1.442695, %v503_v52  ;;  %6206 = vmatprep.subr.bf16.mxu1 %v7059_v0 }
 0x4f9   :  { %v569_v54 = vpop.permute.xlu0 %568  ;;  %v619_v60 = vpop.permute.xlu1 %618 }
 0x4fa   :  { %6846 = vpow2.f32 %v506_v53  ;;  %v574_v55 = vsel %vm300_vm3, %v569_v54, 0  ;;  %v624_v6 = vsel %vm161_vm2, %v619_v60, 0 }
 0x4fb   :  { %6201 = vmatpush3.bf16.msra.mxu0 %v574_v55 }
 0x4fc   :  { %6212 = vmatprep.subr.bf16.mxu0 %v7059_v0 }
 0x4fd   :  { %v617_v14 = vpop.permute.xlu0 %616 }
 0x500   :  { %v6845_v56 = vpop.eup %6844 }
 0x501   :  { %v508_v57 = vsel %vm161_vm2, %v6845_v56, 0.0 }
 0x502   :  { %509 = vadd.xlane.f32.xlu1 %v508_v57 }
 0x504   :  { %v6847_v58 = vpop.eup %6846 }
 0x505   :  { %v511_v59 = vsel %vm161_vm2, %v6847_v58, 0.0 }
 0x506   :  { %512 = vadd.xlane.f32.xlu1 %v511_v59 }
 0x517   :  { %668 = vrot.lane.b32.xlu1 %v7183_v18, %s7067_s18 }
 0x51b   :  { %666 = vrot.lane.b32.xlu1 %v7183_v18, %s7068_s19 }
 0x58f   :  { %v510_v61 = vpop.xlane.xlu1 %509 }
 0x590   :  { %6848 = vrcp.f32 %v510_v61 }
 0x593   :  { %v513_v62 = vpop.xlane.xlu1 %512 }
 0x594   :  { %6850 = vrcp.f32 %v513_v62 }
 0x597   :  { %v669_v11 = vpop.permute.xlu1 %668 }
 0x598   :  { %v674_v13 = vsel %vm161_vm2, %v669_v11, 0 }
 0x59a   :  { %v6849_v63 = vpop.eup %6848 }
 0x59b   :  { %v516_v1 = vmul.f32 %v6849_v63, %v6845_v56  ;;  %v667_v16 = vpop.permute.xlu1 %666 }
 0x59d   :  { %v518_v2 = vpack.c.bf16 %v516_v1, %v516_v1 }
 0x59e   :  { %v6851_v5 = vpop.eup %6850 }
 0x59f   :  { %6197 = vmatmul.mubr.msk.bf16.vlgmr.msra.gmra.mrb[12].mxu1 %vm161_vm2, %v518_v2  ;;  %v517_v10 = vmul.f32 %v6851_v5, %v6847_v58 }
 0x5a0   :  { %6207 = vmatpush3.bf16.xpose.msra.mxu1 %v624_v6  ;;  %6208 = vmatprep.mubr.msk.bf16.mxu1 %vm7060_vm0, %v7059_v0 }
 0x5a1   :  { %v519_v12 = vpack.c.bf16 %v517_v10, %v517_v10  ;;  %6218 = vmatprep.subr.bf16.mxu1 %v7059_v0 }
 0x5a3   :  { %6203 = vmatmul.mubr.msk.bf16.vlgmr.msra.gmra.mrb[16].mxu0 %vm161_vm2, %v519_v12 }
 0x5a4   :  { %6213 = vmatpush3.bf16.xpose.msra.mxu0 %v674_v13  ;;  %6214 = vmatprep.mubr.msk.bf16.mxu0 %vm7060_vm0, %v7059_v0 }
 0x5a5   :  { %6224 = vmatprep.subr.bf16.mxu0 %v7059_v0 }
 0x5a7   :  { %6209 = vmatmul.mubr.msk.bf16.vlgmr.msra.gmra.mrb[16].mxu1 %vm161_vm2, %v617_v14 }
 0x5a8   :  { %6220 = vmatprep.mubr.msk.bf16.mxu1 %vm7060_vm0, %v7059_v0 }
 0x5ab   :  { %6215 = vmatmul.mubr.msk.bf16.vlgmr.msra.gmra.mrb[20].mxu0 %vm161_vm2, %v667_v16 }
 0x5ac   :  { %6226 = vmatprep.mubr.msk.bf16.mxu0 %vm7060_vm0, %v7059_v0 }
 0x672   :  { %v7289_v17 = vpop.f32.mrb[12].mxu1 }
 0x673   :  { %v6198_v19 = vpop.f32.mrb[13].mxu1 }
 0x674   :  { %v565_v20 = vpop.f32.mrb[14].mxu1 }
 0x675   :  { %v6199_v21 = vpop.f32.mrb[15].mxu1 }
 0x676   :  { %v7291_v23 = vpop.f32.mrb[16].mxu0 }
 0x677   :  { %v6726_v24 = vpack.i.bf16 %v7291_v23, %v7289_v17  ;;  %v6204_v25 = vpop.f32.mrb[17].mxu0 }
 0x678   :  { %v613_v27 = vpop.f32.mrb[18].mxu0 }
 0x679   :  { %v6205_v28 = vpop.f32.mrb[19].mxu0 }
 0x67a   :  { %v660_v29 = vpop.f32.mrb[16].mxu1 }
 0x67b   :  { %v716_v30 = vmul.f32 0.35355338, %v660_v29  ;;  %v6210_v31 = vpop.f32.mrb[17].mxu1 }
 0x67c   :  { %v663_v32 = vpop.f32.mrb[18].mxu1 }
 0x67d   :  { %v6211_v33 = vpop.f32.mrb[19].mxu1  ;;  %v718_v35 = vadd.f32 %v716_v30, %v7204_v34 }
 0x67e   :  { %v710_v36 = vpop.f32.mrb[20].mxu0 }
 0x67f   :  { %v717_v37 = vmul.f32 0.35355338, %v710_v36  ;;  %v6216_v38 = vpop.f32.mrb[21].mxu0  ;;  %v720_v40 = vsel %vm161_vm2, %v718_v35, -inf }
 0x680   :  { %721 = vmax.xlane.f32.xlu0 %v720_v40  ;;  %v713_v41 = vpop.f32.mrb[22].mxu0 }
 0x681   :  { %v6217_v42 = vpop.f32.mrb[23].mxu0  ;;  %v719_v43 = vadd.f32 %v717_v37, %v7207_v39 }
 0x683   :  { %v723_v44 = vsel %vm161_vm2, %v719_v43, -inf }
 0x684   :  { %724 = vmax.xlane.f32.xlu1 %v723_v44 }
 0x695   :  { %744 = vrot.lane.b32.xlu1 %v7179_v15, %s7069_s20 }
 0x699   :  { %842 = vrot.lane.b32.xlu1 %v7179_v15, %s7070_s21 }
 0x69d   :  { %892 = vrot.lane.b32.xlu1 %v7183_v18, %s7070_s21 }
 0x6a1   :  { %890 = vrot.lane.b32.xlu1 %v7183_v18, %s7071_s22 }
 0x70d   :  { %v722_v45 = vpop.xlane.xlu0 %721 }
 0x70e   :  { %v726_v46 = vsub.f32 %v718_v35, %v722_v45 }
 0x710   :  { %v728_v47 = vmul.f32 1.442695, %v726_v46 }
 0x711   :  { %v725_v48 = vpop.xlane.xlu1 %724 }
 0x712   :  { %6852 = vpow2.f32 %v728_v47  ;;  %v727_v49 = vsub.f32 %v719_v43, %v725_v48 }
 0x714   :  { %v730_v50 = vmul.f32 1.442695, %v727_v49 }
 0x715   :  { %v745_v51 = vpop.permute.xlu1 %744 }
 0x716   :  { %6854 = vpow2.f32 %v730_v50  ;;  %v750_v52 = vsel %vm300_vm3, %v745_v51, 0 }
 0x717   :  { %6219 = vmatpush3.bf16.msra.mxu1 %v750_v52 }
 0x718   :  { %6230 = vmatprep.subr.bf16.mxu1 %v7059_v0 }
 0x719   :  { %v843_v62 = vpop.permute.xlu1 %842 }
 0x71a   :  { %v848_v5 = vsel %vm161_vm2, %v843_v62, 0 }
 0x71c   :  { %v6853_v53 = vpop.eup %6852 }
 0x71d   :  { %v732_v54 = vsel %vm161_vm2, %v6853_v53, 0.0  ;;  %v893_v10 = vpop.permute.xlu1 %892 }
 0x71e   :  { %733 = vadd.xlane.f32.xlu0 %v732_v54  ;;  %v898_v12 = vsel %vm161_vm2, %v893_v10, 0 }
 0x720   :  { %v6855_v55 = vpop.eup %6854 }
 0x721   :  { %v735_v56 = vsel %vm161_vm2, %v6855_v55, 0.0  ;;  %v891_v14 = vpop.permute.xlu1 %890 }
 0x722   :  { %736 = vadd.xlane.f32.xlu0 %v735_v56 }
 0x738   :  { %792 = vrot.lane.b32.xlu0 %v7183_v18, %s7069_s20 }
 0x73c   :  { %840 = vrot.lane.b32.xlu0 %v7179_v15, %s7071_s22 }
 0x7ab   :  { %v734_v57 = vpop.xlane.xlu0 %733 }
 0x7ac   :  { %6856 = vrcp.f32 %v734_v57 }
 0x7af   :  { %v737_v58 = vpop.xlane.xlu0 %736 }
 0x7b0   :  { %6858 = vrcp.f32 %v737_v58 }
 0x7b3   :  { %v793_v59 = vpop.permute.xlu0 %792 }
 0x7b4   :  { %v798_v60 = vsel %vm300_vm3, %v793_v59, 0 }
 0x7b5   :  { %6225 = vmatpush3.bf16.msra.mxu0 %v798_v60 }
 0x7b6   :  { %v6857_v61 = vpop.eup %6856  ;;  %6236 = vmatprep.subr.bf16.mxu0 %v7059_v0 }
 0x7b7   :  { %v740_v63 = vmul.f32 %v6857_v61, %v6853_v53  ;;  %v841_v13 = vpop.permute.xlu0 %840 }
 0x7b9   :  { %v742_v1 = vpack.c.bf16 %v740_v63, %v740_v63 }
 0x7ba   :  { %v6859_v2 = vpop.eup %6858 }
 0x7bb   :  { %6221 = vmatmul.mubr.msk.bf16.vlgmr.msra.gmra.mrb[20].mxu1 %vm161_vm2, %v742_v1  ;;  %v741_v6 = vmul.f32 %v6859_v2, %v6855_v55  ;;  %v6788_v1 = vld [vmem:[%s8344_s3] sm:$0xff]   ;;  %v6789_v2 = vld [vmem:[%s8344_s3 + $0x8] sm:$0xff]  }
 0x7bc   :  { %6231 = vmatpush3.bf16.xpose.msra.mxu1 %v848_v5  ;;  %6232 = vmatprep.mubr.msk.bf16.mxu1 %vm7060_vm0, %v7059_v0 }
 0x7bd   :  { %v743_v11 = vpack.c.bf16 %v741_v6, %v741_v6  ;;  %6242 = vmatprep.subr.bf16.mxu1 %v7059_v0 }
 0x7bf   :  { %6227 = vmatmul.mubr.msk.bf16.vlgmr.msra.gmra.mrb[24].mxu0 %vm161_vm2, %v743_v11 }
 0x7c0   :  { %6237 = vmatpush3.bf16.xpose.msra.mxu0 %v898_v12  ;;  %6238 = vmatprep.mubr.msk.bf16.mxu0 %vm7060_vm0, %v7059_v0 }
 0x7c1   :  { %6248 = vmatprep.subr.bf16.mxu0 %v7059_v0 }
 0x7c3   :  { %6233 = vmatmul.mubr.msk.bf16.vlgmr.msra.gmra.mrb[24].mxu1 %vm161_vm2, %v841_v13 }
 0x7c4   :  { %6244 = vmatprep.mubr.msk.bf16.mxu1 %vm7060_vm0, %v7059_v0 }
 0x7c7   :  { %6239 = vmatmul.mubr.msk.bf16.vlgmr.msra.gmra.mrb[28].mxu0 %vm161_vm2, %v891_v14 }
 0x7c8   :  { %6250 = vmatprep.mubr.msk.bf16.mxu0 %vm7060_vm0, %v7059_v0 }
 0x88e   :  { %v786_v16 = vpop.f32.mrb[20].mxu1 }
 0x88f   :  { %v6222_v19 = vpop.f32.mrb[21].mxu1 }
 0x890   :  { %v789_v20 = vpop.f32.mrb[22].mxu1 }
 0x891   :  { %v6223_v21 = vpop.f32.mrb[23].mxu1 }
 0x892   :  { %v834_v25 = vpop.f32.mrb[24].mxu0 }
 0x893   :  { %v6731_v27 = vpack.i.bf16 %v834_v25, %v786_v16  ;;  %v6228_v28 = vpop.f32.mrb[25].mxu0 }
 0x894   :  { %v837_v29 = vpop.f32.mrb[26].mxu0 }
 0x895   :  { %v6229_v30 = vpop.f32.mrb[27].mxu0 }
 0x896   :  { %v884_v31 = vpop.f32.mrb[24].mxu1 }
 0x897   :  { %v940_v32 = vmul.f32 0.35355338, %v884_v31  ;;  %v6234_v33 = vpop.f32.mrb[25].mxu1 }
 0x898   :  { %v887_v35 = vpop.f32.mrb[26].mxu1 }
 0x899   :  { %v6235_v36 = vpop.f32.mrb[27].mxu1  ;;  %v942_v37 = vadd.f32 %v940_v32, %v7204_v34 }
 0x89a   :  { %v934_v38 = vpop.f32.mrb[28].mxu0 }
 0x89b   :  { %v941_v40 = vmul.f32 0.35355338, %v934_v38  ;;  %v6240_v41 = vpop.f32.mrb[29].mxu0  ;;  %v944_v42 = vsel %vm161_vm2, %v942_v37, -inf }
 0x89c   :  { %945 = vmax.xlane.f32.xlu0 %v944_v42  ;;  %v937_v43 = vpop.f32.mrb[30].mxu0 }
 0x89d   :  { %v6241_v44 = vpop.f32.mrb[31].mxu0  ;;  %v943_v45 = vadd.f32 %v941_v40, %v7207_v39 }
 0x89f   :  { %v947_v46 = vsel %vm161_vm2, %v943_v45, -inf }
 0x8a0   :  { %948 = vmax.xlane.f32.xlu1 %v947_v46 }
 0x8b1   :  { %968 = vrot.lane.b32.xlu1 %v7179_v15, %s7072_s23 }
 0x8b5   :  { %6727 = vrot.lane.b32.xlu1 %v6726_v24, %s7058_s24 }
 0x8b9   :  { %6732 = vrot.lane.b32.xlu1 %v6731_v27, %s7073_s25 }
 0x929   :  { %v946_v47 = vpop.xlane.xlu0 %945 }
 0x92a   :  { %v950_v48 = vsub.f32 %v942_v37, %v946_v47 }
 0x92c   :  { %v952_v49 = vmul.f32 1.442695, %v950_v48 }
 0x92d   :  { %v949_v50 = vpop.xlane.xlu1 %948 }
 0x92e   :  { %6860 = vpow2.f32 %v952_v49  ;;  %v951_v51 = vsub.f32 %v943_v45, %v949_v50 }
 0x930   :  { %v954_v52 = vmul.f32 1.442695, %v951_v51 }
 0x931   :  { %v969_v53 = vpop.permute.xlu1 %968 }
 0x932   :  { %6862 = vpow2.f32 %v954_v52  ;;  %v974_v54 = vsel %vm300_vm3, %v969_v53, 0 }
 0x933   :  { %6243 = vmatpush3.bf16.msra.mxu1 %v974_v54 }
 0x934   :  { %6254 = vmatprep.subr.bf16.mxu1 %v7059_v0 }
 0x935   :  { %v6728_v20 = vpop.permute.xlu1 %6727 }
 0x936   :  { %v6730_v25 = vunpack.i.h.bf16 %v6728_v20  ;;  %v6729_v27 = vunpack.i.l.bf16 %v6728_v20 }
 0x938   :  { %v6861_v15 = vpop.eup %6860  ;;  %v1089_v31 = vsel %vm161_vm2, %v7249_v26, %v6730_v25  ;;  %v1088_v32 = vsel %vm161_vm2, %v7247_v22, %v6729_v27  ;;  %v7379_v26 = vsub.s32 1, %v7167_v7  ;;  %v6793_v25 = vld [vmem:[%s8346_s5 + $0x8] sm:$0xff]   ;;  %v6794_v27 = vld [vmem:[%s8346_s5 + $0x10] sm:$0xff]  }
 0x939   :  { %v956_v17 = vsel %vm161_vm2, %v6861_v15, 0.0  ;;  %v6733_v21 = vpop.permute.xlu1 %6732 }
 0x93a   :  { %957 = vadd.xlane.f32.xlu0 %v956_v17  ;;  %v6735_v28 = vunpack.i.h.bf16 %v6733_v21  ;;  %v6734_v29 = vunpack.i.l.bf16 %v6733_v21  ;;  %v1105_v22 = vrot.slane %v7175_v9, %v7379_v26  ;;  %v6792_v21 = vld [vmem:[%s8346_s5] sm:$0xff]  }
 0x93c   :  { %v6863_v23 = vpop.eup %6862  ;;  %v1091_v36 = vsel %vm1090_vm4, %v1088_v32, %v6734_v29  ;;  %v1092_v37 = vsel %vm1090_vm4, %v1089_v31, %v6735_v28  ;;  %v6795_v28 = vld [vmem:[%s8346_s5 + $0x18] sm:$0xff]   ;;  %v7427_v29 = vsub.s32 4, %v7167_v7 }
 0x93d   :  { %v959_v24 = vsel %vm161_vm2, %v6863_v23, 0.0 }
 0x93e   :  { %960 = vadd.xlane.f32.xlu0 %v959_v24 }
 0x954   :  { %1016 = vrot.lane.b32.xlu0 %v7183_v18, %s7072_s23 }
 0x9c7   :  { %v958_v55 = vpop.xlane.xlu0 %957 }
 0x9c8   :  { %6864 = vrcp.f32 %v958_v55 }
 0x9cb   :  { %v961_v56 = vpop.xlane.xlu0 %960 }
 0x9cc   :  { %6866 = vrcp.f32 %v961_v56 }
 0x9cf   :  { %v1017_v57 = vpop.permute.xlu0 %1016 }
 0x9d0   :  { %v1022_v58 = vsel %vm300_vm3, %v1017_v57, 0  ;;  %v6791_v57 = vld [vmem:[%s8345_s4 + $0x8] sm:$0xff]  }
 0x9d1   :  { %6249 = vmatpush3.bf16.msra.mxu0 %v1022_v58 }
 0x9d2   :  { %v6865_v59 = vpop.eup %6864  ;;  %6262 = vmatprep.subr.bf16.mxu0 %v7059_v0 }
 0x9d3   :  { %v964_v60 = vmul.f32 %v6865_v59, %v6861_v15 }
 0x9d5   :  { %v966_v61 = vpack.c.bf16 %v964_v60, %v964_v60 }
 0x9d6   :  { %v6867_v62 = vpop.eup %6866 }
 0x9d7   :  { %6245 = vmatmul.mubr.msk.bf16.vlgmr.msra.gmra.mrb[28].mxu1 %vm161_vm2, %v966_v61  ;;  %v965_v63 = vmul.f32 %v6867_v62, %v6863_v23 }
 0x9d8   :  { %6258 = vmatprep.mubr.msk.bf16.mxu1 %vm7060_vm0, %v7059_v0  ;;  %6255 = vmatpush3.bf16.msra.mxu1 %v6788_v1 }
 0x9d9   :  { %v967_v18 = vpack.c.bf16 %v965_v63, %v965_v63  ;;  %6256 = vmatprep.subr.bf16.mxu1 %v7059_v0 }
 0x9db   :  { %6251 = vmatmul.mubr.msk.bf16.vlgmr.msra.gmra.mrb[32].mxu0 %vm161_vm2, %v967_v18  ;;  %v7398_v18 = vsub.s32 2, %v7167_v7 }
 0x9dc   :  { %6266 = vmatprep.mubr.msk.bf16.mxu0 %vm7060_vm0, %v7059_v0  ;;  %6257 = vmatpush3.bf16.msra.mxu1 %v6789_v2  ;;  %v7403_v2 = vsub.s32 3, %v7167_v7 }
 0x9dd   :  { %6270 = vmatprep.subr.bf16.mxu1 %v7059_v0  ;;  %v1199_v1 = vrot.slane %v7175_v9, %v7398_v18 }
 0xaaa   :  { %v1010_v5 = vpop.f32.mrb[28].mxu1 }
 0xaab   :  { %v6246_v6 = vpop.f32.mrb[29].mxu1 }
 0xaac   :  { %v1013_v10 = vpop.f32.mrb[30].mxu1 }
 0xaad   :  { %v6247_v11 = vpop.f32.mrb[31].mxu1 }
 0xaae   :  { %v1058_v12 = vpop.f32.mrb[32].mxu0 }
 0xaaf   :  { %v6736_v13 = vpack.i.bf16 %v1058_v12, %v1010_v5  ;;  %v6252_v14 = vpop.f32.mrb[33].mxu0 }
 0xab0   :  { %v1061_v16 = vpop.f32.mrb[34].mxu0 }
 0xab1   :  { %6737 = vrot.lane.b32.xlu0 %v6736_v13, %s7074_s29  ;;  %v6253_v19 = vpop.f32.mrb[35].mxu0  ;;  %v1205_v13 = vrot.slane %v7175_v9, %v7403_v2 }
 0xb23   :  { %v6738_v30 = vpop.permute.xlu0 %6737 }
 0xb24   :  { %v6740_v33 = vunpack.i.h.bf16 %v6738_v30  ;;  %v6739_v35 = vunpack.i.l.bf16 %v6738_v30  ;;  %v1217_v30 = vrot.slane %v7175_v9, %v7427_v29 }
 0xb26   :  { %v1095_v38 = vsel %vm1093_vm5, %v1092_v37, %v6740_v33  ;;  %v1094_v40 = vsel %vm1093_vm5, %v1091_v36, %v6739_v35 }
 0xb27   :  { %v5939_v41 = vpack.c.bf16 %v1095_v38, %v1094_v40 }
 0xb29   :  { %6259 = vmatmul.mubr.msk.bf16.vlgmr.msra.gmra.mrb[32].mxu1 %vm111_vm1, %v5939_v41 }
 0xb2a   :  { %6278 = vmatprep.mubr.msk.bf16.mxu1 %vm7060_vm0, %v7059_v0  ;;  %6271 = vmatpush3.bf16.msra.mxu1 %v6792_v21 }
 0xb2b   :  { %6272 = vmatprep.subr.bf16.mxu1 %v7059_v0 }
 0xb2e   :  { %6273 = vmatpush3.bf16.msra.mxu1 %v6793_v25 }
 0xb2f   :  { %6274 = vmatprep.subr.bf16.mxu1 %v7059_v0 }
 0xb32   :  { %6275 = vmatpush3.bf16.msra.mxu1 %v6794_v27 }
 0xb33   :  { %6276 = vmatprep.subr.bf16.mxu1 %v7059_v0 }
 0xb36   :  { %6277 = vmatpush3.bf16.msra.mxu1 %v6795_v28 }
 0xb37   :  { %6296 = vmatprep.subr.bf16.mxu1 %v7059_v0 }
 0xbfc   :  { %v1160_v42 = vpop.f32.mrb[32].mxu1 }
 0xbfd   :  { %v1161_v43 = vadd.f32 %v1160_v42, %v1105_v22  ;;  %v6260_v44 = vpop.f32.mrb[33].mxu1 }
 0xbfe   :  { %v1163_v45 = vpop.f32.mrb[34].mxu1 }
 0xbff   :  { %v1164_v46 = vadd.f32 %v1163_v45, %v1105_v22  ;;  %v6261_v47 = vpop.f32.mrb[35].mxu1  ;;  %v1167_v48 = vadd.f32 %v1161_v43, %v7156_v3 }
 0xc01   :  { %v1169_v49 = vsel %vm111_vm1, %v1167_v48, 0.0  ;;  %v1168_v50 = vadd.f32 %v1164_v46, %v7158_v4  ;;  %v6790_v4 = vld [vmem:[%s8345_s4] sm:$0xff]  }
 0xc02   :  { %1170 = vadd.xlane.f32.xlu1 %v1169_v49  ;;  %6263 = vmatpush3.bf16.msra.mxu0 %v6790_v4 }
 0xc03   :  { %v1172_v51 = vsel %vm111_vm1, %v1168_v50, 0.0  ;;  %6264 = vmatprep.subr.bf16.mxu0 %v7059_v0 }
 0xc04   :  { %1173 = vadd.xlane.f32.xlu0 %v1172_v51 }
 0xc06   :  { %6265 = vmatpush3.bf16.msra.mxu0 %v6791_v57 }
 0xc07   :  { %6282 = vmatprep.subr.bf16.mxu0 %v7059_v0 }
 0xc8f   :  { %v1171_v52 = vpop.xlane.xlu1 %1170 }
 0xc90   :  { %v1176_v53 = vmul.f32 0.03125, %v1171_v52 }
 0xc91   :  { %v1174_v54 = vpop.xlane.xlu0 %1173 }
 0xc92   :  { %v1178_v15 = vsub.f32 %v1167_v48, %v1176_v53  ;;  %v1177_v17 = vmul.f32 0.03125, %v1174_v54 }
 0xc94   :  { %v1179_v23 = vsub.f32 %v1168_v50, %v1177_v17  ;;  %v1180_v24 = vmul.f32 %v1178_v15, %v1178_v15 }
 0xc96   :  { %v1182_v55 = vsel %vm111_vm1, %v1180_v24, 0.0  ;;  %v1181_v56 = vmul.f32 %v1179_v23, %v1179_v23 }
 0xc97   :  { %1183 = vadd.xlane.f32.xlu0 %v1182_v55 }
 0xc98   :  { %v1185_v3 = vsel %vm111_vm1, %v1181_v56, 0.0 }
 0xc99   :  { %1186 = vadd.xlane.f32.xlu1 %v1185_v3 }
 0xd24   :  { %v1184_v58 = vpop.xlane.xlu0 %1183 }
 0xd25   :  { %v1188_v59 = vmul.f32 0.03125, %v1184_v58 }
 0xd26   :  { %v1187_v60 = vpop.xlane.xlu1 %1186 }
 0xd27   :  { %v1190_v61 = vadd.f32 1e-12, %v1188_v59  ;;  %v1189_v62 = vmul.f32 0.03125, %v1187_v60 }
 0xd29   :  { %6868 = vrsqrt.f32 %v1190_v61  ;;  %v1191_v63 = vadd.f32 1e-12, %v1189_v62 }
 0xd2b   :  { %6870 = vrsqrt.f32 %v1191_v63 }
 0xd33   :  { %v6869_v5 = vpop.eup %6868 }
 0xd34   :  { %v1194_v6 = vmul.f32 %v6869_v5, %v1178_v15 }
 0xd35   :  { %v6871_v10 = vpop.eup %6870 }
 0xd36   :  { %v1200_v11 = vmul.f32 %v1199_v1, %v1194_v6  ;;  %v1195_v12 = vmul.f32 %v6871_v10, %v1179_v23  ;;  %v7435_v23 = vsub.s32 5, %v7167_v7 }
 0xd38   :  { %v1201_v14 = vmul.f32 %v1199_v1, %v1195_v12  ;;  %v1206_v16 = vadd.f32 %v1205_v13, %v1200_v11  ;;  %v1310_v24 = vrot.slane %v7175_v9, %v7435_v23 }
 0xd3a   :  { %v1207_v19 = vadd.f32 %v1205_v13, %v1201_v14 }
 0xd3c   :  { %v5940_v20 = vpack.c.bf16 %v1207_v19, %v1206_v16 }
 0xd3e   :  { %6267 = vmatmul.mubr.msk.bf16.vlgmr.msra.gmra.mrb[36].mxu0 %vm111_vm1, %v5940_v20 }
 0xd3f   :  { %6286 = vmatprep.mubr.msk.bf16.mxu0 %vm7060_vm0, %v7059_v0 }
 0xe11   :  { %v1272_v31 = vpop.f32.mrb[36].mxu0 }
 0xe12   :  { %v1273_v32 = vadd.f32 %v1272_v31, %v1217_v30  ;;  %v6268_v33 = vpop.f32.mrb[37].mxu0  ;;  %v7452_v31 = vsub.s32 6, %v7167_v7 }
 0xe13   :  { %v1275_v35 = vpop.f32.mrb[38].mxu0 }
 0xe14   :  { %v1279_v36 = vmul.f32 %v1273_v32, %v1273_v32  ;;  %v1276_v37 = vadd.f32 %v1275_v35, %v1217_v30  ;;  %v6269_v38 = vpop.f32.mrb[39].mxu0  ;;  %v7459_v35 = vsub.s32 7, %v7167_v7  ;;  %v7474_v7 = vld [vmem:[%s8347_s6 + $0x8] sm:$0xff] }
 0xe16   :  { %v1281_v40 = vmul.f32 %v1279_v36, %v1273_v32  ;;  %v1280_v41 = vmul.f32 %v1276_v37, %v1276_v37 }
 0xe18   :  { %v1283_v22 = vmul.f32 0.044715, %v1281_v40  ;;  %v1282_v42 = vmul.f32 %v1280_v41, %v1276_v37 }
 0xe1a   :  { %v1285_v43 = vadd.f32 %v1283_v22, %v1273_v32  ;;  %v1284_v44 = vmul.f32 0.044715, %v1282_v42 }
 0xe1c   :  { %v1287_v45 = vmul.f32 0.7978846, %v1285_v43  ;;  %v1286_v46 = vadd.f32 %v1284_v44, %v1276_v37 }
 0xe1e   :  { %6872 = vtanh.f32 %v1287_v45  ;;  %v1288_v47 = vmul.f32 0.7978846, %v1286_v46  ;;  %v1435_v46 = vrot.slane %v7474_v7, %v7170_v8 }
 0xe20   :  { %6874 = vtanh.f32 %v1288_v47 }
 0xe28   :  { %v6873_v48 = vpop.eup %6872 }
 0xe29   :  { %v1291_v49 = vadd.f32 1.0, %v6873_v48 }
 0xe2a   :  { %v6875_v50 = vpop.eup %6874 }
 0xe2b   :  { %v1293_v51 = vmul.f32 0.5, %v1291_v49  ;;  %v1292_v52 = vadd.f32 1.0, %v6875_v50 }
 0xe2d   :  { %v1294_v53 = vmul.f32 0.5, %v1292_v52  ;;  %v1295_v54 = vmul.f32 %v1293_v51, %v1273_v32  ;;  %v7030_v32 = vld [vmem:[%s8347_s6] sm:$0xff] }
 0xe2e   :  { %v1416_v33 = vrot.slane %v7030_v32, %v7452_v31  ;;  %v1422_v22 = vrot.slane %v7030_v32, %v7459_v35 }
 0xe2f   :  { %v1296_v15 = vmul.f32 %v1294_v53, %v1276_v37 }
 0xe31   :  { %v5941_v17 = vpack.c.bf16 %v1296_v15, %v1295_v54 }
 0xe33   :  { %6279 = vmatmul.mubr.msk.bf16.vlgmr.msra.gmra.mrb[36].mxu1 %vm1340_vm6, %v5941_v17 }
 0xe34   :  { %6298 = vmatprep.mubr.msk.bf16.mxu1 %vm7060_vm0, %v7059_v0 }
 0xf06   :  { %v1378_v55 = vpop.f32.mrb[36].mxu1 }
 0xf07   :  { %v1379_v56 = vadd.f32 %v1378_v55, %v1310_v24  ;;  %v6280_v3 = vpop.f32.mrb[37].mxu1 }
 0xf08   :  { %v1381_v4 = vpop.f32.mrb[38].mxu1 }
 0xf09   :  { %v1382_v57 = vadd.f32 %v1381_v4, %v1310_v24  ;;  %v6281_v58 = vpop.f32.mrb[39].mxu1  ;;  %v1385_v59 = vadd.f32 %v1379_v56, %v1206_v16  ;;  %v6796_v16 = vld [vmem:[%s8343_s2 + $0x10] sm:$0xff]  }
 0xf0a   :  { %6283 = vmatpush3.bf16.msra.mxu0 %v6796_v16 }
 0xf0b   :  { %v1387_v60 = vsel %vm111_vm1, %v1385_v59, 0.0  ;;  %v1386_v61 = vadd.f32 %v1382_v57, %v1207_v19  ;;  %v6797_v19 = vld [vmem:[%s8343_s2 + $0x18] sm:$0xff]   ;;  %6284 = vmatprep.subr.bf16.mxu0 %v7059_v0 }
 0xf0c   :  { %1388 = vadd.xlane.f32.xlu0 %v1387_v60 }
 0xf0d   :  { %v1390_v62 = vsel %vm111_vm1, %v1386_v61, 0.0 }
 0xf0e   :  { %1391 = vadd.xlane.f32.xlu1 %v1390_v62  ;;  %6285 = vmatpush3.bf16.msra.mxu0 %v6797_v19 }
 0xf0f   :  { %6290 = vmatprep.subr.bf16.mxu0 %v7059_v0 }
 0xf99   :  { %v1389_v63 = vpop.xlane.xlu0 %1388 }
 0xf9a   :  { %v1393_v1 = vmul.f32 0.03125, %v1389_v63 }
 0xf9b   :  { %v1392_v5 = vpop.xlane.xlu1 %1391 }
 0xf9c   :  { %v1395_v6 = vsub.f32 %v1385_v59, %v1393_v1  ;;  %v1394_v10 = vmul.f32 0.03125, %v1392_v5 }
 0xf9e   :  { %v1396_v9 = vsub.f32 %v1386_v61, %v1394_v10  ;;  %v1397_v11 = vmul.f32 %v1395_v6, %v1395_v6 }
 0xfa0   :  { %v1399_v12 = vsel %vm111_vm1, %v1397_v11, 0.0  ;;  %v1398_v13 = vmul.f32 %v1396_v9, %v1396_v9 }
 0xfa1   :  { %1400 = vadd.xlane.f32.xlu0 %v1399_v12 }
 0xfa2   :  { %v1402_v14 = vsel %vm111_vm1, %v1398_v13, 0.0 }
 0xfa3   :  { %1403 = vadd.xlane.f32.xlu1 %v1402_v14 }
0x102e   :  { %v1401_v20 = vpop.xlane.xlu0 %1400 }
0x102f   :  { %v1405_v21 = vmul.f32 0.03125, %v1401_v20 }
0x1030   :  { %v1404_v25 = vpop.xlane.xlu1 %1403 }
0x1031   :  { %v1407_v27 = vadd.f32 1e-12, %v1405_v21  ;;  %v1406_v28 = vmul.f32 0.03125, %v1404_v25 }
0x1033   :  { %6876 = vrsqrt.f32 %v1407_v27  ;;  %v1408_v30 = vadd.f32 1e-12, %v1406_v28 }
0x1035   :  { %6878 = vrsqrt.f32 %v1408_v30 }
0x103d   :  { %v6877_v36 = vpop.eup %6876 }
0x103e   :  { %v1411_v37 = vmul.f32 %v6877_v36, %v1395_v6 }
0x103f   :  { %v6879_v38 = vpop.eup %6878 }
0x1040   :  { %v1417_v40 = vmul.f32 %v1416_v33, %v1411_v37  ;;  %v1412_v41 = vmul.f32 %v6879_v38, %v1396_v9 }
0x1042   :  { %v1418_v42 = vmul.f32 %v1416_v33, %v1412_v41  ;;  %v7462_v43 = vadd.f32 %v1422_v22, %v1417_v40 }
0x1044   :  { %v7464_v44 = vadd.f32 %v1422_v22, %v1418_v42 }
0x1046   :  { %v5942_v45 = vpack.c.bf16 %v7464_v44, %v7462_v43 }
0x1048   :  { %6287 = vmatmul.mubr.msk.bf16.vlgmr.msra.gmra.mrb[40].mxu0 %vm111_vm1, %v5942_v45 }
0x1049   :  { %6292 = vmatprep.mubr.msk.bf16.mxu0 %vm7060_vm0, %v7059_v0 }
0x111b   :  { %v1490_v47 = vpop.f32.mrb[40].mxu0 }
0x111c   :  { %v1491_v48 = vadd.f32 %v1490_v47, %v1435_v46  ;;  %v6288_v49 = vpop.f32.mrb[41].mxu0 }
0x111d   :  { %v1493_v50 = vpop.f32.mrb[42].mxu0 }
0x111e   :  { %v7478_v51 = vpack.c.bf16 %v1491_v48, %v1491_v48  ;;  %v1494_v52 = vadd.f32 %v1493_v50, %v1435_v46  ;;  %v6289_v53 = vpop.f32.mrb[43].mxu0 }
0x1120   :  { %v7480_v54 = vpack.c.bf16 %v1494_v52, %v1494_v52  ;;  %1500 = vrot.lane.b32.xlu0 %v7478_v51, %s7061_s12 }
0x1122   :  { %1549 = vrot.lane.b32.xlu1 %v7480_v54, %s7061_s12 }
0x1192   :  { %v1501_v15 = vpop.permute.xlu0 %1500 }
0x1193   :  { %v1506_v17 = vsel %vm161_vm2, %v1501_v15, 0 }
0x1194   :  { %6291 = vmatpush3.bf16.xpose.msra.mxu0 %v1506_v17  ;;  %v1550_v24 = vpop.permute.xlu1 %1549 }
0x1195   :  { %v1555_v55 = vsel %vm161_vm2, %v1550_v24, 0  ;;  %6302 = vmatprep.subr.bf16.mxu0 %v7059_v0 }
0x1196   :  { %6297 = vmatpush3.bf16.xpose.msra.mxu1 %v1555_v55 }
0x1197   :  { %6308 = vmatprep.subr.bf16.mxu1 %v7059_v0 }
0x119b   :  { %6293 = vmatmul.mubr.msk.bf16.vlgmr.msra.gmra.mrb[44].mxu0 %vm161_vm2, %v7478_v51 }
0x119c   :  { %6304 = vmatprep.mubr.msk.bf16.mxu0 %vm7060_vm0, %v7059_v0 }
0x119d   :  { %6299 = vmatmul.mubr.msk.bf16.vlgmr.msra.gmra.mrb[40].mxu1 %vm161_vm2, %v7480_v54 }
0x119e   :  { %6310 = vmatprep.mubr.msk.bf16.mxu1 %vm7060_vm0, %v7059_v0 }
0x126e   :  { %v1542_v56 = vpop.f32.mrb[44].mxu0 }
0x126f   :  { %v1597_v3 = vmul.f32 0.35355338, %v1542_v56  ;;  %v6294_v4 = vpop.f32.mrb[45].mxu0 }
0x1270   :  { %v1545_v57 = vpop.f32.mrb[46].mxu0  ;;  %v1591_v58 = vpop.f32.mrb[40].mxu1 }
0x1271   :  { %v1598_v59 = vmul.f32 0.35355338, %v1591_v58  ;;  %v6295_v60 = vpop.f32.mrb[47].mxu0  ;;  %v6300_v61 = vpop.f32.mrb[41].mxu1  ;;  %v1599_v62 = vadd.f32 %v1597_v3, %v7204_v34 }
0x1272   :  { %v1594_v63 = vpop.f32.mrb[42].mxu1 }
0x1273   :  { %v6301_v1 = vpop.f32.mrb[43].mxu1  ;;  %v1601_v5 = vsel %vm161_vm2, %v1599_v62, -inf  ;;  %v1600_v6 = vadd.f32 %v1598_v59, %v7207_v39 }
0x1274   :  { %1602 = vmax.xlane.f32.xlu1 %v1601_v5 }
0x1275   :  { %v1604_v10 = vsel %vm161_vm2, %v1600_v6, -inf }
0x1276   :  { %1605 = vmax.xlane.f32.xlu0 %v1604_v10 }
0x1285   :  { %1673 = vrot.lane.b32.xlu1 %v7480_v54, %s7063_s1 }
0x128c   :  { %1625 = vrot.lane.b32.xlu0 %v7478_v51, %s7063_s1 }
0x1301   :  { %v1603_v9 = vpop.xlane.xlu1 %1602 }
0x1302   :  { %v1607_v11 = vsub.f32 %v1599_v62, %v1603_v9 }
0x1303   :  { %v1606_v12 = vpop.xlane.xlu0 %1605 }
0x1304   :  { %v1609_v13 = vmul.f32 1.442695, %v1607_v11  ;;  %v1608_v14 = vsub.f32 %v1600_v6, %v1606_v12 }
0x1305   :  { %v1674_v16 = vpop.permute.xlu1 %1673 }
0x1306   :  { %6880 = vpow2.f32 %v1609_v13  ;;  %v1611_v19 = vmul.f32 1.442695, %v1608_v14  ;;  %v1679_v20 = vsel %vm300_vm3, %v1674_v16, 0 }
0x1307   :  { %v1626_v21 = vpop.permute.xlu0 %1625  ;;  %6309 = vmatpush3.bf16.msra.mxu1 %v1679_v20 }
0x1308   :  { %6882 = vpow2.f32 %v1611_v19  ;;  %v1631_v25 = vsel %vm300_vm3, %v1626_v21, 0  ;;  %6320 = vmatprep.subr.bf16.mxu1 %v7059_v0 }
0x1309   :  { %6303 = vmatpush3.bf16.msra.mxu0 %v1631_v25 }
0x130a   :  { %6314 = vmatprep.subr.bf16.mxu0 %v7059_v0 }
0x1310   :  { %v6881_v27 = vpop.eup %6880 }
0x1311   :  { %v1613_v28 = vsel %vm161_vm2, %v6881_v27, 0.0 }
0x1312   :  { %v6883_v30 = vpop.eup %6882  ;;  %1614 = vadd.xlane.f32.xlu0 %v1613_v28 }
0x1313   :  { %v1616_v32 = vsel %vm161_vm2, %v6883_v30, 0.0 }
0x1314   :  { %1617 = vadd.xlane.f32.xlu1 %v1616_v32 }
0x1325   :  { %1723 = vrot.lane.b32.xlu1 %v7478_v51, %s7064_s15 }
0x1328   :  { %1773 = vrot.lane.b32.xlu0 %v7480_v54, %s7064_s15 }
0x1329   :  { %1721 = vrot.lane.b32.xlu1 %v7478_v51, %s7065_s16 }
0x132c   :  { %1771 = vrot.lane.b32.xlu0 %v7480_v54, %s7065_s16 }
0x139f   :  { %v1615_v33 = vpop.xlane.xlu0 %1614 }
0x13a0   :  { %6884 = vrcp.f32 %v1615_v33 }
0x13a1   :  { %v1618_v36 = vpop.xlane.xlu1 %1617 }
0x13a2   :  { %6886 = vrcp.f32 %v1618_v36 }
0x13a3   :  { %v1774_v45 = vpop.permute.xlu0 %1773 }
0x13a4   :  { %v1779_v48 = vsel %vm161_vm2, %v1774_v45, 0 }
0x13a5   :  { %v1724_v41 = vpop.permute.xlu1 %1723 }
0x13a6   :  { %v1729_v46 = vsel %vm161_vm2, %v1724_v41, 0 }
0x13a7   :  { %v1772_v50 = vpop.permute.xlu0 %1771 }
0x13a9   :  { %v1722_v49 = vpop.permute.xlu1 %1721 }
0x13aa   :  { %v6885_v37 = vpop.eup %6884 }
0x13ab   :  { %v1621_v38 = vmul.f32 %v6885_v37, %v6881_v27 }
0x13ac   :  { %v6887_v40 = vpop.eup %6886 }
0x13ad   :  { %v1623_v22 = vpack.c.bf16 %v1621_v38, %v1621_v38  ;;  %v1622_v42 = vmul.f32 %v6887_v40, %v6883_v30 }
0x13af   :  { %6305 = vmatmul.mubr.msk.bf16.vlgmr.msra.gmra.mrb[48].mxu0 %vm161_vm2, %v1623_v22  ;;  %v1624_v47 = vpack.c.bf16 %v1622_v42, %v1622_v42 }
0x13b0   :  { %6315 = vmatpush3.bf16.xpose.msra.mxu0 %v1729_v46  ;;  %6316 = vmatprep.mubr.msk.bf16.mxu0 %vm7060_vm0, %v7059_v0 }
0x13b1   :  { %6311 = vmatmul.mubr.msk.bf16.vlgmr.msra.gmra.mrb[44].mxu1 %vm161_vm2, %v1624_v47  ;;  %6326 = vmatprep.subr.bf16.mxu0 %v7059_v0 }
0x13b2   :  { %6321 = vmatpush3.bf16.xpose.msra.mxu1 %v1779_v48  ;;  %6322 = vmatprep.mubr.msk.bf16.mxu1 %vm7060_vm0, %v7059_v0 }
0x13b3   :  { %6332 = vmatprep.subr.bf16.mxu1 %v7059_v0 }
0x13b7   :  { %6317 = vmatmul.mubr.msk.bf16.vlgmr.msra.gmra.mrb[52].mxu0 %vm161_vm2, %v1722_v49 }
0x13b8   :  { %6328 = vmatprep.mubr.msk.bf16.mxu0 %vm7060_vm0, %v7059_v0 }
0x13b9   :  { %6323 = vmatmul.mubr.msk.bf16.vlgmr.msra.gmra.mrb[48].mxu1 %vm161_vm2, %v1772_v50 }
0x13ba   :  { %6334 = vmatprep.mubr.msk.bf16.mxu1 %vm7060_vm0, %v7059_v0 }
0x1482   :  { %v7536_v52 = vpop.f32.mrb[48].mxu0 }
0x1483   :  { %v6306_v53 = vpop.f32.mrb[49].mxu0 }
0x1484   :  { %v1670_v15 = vpop.f32.mrb[50].mxu0  ;;  %v7538_v17 = vpop.f32.mrb[44].mxu1 }
0x1485   :  { %v6307_v24 = vpop.f32.mrb[51].mxu0  ;;  %v6312_v55 = vpop.f32.mrb[45].mxu1 }
0x1486   :  { %v1718_v56 = vpop.f32.mrb[46].mxu1 }
0x1487   :  { %v6313_v3 = vpop.f32.mrb[47].mxu1 }
0x148a   :  { %v1765_v4 = vpop.f32.mrb[52].mxu0 }
0x148b   :  { %v1821_v57 = vmul.f32 0.35355338, %v1765_v4  ;;  %v6318_v58 = vpop.f32.mrb[53].mxu0 }
0x148c   :  { %v1768_v59 = vpop.f32.mrb[54].mxu0  ;;  %v1815_v60 = vpop.f32.mrb[48].mxu1 }
0x148d   :  { %v1822_v61 = vmul.f32 0.35355338, %v1815_v60  ;;  %v6319_v62 = vpop.f32.mrb[55].mxu0  ;;  %v6324_v63 = vpop.f32.mrb[49].mxu1  ;;  %v1823_v1 = vadd.f32 %v1821_v57, %v7204_v34 }
0x148e   :  { %v1818_v5 = vpop.f32.mrb[50].mxu1 }
0x148f   :  { %v6325_v6 = vpop.f32.mrb[51].mxu1  ;;  %v1825_v10 = vsel %vm161_vm2, %v1823_v1, -inf  ;;  %v1824_v9 = vadd.f32 %v1822_v61, %v7207_v39 }
0x1490   :  { %1826 = vmax.xlane.f32.xlu1 %v1825_v10 }
0x1491   :  { %v1828_v11 = vsel %vm161_vm2, %v1824_v9, -inf }
0x1492   :  { %1829 = vmax.xlane.f32.xlu0 %v1828_v11 }
0x14a1   :  { %1897 = vrot.lane.b32.xlu1 %v7480_v54, %s7066_s17 }
0x14a8   :  { %1849 = vrot.lane.b32.xlu0 %v7478_v51, %s7066_s17 }
0x151d   :  { %v1827_v12 = vpop.xlane.xlu1 %1826 }
0x151e   :  { %v1831_v13 = vsub.f32 %v1823_v1, %v1827_v12 }
0x151f   :  { %v1830_v14 = vpop.xlane.xlu0 %1829 }
0x1520   :  { %v1833_v16 = vmul.f32 1.442695, %v1831_v13  ;;  %v1832_v19 = vsub.f32 %v1824_v9, %v1830_v14 }
0x1521   :  { %v1898_v20 = vpop.permute.xlu1 %1897 }
0x1522   :  { %6888 = vpow2.f32 %v1833_v16  ;;  %v1835_v21 = vmul.f32 1.442695, %v1832_v19  ;;  %v1903_v25 = vsel %vm300_vm3, %v1898_v20, 0 }
0x1523   :  { %v1850_v27 = vpop.permute.xlu0 %1849  ;;  %6333 = vmatpush3.bf16.msra.mxu1 %v1903_v25 }
0x1524   :  { %6890 = vpow2.f32 %v1835_v21  ;;  %v1855_v28 = vsel %vm300_vm3, %v1850_v27, 0  ;;  %6344 = vmatprep.subr.bf16.mxu1 %v7059_v0 }
0x1525   :  { %6327 = vmatpush3.bf16.msra.mxu0 %v1855_v28 }
0x1526   :  { %6338 = vmatprep.subr.bf16.mxu0 %v7059_v0 }
0x152c   :  { %v6889_v30 = vpop.eup %6888 }
0x152d   :  { %v1837_v32 = vsel %vm161_vm2, %v6889_v30, 0.0 }
0x152e   :  { %v6891_v33 = vpop.eup %6890  ;;  %1838 = vadd.xlane.f32.xlu0 %v1837_v32 }
0x152f   :  { %v1840_v36 = vsel %vm161_vm2, %v6891_v33, 0.0 }
0x1530   :  { %1841 = vadd.xlane.f32.xlu1 %v1840_v36 }
0x1541   :  { %1947 = vrot.lane.b32.xlu1 %v7478_v51, %s7067_s18 }
0x1544   :  { %1997 = vrot.lane.b32.xlu0 %v7480_v54, %s7067_s18 }
0x1545   :  { %1945 = vrot.lane.b32.xlu1 %v7478_v51, %s7068_s19 }
0x1548   :  { %1995 = vrot.lane.b32.xlu0 %v7480_v54, %s7068_s19 }
0x15bb   :  { %v1839_v37 = vpop.xlane.xlu0 %1838 }
0x15bc   :  { %6892 = vrcp.f32 %v1839_v37 }
0x15bd   :  { %v1842_v38 = vpop.xlane.xlu1 %1841 }
0x15be   :  { %6894 = vrcp.f32 %v1842_v38 }
0x15bf   :  { %v1998_v47 = vpop.permute.xlu0 %1997 }
0x15c0   :  { %v2003_v50 = vsel %vm161_vm2, %v1998_v47, 0 }
0x15c1   :  { %v1948_v42 = vpop.permute.xlu1 %1947 }
0x15c2   :  { %v1953_v48 = vsel %vm161_vm2, %v1948_v42, 0 }
0x15c3   :  { %v1996_v15 = vpop.permute.xlu0 %1995 }
0x15c5   :  { %v1946_v53 = vpop.permute.xlu1 %1945 }
0x15c6   :  { %v6893_v40 = vpop.eup %6892 }
0x15c7   :  { %v1845_v41 = vmul.f32 %v6893_v40, %v6889_v30 }
0x15c8   :  { %v6895_v22 = vpop.eup %6894 }
0x15c9   :  { %v1847_v45 = vpack.c.bf16 %v1845_v41, %v1845_v41  ;;  %v1846_v46 = vmul.f32 %v6895_v22, %v6891_v33 }
0x15cb   :  { %6329 = vmatmul.mubr.msk.bf16.vlgmr.msra.gmra.mrb[56].mxu0 %vm161_vm2, %v1847_v45  ;;  %v1848_v49 = vpack.c.bf16 %v1846_v46, %v1846_v46 }
0x15cc   :  { %6339 = vmatpush3.bf16.xpose.msra.mxu0 %v1953_v48  ;;  %6340 = vmatprep.mubr.msk.bf16.mxu0 %vm7060_vm0, %v7059_v0 }
0x15cd   :  { %6335 = vmatmul.mubr.msk.bf16.vlgmr.msra.gmra.mrb[52].mxu1 %vm161_vm2, %v1848_v49  ;;  %6350 = vmatprep.subr.bf16.mxu0 %v7059_v0 }
0x15ce   :  { %6345 = vmatpush3.bf16.xpose.msra.mxu1 %v2003_v50  ;;  %6346 = vmatprep.mubr.msk.bf16.mxu1 %vm7060_vm0, %v7059_v0 }
0x15cf   :  { %6356 = vmatprep.subr.bf16.mxu1 %v7059_v0 }
0x15d3   :  { %6341 = vmatmul.mubr.msk.bf16.vlgmr.msra.gmra.mrb[60].mxu0 %vm161_vm2, %v1946_v53 }
0x15d4   :  { %6352 = vmatprep.mubr.msk.bf16.mxu0 %vm7060_vm0, %v7059_v0 }
0x15d5   :  { %6347 = vmatmul.mubr.msk.bf16.vlgmr.msra.gmra.mrb[56].mxu1 %vm161_vm2, %v1996_v15 }
0x15d6   :  { %6358 = vmatprep.mubr.msk.bf16.mxu1 %vm7060_vm0, %v7059_v0 }
0x169e   :  { %v7578_v24 = vpop.f32.mrb[56].mxu0 }
0x169f   :  { %v6330_v55 = vpop.f32.mrb[57].mxu0 }
0x16a0   :  { %v1894_v56 = vpop.f32.mrb[58].mxu0  ;;  %v7580_v3 = vpop.f32.mrb[52].mxu1 }
0x16a1   :  { %v6741_v4 = vpack.i.bf16 %v7580_v3, %v7578_v24  ;;  %v6331_v57 = vpop.f32.mrb[59].mxu0  ;;  %v6336_v58 = vpop.f32.mrb[53].mxu1 }
0x16a2   :  { %v1942_v59 = vpop.f32.mrb[54].mxu1 }
0x16a3   :  { %v6337_v60 = vpop.f32.mrb[55].mxu1 }
0x16a6   :  { %v1989_v61 = vpop.f32.mrb[60].mxu0 }
0x16a7   :  { %v2045_v62 = vmul.f32 0.35355338, %v1989_v61  ;;  %v6342_v63 = vpop.f32.mrb[61].mxu0 }
0x16a8   :  { %v1992_v1 = vpop.f32.mrb[62].mxu0  ;;  %v2039_v5 = vpop.f32.mrb[56].mxu1 }
0x16a9   :  { %v2046_v6 = vmul.f32 0.35355338, %v2039_v5  ;;  %v6343_v10 = vpop.f32.mrb[63].mxu0  ;;  %v6348_v9 = vpop.f32.mrb[57].mxu1  ;;  %v2047_v11 = vadd.f32 %v2045_v62, %v7204_v34 }
0x16aa   :  { %v2042_v12 = vpop.f32.mrb[58].mxu1 }
0x16ab   :  { %v6349_v13 = vpop.f32.mrb[59].mxu1  ;;  %v2049_v14 = vsel %vm161_vm2, %v2047_v11, -inf  ;;  %v2048_v16 = vadd.f32 %v2046_v6, %v7207_v39 }
0x16ac   :  { %2050 = vmax.xlane.f32.xlu1 %v2049_v14 }
0x16ad   :  { %v2052_v19 = vsel %vm161_vm2, %v2048_v16, -inf }
0x16ae   :  { %2053 = vmax.xlane.f32.xlu0 %v2052_v19 }
0x16bd   :  { %2121 = vrot.lane.b32.xlu1 %v7480_v54, %s7069_s20 }
0x16c4   :  { %2073 = vrot.lane.b32.xlu0 %v7478_v51, %s7069_s20 }
0x1739   :  { %v2051_v20 = vpop.xlane.xlu1 %2050 }
0x173a   :  { %v2055_v21 = vsub.f32 %v2047_v11, %v2051_v20 }
0x173b   :  { %v2054_v25 = vpop.xlane.xlu0 %2053 }
0x173c   :  { %v2057_v27 = vmul.f32 1.442695, %v2055_v21  ;;  %v2056_v28 = vsub.f32 %v2048_v16, %v2054_v25 }
0x173d   :  { %v2122_v30 = vpop.permute.xlu1 %2121 }
0x173e   :  { %6896 = vpow2.f32 %v2057_v27  ;;  %v2059_v32 = vmul.f32 1.442695, %v2056_v28  ;;  %v2127_v33 = vsel %vm300_vm3, %v2122_v30, 0 }
0x173f   :  { %v2074_v36 = vpop.permute.xlu0 %2073  ;;  %6357 = vmatpush3.bf16.msra.mxu1 %v2127_v33 }
0x1740   :  { %6898 = vpow2.f32 %v2059_v32  ;;  %v2079_v37 = vsel %vm300_vm3, %v2074_v36, 0  ;;  %6368 = vmatprep.subr.bf16.mxu1 %v7059_v0 }
0x1741   :  { %6351 = vmatpush3.bf16.msra.mxu0 %v2079_v37 }
0x1742   :  { %6362 = vmatprep.subr.bf16.mxu0 %v7059_v0 }
0x1748   :  { %v6897_v38 = vpop.eup %6896 }
0x1749   :  { %v2061_v40 = vsel %vm161_vm2, %v6897_v38, 0.0 }
0x174a   :  { %v6899_v41 = vpop.eup %6898  ;;  %2062 = vadd.xlane.f32.xlu0 %v2061_v40 }
0x174b   :  { %v2064_v22 = vsel %vm161_vm2, %v6899_v41, 0.0 }
0x174c   :  { %2065 = vadd.xlane.f32.xlu1 %v2064_v22 }
0x175d   :  { %2171 = vrot.lane.b32.xlu1 %v7478_v51, %s7070_s21 }
0x1760   :  { %2221 = vrot.lane.b32.xlu0 %v7480_v54, %s7070_s21 }
0x1761   :  { %2169 = vrot.lane.b32.xlu1 %v7478_v51, %s7071_s22 }
0x1764   :  { %2219 = vrot.lane.b32.xlu0 %v7480_v54, %s7071_s22 }
0x17d7   :  { %v2063_v42 = vpop.xlane.xlu0 %2062 }
0x17d8   :  { %6900 = vrcp.f32 %v2063_v42 }
0x17d9   :  { %v2066_v45 = vpop.xlane.xlu1 %2065 }
0x17da   :  { %6902 = vrcp.f32 %v2066_v45 }
0x17db   :  { %v2222_v15 = vpop.permute.xlu0 %2221 }
0x17dc   :  { %v2227_v57 = vsel %vm161_vm2, %v2222_v15, 0 }
0x17dd   :  { %v2172_v49 = vpop.permute.xlu1 %2171 }
0x17de   :  { %v2177_v55 = vsel %vm161_vm2, %v2172_v49, 0 }
0x17df   :  { %v2220_v59 = vpop.permute.xlu0 %2219 }
0x17e1   :  { %v2170_v58 = vpop.permute.xlu1 %2169 }
0x17e2   :  { %v6901_v46 = vpop.eup %6900 }
0x17e3   :  { %v2069_v47 = vmul.f32 %v6901_v46, %v6897_v38 }
0x17e4   :  { %v6903_v48 = vpop.eup %6902 }
0x17e5   :  { %v2071_v50 = vpack.c.bf16 %v2069_v47, %v2069_v47  ;;  %v2070_v53 = vmul.f32 %v6903_v48, %v6899_v41 }
0x17e7   :  { %6353 = vmatmul.mubr.msk.bf16.vlgmr.msra.gmra.mrb[64].mxu0 %vm161_vm2, %v2071_v50  ;;  %v2072_v56 = vpack.c.bf16 %v2070_v53, %v2070_v53 }
0x17e8   :  { %6363 = vmatpush3.bf16.xpose.msra.mxu0 %v2177_v55  ;;  %6364 = vmatprep.mubr.msk.bf16.mxu0 %vm7060_vm0, %v7059_v0 }
0x17e9   :  { %6359 = vmatmul.mubr.msk.bf16.vlgmr.msra.gmra.mrb[60].mxu1 %vm161_vm2, %v2072_v56  ;;  %6374 = vmatprep.subr.bf16.mxu0 %v7059_v0 }
0x17ea   :  { %6369 = vmatpush3.bf16.xpose.msra.mxu1 %v2227_v57  ;;  %6370 = vmatprep.mubr.msk.bf16.mxu1 %vm7060_vm0, %v7059_v0  ;;  %v6798_v57 = vld [vmem:[%s8344_s3 + $0x10] sm:$0xff]  }
0x17eb   :  { %6380 = vmatprep.subr.bf16.mxu1 %v7059_v0 }
0x17ef   :  { %6365 = vmatmul.mubr.msk.bf16.vlgmr.msra.gmra.mrb[68].mxu0 %vm161_vm2, %v2170_v58  ;;  %v6799_v58 = vld [vmem:[%s8344_s3 + $0x18] sm:$0xff]  }
0x17f0   :  { %6376 = vmatprep.mubr.msk.bf16.mxu0 %vm7060_vm0, %v7059_v0 }
0x17f1   :  { %6371 = vmatmul.mubr.msk.bf16.vlgmr.msra.gmra.mrb[64].mxu1 %vm161_vm2, %v2220_v59 }
0x17f2   :  { %6382 = vmatprep.mubr.msk.bf16.mxu1 %vm7060_vm0, %v7059_v0 }
0x18ba   :  { %v2115_v60 = vpop.f32.mrb[64].mxu0 }
0x18bb   :  { %v6354_v61 = vpop.f32.mrb[65].mxu0 }
0x18bc   :  { %v2118_v62 = vpop.f32.mrb[66].mxu0  ;;  %v2163_v63 = vpop.f32.mrb[60].mxu1 }
0x18bd   :  { %v6746_v1 = vpack.i.bf16 %v2163_v63, %v2115_v60  ;;  %v6355_v5 = vpop.f32.mrb[67].mxu0  ;;  %v6360_v6 = vpop.f32.mrb[61].mxu1 }
0x18be   :  { %v2166_v10 = vpop.f32.mrb[62].mxu1 }
0x18bf   :  { %v6361_v9 = vpop.f32.mrb[63].mxu1 }
0x18c2   :  { %v2213_v11 = vpop.f32.mrb[68].mxu0 }
0x18c3   :  { %v2269_v12 = vmul.f32 0.35355338, %v2213_v11  ;;  %v6366_v13 = vpop.f32.mrb[69].mxu0 }
0x18c4   :  { %v2216_v14 = vpop.f32.mrb[70].mxu0  ;;  %v2263_v16 = vpop.f32.mrb[64].mxu1 }
0x18c5   :  { %v2270_v19 = vmul.f32 0.35355338, %v2263_v16  ;;  %v6367_v20 = vpop.f32.mrb[71].mxu0  ;;  %v6372_v21 = vpop.f32.mrb[65].mxu1  ;;  %v2271_v25 = vadd.f32 %v2269_v12, %v7204_v34 }
0x18c6   :  { %v2266_v27 = vpop.f32.mrb[66].mxu1 }
0x18c7   :  { %v6373_v28 = vpop.f32.mrb[67].mxu1  ;;  %v2273_v30 = vsel %vm161_vm2, %v2271_v25, -inf  ;;  %v2272_v32 = vadd.f32 %v2270_v19, %v7207_v39 }
0x18c8   :  { %2274 = vmax.xlane.f32.xlu1 %v2273_v30 }
0x18c9   :  { %v2276_v33 = vsel %vm161_vm2, %v2272_v32, -inf }
0x18ca   :  { %2277 = vmax.xlane.f32.xlu0 %v2276_v33 }
0x1955   :  { %v2275_v36 = vpop.xlane.xlu1 %2274 }
0x1956   :  { %v2279_v37 = vsub.f32 %v2271_v25, %v2275_v36 }
0x1957   :  { %v2278_v38 = vpop.xlane.xlu0 %2277 }
0x1958   :  { %v2281_v40 = vmul.f32 1.442695, %v2279_v37  ;;  %v2280_v41 = vsub.f32 %v2272_v32, %v2278_v38 }
0x195a   :  { %6904 = vpow2.f32 %v2281_v40  ;;  %v2283_v22 = vmul.f32 1.442695, %v2280_v41 }
0x195c   :  { %6906 = vpow2.f32 %v2283_v22 }
0x1964   :  { %v6905_v42 = vpop.eup %6904 }
0x1965   :  { %v2285_v45 = vsel %vm161_vm2, %v6905_v42, 0.0 }
0x1966   :  { %v6907_v46 = vpop.eup %6906  ;;  %2286 = vadd.xlane.f32.xlu0 %v2285_v45 }
0x1967   :  { %v2288_v47 = vsel %vm161_vm2, %v6907_v46, 0.0 }
0x1968   :  { %2289 = vadd.xlane.f32.xlu1 %v2288_v47 }
0x1979   :  { %2345 = vrot.lane.b32.xlu1 %v7480_v54, %s7072_s23 }
0x197c   :  { %2297 = vrot.lane.b32.xlu0 %v7478_v51, %s7072_s23 }
0x197d   :  { %6742 = vrot.lane.b32.xlu1 %v6741_v4, %s7058_s24 }
0x1980   :  { %6747 = vrot.lane.b32.xlu0 %v6746_v1, %s7073_s25 }
0x19f3   :  { %v2287_v48 = vpop.xlane.xlu0 %2286 }
0x19f4   :  { %6908 = vrcp.f32 %v2287_v48 }
0x19f5   :  { %v2290_v49 = vpop.xlane.xlu1 %2289 }
0x19f6   :  { %6910 = vrcp.f32 %v2290_v49 }
0x19f7   :  { %v2298_v50 = vpop.permute.xlu0 %2297 }
0x19f8   :  { %v2303_v53 = vsel %vm300_vm3, %v2298_v50, 0 }
0x19f9   :  { %6375 = vmatpush3.bf16.msra.mxu0 %v2303_v53  ;;  %v2346_v15 = vpop.permute.xlu1 %2345 }
0x19fa   :  { %v2351_v54 = vsel %vm300_vm3, %v2346_v15, 0  ;;  %6386 = vmatprep.subr.bf16.mxu0 %v7059_v0 }
0x19fb   :  { %6381 = vmatpush3.bf16.msra.mxu1 %v2351_v54  ;;  %v6748_v13 = vpop.permute.xlu0 %6747 }
0x19fc   :  { %6394 = vmatprep.subr.bf16.mxu1 %v7059_v0  ;;  %v6750_v19 = vunpack.i.h.bf16 %v6748_v13  ;;  %v6749_v20 = vunpack.i.l.bf16 %v6748_v13 }
0x19fd   :  { %v6743_v9 = vpop.permute.xlu1 %6742 }
0x19fe   :  { %v6909_v51 = vpop.eup %6908  ;;  %v6745_v11 = vunpack.i.h.bf16 %v6743_v9  ;;  %v6744_v12 = vunpack.i.l.bf16 %v6743_v9 }
0x19ff   :  { %v2293_v24 = vmul.f32 %v6909_v51, %v6905_v42 }
0x1a00   :  { %v6911_v3 = vpop.eup %6910  ;;  %v2418_v14 = vsel %vm161_vm2, %v7538_v17, %v6745_v11  ;;  %v2417_v16 = vsel %vm161_vm2, %v7536_v52, %v6744_v12  ;;  %v2433_v52 = vrot.slane %v7474_v7, %v7379_v26  ;;  %v2532_v11 = vrot.slane %v7474_v7, %v7403_v2 }
0x1a01   :  { %v2295_v4 = vpack.c.bf16 %v2293_v24, %v2293_v24  ;;  %v2294_v55 = vmul.f32 %v6911_v3, %v6907_v46  ;;  %v2419_v28 = vsel %vm1090_vm4, %v2417_v16, %v6749_v20  ;;  %v2420_v30 = vsel %vm1090_vm4, %v2418_v14, %v6750_v19  ;;  %v6802_v19 = vld [vmem:[%s8346_s5 + $0x20] sm:$0xff]   ;;  %v6803_v20 = vld [vmem:[%s8346_s5 + $0x28] sm:$0xff]  }
0x1a03   :  { %6377 = vmatmul.mubr.msk.bf16.vlgmr.msra.gmra.mrb[72].mxu0 %vm161_vm2, %v2295_v4  ;;  %v2296_v56 = vpack.c.bf16 %v2294_v55, %v2294_v55  ;;  %v6800_v55 = vld [vmem:[%s8345_s4 + $0x10] sm:$0xff]  }
0x1a04   :  { %6390 = vmatprep.mubr.msk.bf16.mxu0 %vm7060_vm0, %v7059_v0  ;;  %6387 = vmatpush3.bf16.msra.mxu0 %v6798_v57 }
0x1a05   :  { %6383 = vmatmul.mubr.msk.bf16.vlgmr.msra.gmra.mrb[68].mxu1 %vm161_vm2, %v2296_v56  ;;  %6388 = vmatprep.subr.bf16.mxu0 %v7059_v0  ;;  %v6801_v56 = vld [vmem:[%s8345_s4 + $0x18] sm:$0xff]  }
0x1a06   :  { %6398 = vmatprep.mubr.msk.bf16.mxu1 %vm7060_vm0, %v7059_v0  ;;  %6395 = vmatpush3.bf16.msra.mxu1 %v6800_v55 }
0x1a07   :  { %6396 = vmatprep.subr.bf16.mxu1 %v7059_v0 }
0x1a08   :  { %6389 = vmatpush3.bf16.msra.mxu0 %v6799_v58 }
0x1a09   :  { %6402 = vmatprep.subr.bf16.mxu0 %v7059_v0 }
0x1a0a   :  { %6397 = vmatpush3.bf16.msra.mxu1 %v6801_v56 }
0x1a0b   :  { %6414 = vmatprep.subr.bf16.mxu1 %v7059_v0 }
0x1ad6   :  { %v2339_v59 = vpop.f32.mrb[72].mxu0 }
0x1ad7   :  { %v6378_v60 = vpop.f32.mrb[73].mxu0 }
0x1ad8   :  { %v2342_v61 = vpop.f32.mrb[74].mxu0  ;;  %v2387_v62 = vpop.f32.mrb[68].mxu1 }
0x1ad9   :  { %v6751_v63 = vpack.i.bf16 %v2387_v62, %v2339_v59  ;;  %v6379_v1 = vpop.f32.mrb[75].mxu0  ;;  %v6384_v5 = vpop.f32.mrb[69].mxu1 }
0x1ada   :  { %v2390_v6 = vpop.f32.mrb[70].mxu1  ;;  %v2526_v1 = vrot.slane %v7474_v7, %v7398_v18 }
0x1adb   :  { %v6385_v10 = vpop.f32.mrb[71].mxu1  ;;  %6752 = vrot.lane.b32.xlu1 %v6751_v63, %s7074_s29 }
0x1b4d   :  { %v6753_v21 = vpop.permute.xlu1 %6752 }
0x1b4e   :  { %v6755_v25 = vunpack.i.h.bf16 %v6753_v21  ;;  %v6754_v27 = vunpack.i.l.bf16 %v6753_v21  ;;  %v6804_v21 = vld [vmem:[%s8346_s5 + $0x30] sm:$0xff]  }
0x1b50   :  { %v2422_v32 = vsel %vm1093_vm5, %v2420_v30, %v6755_v25  ;;  %v2421_v33 = vsel %vm1093_vm5, %v2419_v28, %v6754_v27  ;;  %v6805_v25 = vld [vmem:[%s8346_s5 + $0x38] sm:$0xff]   ;;  %v2545_v27 = vrot.slane %v7474_v7, %v7427_v29 }
0x1b51   :  { %v5943_v36 = vpack.c.bf16 %v2422_v32, %v2421_v33 }
0x1b53   :  { %6391 = vmatmul.mubr.msk.bf16.vlgmr.msra.gmra.mrb[76].mxu0 %vm111_vm1, %v5943_v36 }
0x1b54   :  { %6410 = vmatprep.mubr.msk.bf16.mxu0 %vm7060_vm0, %v7059_v0  ;;  %6403 = vmatpush3.bf16.msra.mxu0 %v6802_v19 }
0x1b55   :  { %6404 = vmatprep.subr.bf16.mxu0 %v7059_v0 }
0x1b58   :  { %6405 = vmatpush3.bf16.msra.mxu0 %v6803_v20 }
0x1b59   :  { %6406 = vmatprep.subr.bf16.mxu0 %v7059_v0 }
0x1b5c   :  { %6407 = vmatpush3.bf16.msra.mxu0 %v6804_v21  ;;  %v6807_v21 = vld [vmem:[%s8343_s2 + $0x28] sm:$0xff]  }
0x1b5d   :  { %6408 = vmatprep.subr.bf16.mxu0 %v7059_v0 }
0x1b60   :  { %6409 = vmatpush3.bf16.msra.mxu0 %v6805_v25 }
0x1b61   :  { %6428 = vmatprep.subr.bf16.mxu0 %v7059_v0 }
0x1c26   :  { %v2488_v17 = vpop.f32.mrb[76].mxu0 }
0x1c27   :  { %v2489_v37 = vadd.f32 %v2488_v17, %v2433_v52  ;;  %v6392_v38 = vpop.f32.mrb[77].mxu0 }
0x1c28   :  { %v2491_v40 = vpop.f32.mrb[78].mxu0 }
0x1c29   :  { %v2492_v41 = vadd.f32 %v2491_v40, %v2433_v52  ;;  %v6393_v22 = vpop.f32.mrb[79].mxu0  ;;  %v2495_v42 = vadd.f32 %v2489_v37, %v7462_v43 }
0x1c2b   :  { %v2496_v45 = vadd.f32 %v2492_v41, %v7464_v44  ;;  %v2497_v46 = vsel %vm111_vm1, %v2495_v42, 0.0 }
0x1c2c   :  { %2498 = vadd.xlane.f32.xlu0 %v2497_v46 }
0x1c2d   :  { %v2500_v47 = vsel %vm111_vm1, %v2496_v45, 0.0 }
0x1c2e   :  { %2501 = vadd.xlane.f32.xlu1 %v2500_v47 }
0x1cb9   :  { %v2499_v48 = vpop.xlane.xlu0 %2498 }
0x1cba   :  { %v2503_v49 = vmul.f32 0.03125, %v2499_v48 }
0x1cbb   :  { %v2502_v50 = vpop.xlane.xlu1 %2501 }
0x1cbc   :  { %v2505_v53 = vsub.f32 %v2495_v42, %v2503_v49  ;;  %v2504_v15 = vmul.f32 0.03125, %v2502_v50 }
0x1cbe   :  { %v2506_v54 = vsub.f32 %v2496_v45, %v2504_v15  ;;  %v2507_v51 = vmul.f32 %v2505_v53, %v2505_v53 }
0x1cc0   :  { %v2509_v24 = vsel %vm111_vm1, %v2507_v51, 0.0  ;;  %v2508_v3 = vmul.f32 %v2506_v54, %v2506_v54 }
0x1cc1   :  { %2510 = vadd.xlane.f32.xlu0 %v2509_v24 }
0x1cc2   :  { %v2512_v4 = vsel %vm111_vm1, %v2508_v3, 0.0 }
0x1cc5   :  { %2513 = vadd.xlane.f32.xlu0 %v2512_v4  ;;  %v2639_v4 = vrot.slane %v7474_v7, %v7435_v23 }
0x1d4e   :  { %v2511_v57 = vpop.xlane.xlu0 %2510 }
0x1d4f   :  { %v2515_v58 = vmul.f32 0.03125, %v2511_v57 }
0x1d51   :  { %v2517_v59 = vadd.f32 1e-12, %v2515_v58 }
0x1d52   :  { %v2514_v60 = vpop.xlane.xlu0 %2513 }
0x1d53   :  { %6912 = vrsqrt.f32 %v2517_v59  ;;  %v2516_v61 = vmul.f32 0.03125, %v2514_v60 }
0x1d55   :  { %v2518_v62 = vadd.f32 1e-12, %v2516_v61 }
0x1d57   :  { %6914 = vrsqrt.f32 %v2518_v62 }
0x1d5d   :  { %v6913_v63 = vpop.eup %6912 }
0x1d5e   :  { %v2521_v5 = vmul.f32 %v6913_v63, %v2505_v53 }
0x1d60   :  { %v2527_v10 = vmul.f32 %v2526_v1, %v2521_v5 }
0x1d61   :  { %v6915_v6 = vpop.eup %6914 }
0x1d62   :  { %v2522_v9 = vmul.f32 %v6915_v6, %v2506_v54  ;;  %v2533_v13 = vadd.f32 %v2532_v11, %v2527_v10 }
0x1d64   :  { %v2528_v12 = vmul.f32 %v2526_v1, %v2522_v9 }
0x1d66   :  { %v2534_v14 = vadd.f32 %v2532_v11, %v2528_v12 }
0x1d68   :  { %v5944_v16 = vpack.c.bf16 %v2534_v14, %v2533_v13 }
0x1d6a   :  { %6399 = vmatmul.mubr.msk.bf16.vlgmr.msra.gmra.mrb[72].mxu1 %vm111_vm1, %v5944_v16 }
0x1d6b   :  { %6418 = vmatprep.mubr.msk.bf16.mxu1 %vm7060_vm0, %v7059_v0 }
0x1e3d   :  { %v2600_v28 = vpop.f32.mrb[72].mxu1 }
0x1e3e   :  { %v2601_v30 = vadd.f32 %v2600_v28, %v2545_v27  ;;  %v6400_v32 = vpop.f32.mrb[73].mxu1 }
0x1e3f   :  { %v2603_v33 = vpop.f32.mrb[74].mxu1 }
0x1e40   :  { %v2607_v36 = vmul.f32 %v2601_v30, %v2601_v30  ;;  %v2604_v52 = vadd.f32 %v2603_v33, %v2545_v27  ;;  %v6401_v17 = vpop.f32.mrb[75].mxu1 }
0x1e42   :  { %v2609_v37 = vmul.f32 %v2607_v36, %v2601_v30  ;;  %v2608_v38 = vmul.f32 %v2604_v52, %v2604_v52  ;;  %v2744_v36 = vrot.slane %v7474_v7, %v7452_v31 }
0x1e44   :  { %v2611_v40 = vmul.f32 0.044715, %v2609_v37  ;;  %v2610_v41 = vmul.f32 %v2608_v38, %v2604_v52 }
0x1e46   :  { %v2613_v22 = vadd.f32 %v2611_v40, %v2601_v30  ;;  %v2612_v42 = vmul.f32 0.044715, %v2610_v41  ;;  %v2750_v41 = vrot.slane %v7474_v7, %v7459_v35 }
0x1e48   :  { %v2615_v45 = vmul.f32 0.7978846, %v2613_v22  ;;  %v2614_v46 = vadd.f32 %v2612_v42, %v2604_v52 }
0x1e4a   :  { %6916 = vtanh.f32 %v2615_v45  ;;  %v2616_v47 = vmul.f32 0.7978846, %v2614_v46 }
0x1e4c   :  { %6918 = vtanh.f32 %v2616_v47  ;;  %v7741_v47 = vld [vmem:[%s8347_s6 + $0x10] sm:$0xff] }
0x1e4d   :  { %v2763_v7 = vrot.slane %v7741_v47, %v7170_v8 }
0x1e54   :  { %v6917_v48 = vpop.eup %6916 }
0x1e55   :  { %v2619_v49 = vadd.f32 1.0, %v6917_v48 }
0x1e56   :  { %v6919_v50 = vpop.eup %6918 }
0x1e57   :  { %v2621_v53 = vmul.f32 0.5, %v2619_v49  ;;  %v2620_v15 = vadd.f32 1.0, %v6919_v50 }
0x1e59   :  { %v2622_v54 = vmul.f32 0.5, %v2620_v15  ;;  %v2623_v51 = vmul.f32 %v2621_v53, %v2601_v30 }
0x1e5b   :  { %v2624_v24 = vmul.f32 %v2622_v54, %v2604_v52 }
0x1e5d   :  { %v5945_v3 = vpack.c.bf16 %v2624_v24, %v2623_v51 }
0x1e5f   :  { %6411 = vmatmul.mubr.msk.bf16.vlgmr.msra.gmra.mrb[80].mxu0 %vm1340_vm6, %v5945_v3 }
0x1e60   :  { %6430 = vmatprep.mubr.msk.bf16.mxu0 %vm7060_vm0, %v7059_v0 }
0x1f32   :  { %v2706_v55 = vpop.f32.mrb[80].mxu0 }
0x1f33   :  { %v2707_v56 = vadd.f32 %v2706_v55, %v2639_v4  ;;  %v6412_v57 = vpop.f32.mrb[81].mxu0 }
0x1f34   :  { %v2709_v58 = vpop.f32.mrb[82].mxu0 }
0x1f35   :  { %v2713_v59 = vadd.f32 %v2707_v56, %v2533_v13  ;;  %v2710_v60 = vadd.f32 %v2709_v58, %v2639_v4  ;;  %v6413_v61 = vpop.f32.mrb[83].mxu0 }
0x1f37   :  { %v2715_v62 = vsel %vm111_vm1, %v2713_v59, 0.0  ;;  %v2714_v63 = vadd.f32 %v2710_v60, %v2534_v14  ;;  %v6806_v14 = vld [vmem:[%s8343_s2 + $0x20] sm:$0xff]  }
0x1f38   :  { %2716 = vadd.xlane.f32.xlu1 %v2715_v62  ;;  %6415 = vmatpush3.bf16.msra.mxu1 %v6806_v14 }
0x1f39   :  { %v2718_v1 = vsel %vm111_vm1, %v2714_v63, 0.0  ;;  %6416 = vmatprep.subr.bf16.mxu1 %v7059_v0 }
0x1f3a   :  { %2719 = vadd.xlane.f32.xlu0 %v2718_v1 }
0x1f3c   :  { %6417 = vmatpush3.bf16.msra.mxu1 %v6807_v21 }
0x1f3d   :  { %6422 = vmatprep.subr.bf16.mxu1 %v7059_v0 }
0x1fc5   :  { %v2717_v5 = vpop.xlane.xlu1 %2716 }
0x1fc6   :  { %v2721_v6 = vmul.f32 0.03125, %v2717_v5 }
0x1fc7   :  { %v2720_v10 = vpop.xlane.xlu0 %2719 }
0x1fc8   :  { %v2723_v9 = vsub.f32 %v2713_v59, %v2721_v6  ;;  %v2722_v11 = vmul.f32 0.03125, %v2720_v10 }
0x1fca   :  { %v2724_v12 = vsub.f32 %v2714_v63, %v2722_v11  ;;  %v2725_v16 = vmul.f32 %v2723_v9, %v2723_v9 }
0x1fcc   :  { %v2727_v19 = vsel %vm111_vm1, %v2725_v16, 0.0  ;;  %v2726_v20 = vmul.f32 %v2724_v12, %v2724_v12 }
0x1fcd   :  { %2728 = vadd.xlane.f32.xlu1 %v2727_v19 }
0x1fce   :  { %v2730_v13 = vsel %vm111_vm1, %v2726_v20, 0.0 }
0x1fcf   :  { %2731 = vadd.xlane.f32.xlu0 %v2730_v13 }
0x205a   :  { %v2729_v25 = vpop.xlane.xlu1 %2728 }
0x205b   :  { %v2733_v27 = vmul.f32 0.03125, %v2729_v25 }
0x205c   :  { %v2732_v28 = vpop.xlane.xlu0 %2731 }
0x205d   :  { %v2735_v30 = vadd.f32 1e-12, %v2733_v27  ;;  %v2734_v32 = vmul.f32 0.03125, %v2732_v28 }
0x205f   :  { %6920 = vrsqrt.f32 %v2735_v30  ;;  %v2736_v33 = vadd.f32 1e-12, %v2734_v32 }
0x2061   :  { %6922 = vrsqrt.f32 %v2736_v33 }
0x2069   :  { %v6921_v52 = vpop.eup %6920 }
0x206a   :  { %v2739_v17 = vmul.f32 %v6921_v52, %v2723_v9 }
0x206b   :  { %v6923_v37 = vpop.eup %6922 }
0x206c   :  { %v2745_v38 = vmul.f32 %v2744_v36, %v2739_v17  ;;  %v2740_v40 = vmul.f32 %v6923_v37, %v2724_v12 }
0x206e   :  { %v2746_v22 = vmul.f32 %v2744_v36, %v2740_v40  ;;  %v7729_v42 = vadd.f32 %v2750_v41, %v2745_v38 }
0x2070   :  { %v7731_v45 = vadd.f32 %v2750_v41, %v2746_v22 }
0x2072   :  { %v5946_v46 = vpack.c.bf16 %v7731_v45, %v7729_v42 }
0x2074   :  { %6419 = vmatmul.mubr.msk.bf16.vlgmr.msra.gmra.mrb[76].mxu1 %vm111_vm1, %v5946_v46 }
0x2075   :  { %6424 = vmatprep.mubr.msk.bf16.mxu1 %vm7060_vm0, %v7059_v0 }
0x2147   :  { %v2818_v48 = vpop.f32.mrb[76].mxu1 }
0x2148   :  { %v2819_v49 = vadd.f32 %v2818_v48, %v2763_v7  ;;  %v6420_v50 = vpop.f32.mrb[77].mxu1 }
0x2149   :  { %v2821_v53 = vpop.f32.mrb[78].mxu1 }
0x214a   :  { %v7745_v15 = vpack.c.bf16 %v2819_v49, %v2819_v49  ;;  %v2822_v54 = vadd.f32 %v2821_v53, %v2763_v7  ;;  %v6421_v51 = vpop.f32.mrb[79].mxu1 }
0x214c   :  { %v7747_v24 = vpack.c.bf16 %v2822_v54, %v2822_v54  ;;  %2828 = vrot.lane.b32.xlu1 %v7745_v15, %s7061_s12 }
0x214e   :  { %2877 = vrot.lane.b32.xlu0 %v7747_v24, %s7061_s12 }
0x21be   :  { %v2829_v3 = vpop.permute.xlu1 %2828 }
0x21bf   :  { %v2834_v4 = vsel %vm161_vm2, %v2829_v3, 0 }
0x21c0   :  { %6423 = vmatpush3.bf16.xpose.msra.mxu1 %v2834_v4  ;;  %v2878_v55 = vpop.permute.xlu0 %2877 }
0x21c1   :  { %v2883_v56 = vsel %vm161_vm2, %v2878_v55, 0  ;;  %6434 = vmatprep.subr.bf16.mxu1 %v7059_v0 }
0x21c2   :  { %6429 = vmatpush3.bf16.xpose.msra.mxu0 %v2883_v56 }
0x21c3   :  { %6440 = vmatprep.subr.bf16.mxu0 %v7059_v0 }
0x21c7   :  { %6425 = vmatmul.mubr.msk.bf16.vlgmr.msra.gmra.mrb[80].mxu1 %vm161_vm2, %v7745_v15 }
0x21c8   :  { %6436 = vmatprep.mubr.msk.bf16.mxu1 %vm7060_vm0, %v7059_v0 }
0x21c9   :  { %6431 = vmatmul.mubr.msk.bf16.vlgmr.msra.gmra.mrb[84].mxu0 %vm161_vm2, %v7747_v24 }
0x21ca   :  { %6442 = vmatprep.mubr.msk.bf16.mxu0 %vm7060_vm0, %v7059_v0 }
0x229a   :  { %v2870_v57 = vpop.f32.mrb[80].mxu1 }
0x229b   :  { %v2925_v58 = vmul.f32 0.35355338, %v2870_v57  ;;  %v6426_v59 = vpop.f32.mrb[81].mxu1 }
0x229c   :  { %v2873_v60 = vpop.f32.mrb[82].mxu1  ;;  %v2919_v61 = vpop.f32.mrb[84].mxu0 }
0x229d   :  { %v2927_v62 = vadd.f32 %v2925_v58, %v7204_v34  ;;  %v2926_v63 = vmul.f32 0.35355338, %v2919_v61  ;;  %v6427_v1 = vpop.f32.mrb[83].mxu1  ;;  %v6432_v5 = vpop.f32.mrb[85].mxu0 }
0x229e   :  { %v2922_v6 = vpop.f32.mrb[86].mxu0 }
0x229f   :  { %v6433_v10 = vpop.f32.mrb[87].mxu0  ;;  %v2929_v9 = vsel %vm161_vm2, %v2927_v62, -inf  ;;  %v2928_v11 = vadd.f32 %v2926_v63, %v7207_v39 }
0x22a0   :  { %2930 = vmax.xlane.f32.xlu1 %v2929_v9 }
0x22a1   :  { %v2932_v12 = vsel %vm161_vm2, %v2928_v11, -inf }
0x22a2   :  { %2933 = vmax.xlane.f32.xlu0 %v2932_v12 }
0x22b1   :  { %2953 = vrot.lane.b32.xlu1 %v7745_v15, %s7063_s1 }
0x232d   :  { %v2931_v16 = vpop.xlane.xlu1 %2930 }
0x232e   :  { %v2935_v19 = vsub.f32 %v2927_v62, %v2931_v16 }
0x232f   :  { %v2934_v20 = vpop.xlane.xlu0 %2933 }
0x2330   :  { %v2937_v13 = vmul.f32 1.442695, %v2935_v19  ;;  %v2936_v14 = vsub.f32 %v2928_v11, %v2934_v20 }
0x2331   :  { %v2954_v21 = vpop.permute.xlu1 %2953 }
0x2332   :  { %6924 = vpow2.f32 %v2937_v13  ;;  %v2939_v25 = vmul.f32 1.442695, %v2936_v14  ;;  %v2959_v27 = vsel %vm300_vm3, %v2954_v21, 0 }
0x2333   :  { %6435 = vmatpush3.bf16.msra.mxu1 %v2959_v27 }
0x2334   :  { %6926 = vpow2.f32 %v2939_v25  ;;  %6446 = vmatprep.subr.bf16.mxu1 %v7059_v0 }
0x233c   :  { %v6925_v28 = vpop.eup %6924 }
0x233d   :  { %v2941_v30 = vsel %vm161_vm2, %v6925_v28, 0.0 }
0x233e   :  { %v6927_v32 = vpop.eup %6926  ;;  %2942 = vadd.xlane.f32.xlu1 %v2941_v30 }
0x233f   :  { %v2944_v33 = vsel %vm161_vm2, %v6927_v32, 0.0 }
0x2340   :  { %2945 = vadd.xlane.f32.xlu0 %v2944_v33 }
0x234f   :  { %3051 = vrot.lane.b32.xlu1 %v7745_v15, %s7064_s15 }
0x2353   :  { %3101 = vrot.lane.b32.xlu1 %v7747_v24, %s7064_s15 }
0x2356   :  { %3001 = vrot.lane.b32.xlu0 %v7747_v24, %s7063_s1 }
0x2357   :  { %3099 = vrot.lane.b32.xlu1 %v7747_v24, %s7065_s16 }
0x235a   :  { %3049 = vrot.lane.b32.xlu0 %v7745_v15, %s7065_s16 }
0x23cb   :  { %v2943_v36 = vpop.xlane.xlu1 %2942 }
0x23cc   :  { %6928 = vrcp.f32 %v2943_v36 }
0x23cd   :  { %v2946_v52 = vpop.xlane.xlu0 %2945 }
0x23ce   :  { %6930 = vrcp.f32 %v2946_v52 }
0x23cf   :  { %v3052_v38 = vpop.permute.xlu1 %3051 }
0x23d0   :  { %v3057_v49 = vsel %vm161_vm2, %v3052_v38, 0 }
0x23d1   :  { %v3002_v17 = vpop.permute.xlu0 %3001 }
0x23d2   :  { %v3007_v37 = vsel %vm300_vm3, %v3002_v17, 0 }
0x23d3   :  { %6441 = vmatpush3.bf16.msra.mxu0 %v3007_v37  ;;  %v3102_v48 = vpop.permute.xlu1 %3101 }
0x23d4   :  { %6452 = vmatprep.subr.bf16.mxu0 %v7059_v0  ;;  %v3107_v53 = vsel %vm161_vm2, %v3102_v48, 0 }
0x23d5   :  { %v3050_v54 = vpop.permute.xlu0 %3049 }
0x23d6   :  { %v6929_v40 = vpop.eup %6928 }
0x23d7   :  { %v2949_v41 = vmul.f32 %v6929_v40, %v6925_v28  ;;  %v3100_v51 = vpop.permute.xlu1 %3099 }
0x23d8   :  { %v6931_v22 = vpop.eup %6930 }
0x23d9   :  { %v2951_v46 = vpack.c.bf16 %v2949_v41, %v2949_v41  ;;  %v2950_v7 = vmul.f32 %v6931_v22, %v6927_v32 }
0x23db   :  { %6437 = vmatmul.mubr.msk.bf16.vlgmr.msra.gmra.mrb[84].mxu1 %vm161_vm2, %v2951_v46  ;;  %v2952_v50 = vpack.c.bf16 %v2950_v7, %v2950_v7 }
0x23dc   :  { %6447 = vmatpush3.bf16.xpose.msra.mxu1 %v3057_v49  ;;  %6448 = vmatprep.mubr.msk.bf16.mxu1 %vm7060_vm0, %v7059_v0 }
0x23dd   :  { %6443 = vmatmul.mubr.msk.bf16.vlgmr.msra.gmra.mrb[88].mxu0 %vm161_vm2, %v2952_v50  ;;  %6458 = vmatprep.subr.bf16.mxu1 %v7059_v0 }
0x23de   :  { %6453 = vmatpush3.bf16.xpose.msra.mxu0 %v3107_v53  ;;  %6454 = vmatprep.mubr.msk.bf16.mxu0 %vm7060_vm0, %v7059_v0 }
0x23df   :  { %6464 = vmatprep.subr.bf16.mxu0 %v7059_v0 }
0x23e3   :  { %6449 = vmatmul.mubr.msk.bf16.vlgmr.msra.gmra.mrb[88].mxu1 %vm161_vm2, %v3050_v54 }
0x23e4   :  { %6460 = vmatprep.mubr.msk.bf16.mxu1 %vm7060_vm0, %v7059_v0 }
0x23e5   :  { %6455 = vmatmul.mubr.msk.bf16.vlgmr.msra.gmra.mrb[92].mxu0 %vm161_vm2, %v3100_v51 }
0x23e6   :  { %6466 = vmatprep.mubr.msk.bf16.mxu0 %vm7060_vm0, %v7059_v0 }
0x24ae   :  { %v7803_v3 = vpop.f32.mrb[84].mxu1 }
0x24af   :  { %v6438_v4 = vpop.f32.mrb[85].mxu1 }
0x24b0   :  { %v2998_v55 = vpop.f32.mrb[86].mxu1  ;;  %v7805_v56 = vpop.f32.mrb[88].mxu0 }
0x24b1   :  { %v6439_v57 = vpop.f32.mrb[87].mxu1  ;;  %v6444_v58 = vpop.f32.mrb[89].mxu0 }
0x24b2   :  { %v3046_v59 = vpop.f32.mrb[90].mxu0 }
0x24b3   :  { %v6445_v60 = vpop.f32.mrb[91].mxu0 }
0x24b6   :  { %v3093_v61 = vpop.f32.mrb[88].mxu1 }
0x24b7   :  { %v3149_v62 = vmul.f32 0.35355338, %v3093_v61  ;;  %v6450_v63 = vpop.f32.mrb[89].mxu1 }
0x24b8   :  { %v3096_v1 = vpop.f32.mrb[90].mxu1  ;;  %v3143_v5 = vpop.f32.mrb[92].mxu0 }
0x24b9   :  { %v3151_v6 = vadd.f32 %v3149_v62, %v7204_v34  ;;  %v3150_v10 = vmul.f32 0.35355338, %v3143_v5  ;;  %v6451_v9 = vpop.f32.mrb[91].mxu1  ;;  %v6456_v11 = vpop.f32.mrb[93].mxu0 }
0x24ba   :  { %v3146_v12 = vpop.f32.mrb[94].mxu0 }
0x24bb   :  { %v3152_v16 = vadd.f32 %v3150_v10, %v7207_v39  ;;  %v6457_v19 = vpop.f32.mrb[95].mxu0  ;;  %v3153_v20 = vsel %vm161_vm2, %v3151_v6, -inf }
0x24bc   :  { %3154 = vmax.xlane.f32.xlu0 %v3153_v20 }
0x24bd   :  { %v3156_v13 = vsel %vm161_vm2, %v3152_v16, -inf }
0x24be   :  { %3157 = vmax.xlane.f32.xlu1 %v3156_v13 }
0x24cf   :  { %3177 = vrot.lane.b32.xlu1 %v7745_v15, %s7066_s17 }
0x24d3   :  { %3275 = vrot.lane.b32.xlu1 %v7745_v15, %s7067_s18 }
0x24d7   :  { %3325 = vrot.lane.b32.xlu1 %v7747_v24, %s7067_s18 }
0x24db   :  { %3323 = vrot.lane.b32.xlu1 %v7747_v24, %s7068_s19 }
0x2549   :  { %v3155_v14 = vpop.xlane.xlu0 %3154 }
0x254a   :  { %v3159_v21 = vsub.f32 %v3151_v6, %v3155_v14 }
0x254b   :  { %v3158_v25 = vpop.xlane.xlu1 %3157 }
0x254c   :  { %v3161_v27 = vmul.f32 1.442695, %v3159_v21  ;;  %v3160_v28 = vsub.f32 %v3152_v16, %v3158_v25 }
0x254e   :  { %6932 = vpow2.f32 %v3161_v27  ;;  %v3163_v30 = vmul.f32 1.442695, %v3160_v28 }
0x254f   :  { %v3178_v32 = vpop.permute.xlu1 %3177 }
0x2550   :  { %6934 = vpow2.f32 %v3163_v30  ;;  %v3183_v33 = vsel %vm300_vm3, %v3178_v32, 0 }
0x2551   :  { %6459 = vmatpush3.bf16.msra.mxu1 %v3183_v33 }
0x2552   :  { %6470 = vmatprep.subr.bf16.mxu1 %v7059_v0 }
0x2553   :  { %v3276_v7 = vpop.permute.xlu1 %3275 }
0x2554   :  { %v3281_v53 = vsel %vm161_vm2, %v3276_v7, 0 }
0x2557   :  { %v3326_v51 = vpop.permute.xlu1 %3325 }
0x2558   :  { %v6933_v36 = vpop.eup %6932  ;;  %v3331_v55 = vsel %vm161_vm2, %v3326_v51, 0 }
0x2559   :  { %v3165_v52 = vsel %vm161_vm2, %v6933_v36, 0.0 }
0x255a   :  { %v6935_v17 = vpop.eup %6934  ;;  %3166 = vadd.xlane.f32.xlu0 %v3165_v52 }
0x255b   :  { %v3168_v37 = vsel %vm161_vm2, %v6935_v17, 0.0  ;;  %v3324_v58 = vpop.permute.xlu1 %3323 }
0x255e   :  { %3169 = vadd.xlane.f32.xlu0 %v3168_v37 }
0x2574   :  { %3225 = vrot.lane.b32.xlu0 %v7747_v24, %s7066_s17 }
0x2578   :  { %3273 = vrot.lane.b32.xlu0 %v7745_v15, %s7068_s19 }
0x25e7   :  { %v3167_v38 = vpop.xlane.xlu0 %3166 }
0x25e8   :  { %6936 = vrcp.f32 %v3167_v38 }
0x25eb   :  { %v3170_v40 = vpop.xlane.xlu0 %3169 }
0x25ec   :  { %6938 = vrcp.f32 %v3170_v40 }
0x25ef   :  { %v3226_v41 = vpop.permute.xlu0 %3225 }
0x25f0   :  { %v3231_v22 = vsel %vm300_vm3, %v3226_v41, 0 }
0x25f1   :  { %6465 = vmatpush3.bf16.msra.mxu0 %v3231_v22 }
0x25f2   :  { %v6937_v46 = vpop.eup %6936  ;;  %6476 = vmatprep.subr.bf16.mxu0 %v7059_v0 }
0x25f3   :  { %v3173_v48 = vmul.f32 %v6937_v46, %v6933_v36  ;;  %v3274_v57 = vpop.permute.xlu0 %3273 }
0x25f5   :  { %v3175_v49 = vpack.c.bf16 %v3173_v48, %v3173_v48 }
0x25f6   :  { %v6939_v50 = vpop.eup %6938 }
0x25f7   :  { %v3174_v54 = vmul.f32 %v6939_v50, %v6935_v17  ;;  %6461 = vmatmul.mubr.msk.bf16.vlgmr.msra.gmra.mrb[92].mxu1 %vm161_vm2, %v3175_v49 }
0x25f8   :  { %6471 = vmatpush3.bf16.xpose.msra.mxu1 %v3281_v53  ;;  %6472 = vmatprep.mubr.msk.bf16.mxu1 %vm7060_vm0, %v7059_v0 }
0x25f9   :  { %v3176_v4 = vpack.c.bf16 %v3174_v54, %v3174_v54  ;;  %6482 = vmatprep.subr.bf16.mxu1 %v7059_v0 }
0x25fb   :  { %6467 = vmatmul.mubr.msk.bf16.vlgmr.msra.gmra.mrb[96].mxu0 %vm161_vm2, %v3176_v4 }
0x25fc   :  { %6477 = vmatpush3.bf16.xpose.msra.mxu0 %v3331_v55  ;;  %6478 = vmatprep.mubr.msk.bf16.mxu0 %vm7060_vm0, %v7059_v0 }
0x25fd   :  { %6488 = vmatprep.subr.bf16.mxu0 %v7059_v0 }
0x25ff   :  { %6473 = vmatmul.mubr.msk.bf16.vlgmr.msra.gmra.mrb[96].mxu1 %vm161_vm2, %v3274_v57 }
0x2600   :  { %6484 = vmatprep.mubr.msk.bf16.mxu1 %vm7060_vm0, %v7059_v0 }
0x2603   :  { %6479 = vmatmul.mubr.msk.bf16.vlgmr.msra.gmra.mrb[100].mxu0 %vm161_vm2, %v3324_v58 }
0x2604   :  { %6490 = vmatprep.mubr.msk.bf16.mxu0 %vm7060_vm0, %v7059_v0 }
0x26ca   :  { %v7845_v59 = vpop.f32.mrb[92].mxu1 }
0x26cb   :  { %v6462_v60 = vpop.f32.mrb[93].mxu1 }
0x26cc   :  { %v3222_v61 = vpop.f32.mrb[94].mxu1 }
0x26cd   :  { %v6463_v62 = vpop.f32.mrb[95].mxu1 }
0x26ce   :  { %v7847_v63 = vpop.f32.mrb[96].mxu0 }
0x26cf   :  { %v6756_v1 = vpack.i.bf16 %v7847_v63, %v7845_v59  ;;  %v6468_v5 = vpop.f32.mrb[97].mxu0 }
0x26d0   :  { %v3270_v6 = vpop.f32.mrb[98].mxu0 }
0x26d1   :  { %v6469_v10 = vpop.f32.mrb[99].mxu0 }
0x26d2   :  { %v3317_v9 = vpop.f32.mrb[96].mxu1 }
0x26d3   :  { %v3373_v11 = vmul.f32 0.35355338, %v3317_v9  ;;  %v6474_v12 = vpop.f32.mrb[97].mxu1 }
0x26d4   :  { %v3320_v16 = vpop.f32.mrb[98].mxu1 }
0x26d5   :  { %v3375_v19 = vadd.f32 %v3373_v11, %v7204_v34  ;;  %v6475_v20 = vpop.f32.mrb[99].mxu1 }
0x26d6   :  { %v3367_v13 = vpop.f32.mrb[100].mxu0 }
0x26d7   :  { %v3374_v14 = vmul.f32 0.35355338, %v3367_v13  ;;  %v6480_v21 = vpop.f32.mrb[101].mxu0  ;;  %v3377_v25 = vsel %vm161_vm2, %v3375_v19, -inf }
0x26d8   :  { %3378 = vmax.xlane.f32.xlu0 %v3377_v25  ;;  %v3370_v27 = vpop.f32.mrb[102].mxu0 }
0x26d9   :  { %v3376_v28 = vadd.f32 %v3374_v14, %v7207_v39  ;;  %v6481_v30 = vpop.f32.mrb[103].mxu0 }
0x26db   :  { %v3380_v32 = vsel %vm161_vm2, %v3376_v28, -inf }
0x26dc   :  { %3381 = vmax.xlane.f32.xlu1 %v3380_v32 }
0x26ed   :  { %3401 = vrot.lane.b32.xlu1 %v7745_v15, %s7069_s20 }
0x26f1   :  { %3499 = vrot.lane.b32.xlu1 %v7745_v15, %s7070_s21 }
0x26f5   :  { %3549 = vrot.lane.b32.xlu1 %v7747_v24, %s7070_s21 }
0x26f9   :  { %3547 = vrot.lane.b32.xlu1 %v7747_v24, %s7071_s22 }
0x2765   :  { %v3379_v33 = vpop.xlane.xlu0 %3378 }
0x2766   :  { %v3383_v36 = vsub.f32 %v3375_v19, %v3379_v33 }
0x2768   :  { %v3385_v52 = vmul.f32 1.442695, %v3383_v36 }
0x2769   :  { %v3382_v17 = vpop.xlane.xlu1 %3381 }
0x276a   :  { %6940 = vpow2.f32 %v3385_v52  ;;  %v3384_v37 = vsub.f32 %v3376_v28, %v3382_v17 }
0x276c   :  { %v3387_v38 = vmul.f32 1.442695, %v3384_v37 }
0x276d   :  { %v3402_v40 = vpop.permute.xlu1 %3401 }
0x276e   :  { %6942 = vpow2.f32 %v3387_v38  ;;  %v3407_v41 = vsel %vm300_vm3, %v3402_v40, 0 }
0x276f   :  { %6483 = vmatpush3.bf16.msra.mxu1 %v3407_v41 }
0x2770   :  { %6494 = vmatprep.subr.bf16.mxu1 %v7059_v0 }
0x2771   :  { %v3500_v4 = vpop.permute.xlu1 %3499 }
0x2772   :  { %v3505_v60 = vsel %vm161_vm2, %v3500_v4, 0 }
0x2774   :  { %v6941_v22 = vpop.eup %6940 }
0x2775   :  { %v3389_v46 = vsel %vm161_vm2, %v6941_v22, 0.0  ;;  %v3550_v62 = vpop.permute.xlu1 %3549 }
0x2776   :  { %3390 = vadd.xlane.f32.xlu0 %v3389_v46  ;;  %v3555_v6 = vsel %vm161_vm2, %v3550_v62, 0 }
0x2778   :  { %v6943_v7 = vpop.eup %6942 }
0x2779   :  { %v3392_v48 = vsel %vm161_vm2, %v6943_v7, 0.0  ;;  %v3548_v9 = vpop.permute.xlu1 %3547 }
0x277a   :  { %3393 = vadd.xlane.f32.xlu0 %v3392_v48 }
0x2790   :  { %3449 = vrot.lane.b32.xlu0 %v7747_v24, %s7069_s20 }
0x2794   :  { %3497 = vrot.lane.b32.xlu0 %v7745_v15, %s7071_s22 }
0x2803   :  { %v3391_v49 = vpop.xlane.xlu0 %3390 }
0x2804   :  { %6944 = vrcp.f32 %v3391_v49 }
0x2807   :  { %v3394_v50 = vpop.xlane.xlu0 %3393 }
0x2808   :  { %6946 = vrcp.f32 %v3394_v50 }
0x280b   :  { %v3450_v53 = vpop.permute.xlu0 %3449 }
0x280c   :  { %v3455_v54 = vsel %vm300_vm3, %v3450_v53, 0 }
0x280d   :  { %6489 = vmatpush3.bf16.msra.mxu0 %v3455_v54 }
0x280e   :  { %v6945_v51 = vpop.eup %6944  ;;  %6500 = vmatprep.subr.bf16.mxu0 %v7059_v0 }
0x280f   :  { %v3397_v55 = vmul.f32 %v6945_v51, %v6941_v22  ;;  %v3498_v10 = vpop.permute.xlu0 %3497 }
0x2811   :  { %v3399_v57 = vpack.c.bf16 %v3397_v55, %v3397_v55 }
0x2812   :  { %v6947_v58 = vpop.eup %6946 }
0x2813   :  { %v3398_v61 = vmul.f32 %v6947_v58, %v6943_v7  ;;  %6485 = vmatmul.mubr.msk.bf16.vlgmr.msra.gmra.mrb[100].mxu1 %vm161_vm2, %v3399_v57 }
0x2814   :  { %6495 = vmatpush3.bf16.xpose.msra.mxu1 %v3505_v60  ;;  %6496 = vmatprep.mubr.msk.bf16.mxu1 %vm7060_vm0, %v7059_v0 }
0x2815   :  { %v3400_v5 = vpack.c.bf16 %v3398_v61, %v3398_v61  ;;  %6506 = vmatprep.subr.bf16.mxu1 %v7059_v0 }
0x2817   :  { %6491 = vmatmul.mubr.msk.bf16.vlgmr.msra.gmra.mrb[104].mxu0 %vm161_vm2, %v3400_v5 }
0x2818   :  { %6501 = vmatpush3.bf16.xpose.msra.mxu0 %v3555_v6  ;;  %6502 = vmatprep.mubr.msk.bf16.mxu0 %vm7060_vm0, %v7059_v0 }
0x2819   :  { %6512 = vmatprep.subr.bf16.mxu0 %v7059_v0 }
0x281b   :  { %6497 = vmatmul.mubr.msk.bf16.vlgmr.msra.gmra.mrb[104].mxu1 %vm161_vm2, %v3498_v10 }
0x281c   :  { %6508 = vmatprep.mubr.msk.bf16.mxu1 %vm7060_vm0, %v7059_v0 }
0x281f   :  { %6503 = vmatmul.mubr.msk.bf16.vlgmr.msra.gmra.mrb[108].mxu0 %vm161_vm2, %v3548_v9  ;;  %v6808_v9 = vld [vmem:[%s8344_s3 + $0x20] sm:$0xff]  }
0x2820   :  { %6514 = vmatprep.mubr.msk.bf16.mxu0 %vm7060_vm0, %v7059_v0 }
0x28e6   :  { %v3443_v11 = vpop.f32.mrb[100].mxu1 }
0x28e7   :  { %v6486_v12 = vpop.f32.mrb[101].mxu1 }
0x28e8   :  { %v3446_v16 = vpop.f32.mrb[102].mxu1 }
0x28e9   :  { %v6487_v19 = vpop.f32.mrb[103].mxu1 }
0x28ea   :  { %v3491_v20 = vpop.f32.mrb[104].mxu0 }
0x28eb   :  { %v6761_v13 = vpack.i.bf16 %v3491_v20, %v3443_v11  ;;  %v6492_v14 = vpop.f32.mrb[105].mxu0  ;;  %v6809_v11 = vld [vmem:[%s8344_s3 + $0x28] sm:$0xff]  }
0x28ec   :  { %v3494_v21 = vpop.f32.mrb[106].mxu0 }
0x28ed   :  { %v6493_v25 = vpop.f32.mrb[107].mxu0 }
0x28ee   :  { %v3541_v27 = vpop.f32.mrb[104].mxu1 }
0x28ef   :  { %v3597_v28 = vmul.f32 0.35355338, %v3541_v27  ;;  %v6498_v30 = vpop.f32.mrb[105].mxu1 }
0x28f0   :  { %v3544_v32 = vpop.f32.mrb[106].mxu1 }
0x28f1   :  { %v3599_v33 = vadd.f32 %v3597_v28, %v7204_v34  ;;  %v6499_v36 = vpop.f32.mrb[107].mxu1 }
0x28f2   :  { %v3591_v52 = vpop.f32.mrb[108].mxu0 }
0x28f3   :  { %v3598_v17 = vmul.f32 0.35355338, %v3591_v52  ;;  %v6504_v37 = vpop.f32.mrb[109].mxu0  ;;  %v3601_v38 = vsel %vm161_vm2, %v3599_v33, -inf }
0x28f4   :  { %3602 = vmax.xlane.f32.xlu0 %v3601_v38  ;;  %v3594_v40 = vpop.f32.mrb[110].mxu0 }
0x28f5   :  { %v3600_v41 = vadd.f32 %v3598_v17, %v7207_v39  ;;  %v6505_v22 = vpop.f32.mrb[111].mxu0 }
0x28f7   :  { %v3604_v46 = vsel %vm161_vm2, %v3600_v41, -inf }
0x28f8   :  { %3605 = vmax.xlane.f32.xlu1 %v3604_v46 }
0x2909   :  { %3625 = vrot.lane.b32.xlu1 %v7745_v15, %s7072_s23 }
0x290d   :  { %6757 = vrot.lane.b32.xlu1 %v6756_v1, %s7058_s24 }
0x2911   :  { %6762 = vrot.lane.b32.xlu1 %v6761_v13, %s7073_s25 }
0x2981   :  { %v3603_v7 = vpop.xlane.xlu0 %3602 }
0x2982   :  { %v3607_v48 = vsub.f32 %v3599_v33, %v3603_v7 }
0x2984   :  { %v3609_v49 = vmul.f32 1.442695, %v3607_v48 }
0x2985   :  { %v3606_v50 = vpop.xlane.xlu1 %3605 }
0x2986   :  { %6948 = vpow2.f32 %v3609_v49  ;;  %v3608_v53 = vsub.f32 %v3600_v41, %v3606_v50 }
0x2988   :  { %v3611_v54 = vmul.f32 1.442695, %v3608_v53 }
0x2989   :  { %v3626_v51 = vpop.permute.xlu1 %3625 }
0x298a   :  { %6950 = vpow2.f32 %v3611_v54  ;;  %v3631_v4 = vsel %vm300_vm3, %v3626_v51, 0 }
0x298b   :  { %6507 = vmatpush3.bf16.msra.mxu1 %v3631_v4 }
0x298c   :  { %6518 = vmatprep.subr.bf16.mxu1 %v7059_v0 }
0x298d   :  { %v6758_v28 = vpop.permute.xlu1 %6757 }
0x298e   :  { %v6760_v32 = vunpack.i.h.bf16 %v6758_v28  ;;  %v6759_v33 = vunpack.i.l.bf16 %v6758_v28 }
0x2990   :  { %v6949_v15 = vpop.eup %6948  ;;  %v3746_v37 = vsel %vm161_vm2, %v7805_v56, %v6760_v32  ;;  %v3745_v38 = vsel %vm161_vm2, %v7803_v3, %v6759_v33  ;;  %v3761_v56 = vrot.slane %v7741_v47, %v7379_v26  ;;  %v3860_v33 = vrot.slane %v7741_v47, %v7403_v2 }
0x2991   :  { %v3613_v59 = vsel %vm161_vm2, %v6949_v15, 0.0  ;;  %v6763_v30 = vpop.permute.xlu1 %6762 }
0x2992   :  { %3614 = vadd.xlane.f32.xlu0 %v3613_v59  ;;  %v6765_v36 = vunpack.i.h.bf16 %v6763_v30  ;;  %v6764_v52 = vunpack.i.l.bf16 %v6763_v30 }
0x2994   :  { %v6951_v63 = vpop.eup %6950  ;;  %v3747_v22 = vsel %vm1090_vm4, %v3745_v38, %v6764_v52  ;;  %v3748_v46 = vsel %vm1090_vm4, %v3746_v37, %v6765_v36  ;;  %v6812_v38 = vld [vmem:[%s8346_s5 + $0x40] sm:$0xff]  }
0x2995   :  { %v3616_v1 = vsel %vm161_vm2, %v6951_v63, 0.0 }
0x2996   :  { %3617 = vadd.xlane.f32.xlu0 %v3616_v1 }
0x29ac   :  { %3673 = vrot.lane.b32.xlu0 %v7747_v24, %s7072_s23 }
0x2a1f   :  { %v3615_v55 = vpop.xlane.xlu0 %3614 }
0x2a20   :  { %6952 = vrcp.f32 %v3615_v55 }
0x2a23   :  { %v3618_v57 = vpop.xlane.xlu0 %3617 }
0x2a24   :  { %6954 = vrcp.f32 %v3618_v57 }
0x2a27   :  { %v3674_v58 = vpop.permute.xlu0 %3673 }
0x2a28   :  { %v3679_v60 = vsel %vm300_vm3, %v3674_v58, 0 }
0x2a29   :  { %6513 = vmatpush3.bf16.msra.mxu0 %v3679_v60 }
0x2a2a   :  { %v6953_v61 = vpop.eup %6952  ;;  %6526 = vmatprep.subr.bf16.mxu0 %v7059_v0 }
0x2a2b   :  { %v3621_v62 = vmul.f32 %v6953_v61, %v6949_v15 }
0x2a2d   :  { %v3623_v5 = vpack.c.bf16 %v3621_v62, %v3621_v62 }
0x2a2e   :  { %v6955_v6 = vpop.eup %6954 }
0x2a2f   :  { %v3622_v10 = vmul.f32 %v6955_v6, %v6951_v63  ;;  %6509 = vmatmul.mubr.msk.bf16.vlgmr.msra.gmra.mrb[108].mxu1 %vm161_vm2, %v3623_v5 }
0x2a30   :  { %6522 = vmatprep.mubr.msk.bf16.mxu1 %vm7060_vm0, %v7059_v0  ;;  %6519 = vmatpush3.bf16.msra.mxu1 %v6808_v9  ;;  %v6810_v9 = vld [vmem:[%s8345_s4 + $0x20] sm:$0xff]  }
0x2a31   :  { %v3624_v24 = vpack.c.bf16 %v3622_v10, %v3622_v10  ;;  %6520 = vmatprep.subr.bf16.mxu1 %v7059_v0 }
0x2a33   :  { %6515 = vmatmul.mubr.msk.bf16.vlgmr.msra.gmra.mrb[112].mxu0 %vm161_vm2, %v3624_v24 }
0x2a34   :  { %6530 = vmatprep.mubr.msk.bf16.mxu0 %vm7060_vm0, %v7059_v0  ;;  %6521 = vmatpush3.bf16.msra.mxu1 %v6809_v11  ;;  %v6811_v11 = vld [vmem:[%s8345_s4 + $0x28] sm:$0xff]  }
0x2a35   :  { %6534 = vmatprep.subr.bf16.mxu1 %v7059_v0  ;;  %6527 = vmatpush3.bf16.msra.mxu0 %v6810_v9 }
0x2a36   :  { %6528 = vmatprep.subr.bf16.mxu0 %v7059_v0 }
0x2a39   :  { %6529 = vmatpush3.bf16.msra.mxu0 %v6811_v11  ;;  %v3967_v11 = vrot.slane %v7741_v47, %v7435_v23 }
0x2a3a   :  { %6546 = vmatprep.subr.bf16.mxu0 %v7059_v0 }
0x2b02   :  { %v3667_v12 = vpop.f32.mrb[108].mxu1 }
0x2b03   :  { %v6510_v16 = vpop.f32.mrb[109].mxu1 }
0x2b04   :  { %v3670_v19 = vpop.f32.mrb[110].mxu1 }
0x2b05   :  { %v6511_v20 = vpop.f32.mrb[111].mxu1 }
0x2b06   :  { %v3715_v13 = vpop.f32.mrb[112].mxu0 }
0x2b07   :  { %v6766_v14 = vpack.i.bf16 %v3715_v13, %v3667_v12  ;;  %v6516_v21 = vpop.f32.mrb[113].mxu0 }
0x2b08   :  { %v3718_v25 = vpop.f32.mrb[114].mxu0  ;;  %v3854_v21 = vrot.slane %v7741_v47, %v7398_v18 }
0x2b09   :  { %6767 = vrot.lane.b32.xlu0 %v6766_v14, %s7074_s29  ;;  %v6517_v27 = vpop.f32.mrb[115].mxu0 }
0x2b7b   :  { %v6768_v17 = vpop.permute.xlu0 %6767 }
0x2b7c   :  { %v6770_v40 = vunpack.i.h.bf16 %v6768_v17  ;;  %v6769_v41 = vunpack.i.l.bf16 %v6768_v17 }
0x2b7e   :  { %v3750_v7 = vsel %vm1093_vm5, %v3748_v46, %v6770_v40  ;;  %v3749_v48 = vsel %vm1093_vm5, %v3747_v22, %v6769_v41  ;;  %v6813_v40 = vld [vmem:[%s8346_s5 + $0x48] sm:$0xff]   ;;  %v6814_v41 = vld [vmem:[%s8346_s5 + $0x50] sm:$0xff]   ;;  %v6815_v22 = vld [vmem:[%s8346_s5 + $0x58] sm:$0xff]   ;;  %v3873_v46 = vrot.slane %v7741_v47, %v7427_v29 }
0x2b7f   :  { %v5947_v49 = vpack.c.bf16 %v3750_v7, %v3749_v48 }
0x2b81   :  { %6523 = vmatmul.mubr.msk.bf16.vlgmr.msra.gmra.mrb[112].mxu1 %vm111_vm1, %v5947_v49 }
0x2b82   :  { %6542 = vmatprep.mubr.msk.bf16.mxu1 %vm7060_vm0, %v7059_v0  ;;  %6535 = vmatpush3.bf16.msra.mxu1 %v6812_v38 }
0x2b83   :  { %6536 = vmatprep.subr.bf16.mxu1 %v7059_v0 }
0x2b86   :  { %6537 = vmatpush3.bf16.msra.mxu1 %v6813_v40 }
0x2b87   :  { %6538 = vmatprep.subr.bf16.mxu1 %v7059_v0 }
0x2b8a   :  { %6539 = vmatpush3.bf16.msra.mxu1 %v6814_v41 }
0x2b8b   :  { %6540 = vmatprep.subr.bf16.mxu1 %v7059_v0 }
0x2b8e   :  { %6541 = vmatpush3.bf16.msra.mxu1 %v6815_v22 }
0x2b8f   :  { %6560 = vmatprep.subr.bf16.mxu1 %v7059_v0 }
0x2c54   :  { %v3816_v3 = vpop.f32.mrb[112].mxu1 }
0x2c55   :  { %v3817_v50 = vadd.f32 %v3816_v3, %v3761_v56  ;;  %v6524_v53 = vpop.f32.mrb[113].mxu1 }
0x2c56   :  { %v3819_v54 = vpop.f32.mrb[114].mxu1 }
0x2c57   :  { %v3823_v51 = vadd.f32 %v3817_v50, %v7729_v42  ;;  %v3820_v4 = vadd.f32 %v3819_v54, %v3761_v56  ;;  %v6525_v15 = vpop.f32.mrb[115].mxu1 }
0x2c59   :  { %v3824_v59 = vadd.f32 %v3820_v4, %v7731_v45  ;;  %v3825_v63 = vsel %vm111_vm1, %v3823_v51, 0.0 }
0x2c5a   :  { %3826 = vadd.xlane.f32.xlu1 %v3825_v63 }
0x2c5b   :  { %v3828_v1 = vsel %vm111_vm1, %v3824_v59, 0.0 }
0x2c5c   :  { %3829 = vadd.xlane.f32.xlu0 %v3828_v1 }
0x2ce7   :  { %v3827_v55 = vpop.xlane.xlu1 %3826 }
0x2ce8   :  { %v3831_v57 = vmul.f32 0.03125, %v3827_v55 }
0x2ce9   :  { %v3830_v58 = vpop.xlane.xlu0 %3829 }
0x2cea   :  { %v3833_v60 = vsub.f32 %v3823_v51, %v3831_v57  ;;  %v3832_v61 = vmul.f32 0.03125, %v3830_v58 }
0x2cec   :  { %v3834_v62 = vsub.f32 %v3824_v59, %v3832_v61  ;;  %v3835_v5 = vmul.f32 %v3833_v60, %v3833_v60 }
0x2cee   :  { %v3837_v6 = vsel %vm111_vm1, %v3835_v5, 0.0  ;;  %v3836_v10 = vmul.f32 %v3834_v62, %v3834_v62 }
0x2cef   :  { %3838 = vadd.xlane.f32.xlu0 %v3837_v6 }
0x2cf0   :  { %v3840_v24 = vsel %vm111_vm1, %v3836_v10, 0.0 }
0x2cf1   :  { %3841 = vadd.xlane.f32.xlu1 %v3840_v24 }
0x2d7c   :  { %v3839_v12 = vpop.xlane.xlu0 %3838 }
0x2d7d   :  { %v3843_v16 = vmul.f32 0.03125, %v3839_v12 }
0x2d7e   :  { %v3842_v19 = vpop.xlane.xlu1 %3841 }
0x2d7f   :  { %v3845_v20 = vadd.f32 1e-12, %v3843_v16  ;;  %v3844_v13 = vmul.f32 0.03125, %v3842_v19 }
0x2d81   :  { %6956 = vrsqrt.f32 %v3845_v20  ;;  %v3846_v14 = vadd.f32 1e-12, %v3844_v13 }
0x2d83   :  { %6958 = vrsqrt.f32 %v3846_v14 }
0x2d8b   :  { %v6957_v25 = vpop.eup %6956 }
0x2d8c   :  { %v3849_v27 = vmul.f32 %v6957_v25, %v3833_v60 }
0x2d8d   :  { %v6959_v28 = vpop.eup %6958 }
0x2d8e   :  { %v3855_v30 = vmul.f32 %v3854_v21, %v3849_v27  ;;  %v3850_v32 = vmul.f32 %v6959_v28, %v3834_v62 }
0x2d90   :  { %v3856_v36 = vmul.f32 %v3854_v21, %v3850_v32  ;;  %v3861_v52 = vadd.f32 %v3860_v33, %v3855_v30 }
0x2d92   :  { %v3862_v17 = vadd.f32 %v3860_v33, %v3856_v36 }
0x2d94   :  { %v5948_v37 = vpack.c.bf16 %v3862_v17, %v3861_v52 }
0x2d96   :  { %6531 = vmatmul.mubr.msk.bf16.vlgmr.msra.gmra.mrb[116].mxu0 %vm111_vm1, %v5948_v37 }
0x2d97   :  { %6550 = vmatprep.mubr.msk.bf16.mxu0 %vm7060_vm0, %v7059_v0 }
0x2e69   :  { %v3928_v7 = vpop.f32.mrb[116].mxu0 }
0x2e6a   :  { %v3929_v48 = vadd.f32 %v3928_v7, %v3873_v46  ;;  %v6532_v49 = vpop.f32.mrb[117].mxu0 }
0x2e6b   :  { %v3931_v56 = vpop.f32.mrb[118].mxu0 }
0x2e6c   :  { %v3935_v3 = vmul.f32 %v3929_v48, %v3929_v48  ;;  %v3932_v50 = vadd.f32 %v3931_v56, %v3873_v46  ;;  %v6533_v53 = vpop.f32.mrb[119].mxu0  ;;  %v6817_v46 = vld [vmem:[%s8343_s2 + $0x38] sm:$0xff]  }
0x2e6d   :  { %v4072_v53 = vrot.slane %v7741_v47, %v7452_v31 }
0x2e6e   :  { %v3937_v54 = vmul.f32 %v3935_v3, %v3929_v48  ;;  %v3936_v51 = vmul.f32 %v3932_v50, %v3932_v50 }
0x2e70   :  { %v3939_v4 = vmul.f32 0.044715, %v3937_v54  ;;  %v3938_v15 = vmul.f32 %v3936_v51, %v3932_v50 }
0x2e72   :  { %v3941_v59 = vadd.f32 %v3939_v4, %v3929_v48  ;;  %v3940_v63 = vmul.f32 0.044715, %v3938_v15 }
0x2e74   :  { %v3943_v1 = vmul.f32 0.7978846, %v3941_v59  ;;  %v3942_v55 = vadd.f32 %v3940_v63, %v3932_v50  ;;  %v4078_v63 = vrot.slane %v7741_v47, %v7459_v35 }
0x2e76   :  { %6960 = vtanh.f32 %v3943_v1  ;;  %v3944_v57 = vmul.f32 0.7978846, %v3942_v55 }
0x2e78   :  { %6962 = vtanh.f32 %v3944_v57 }
0x2e80   :  { %v6961_v58 = vpop.eup %6960 }
0x2e81   :  { %v3947_v60 = vadd.f32 1.0, %v6961_v58 }
0x2e82   :  { %v6963_v61 = vpop.eup %6962 }
0x2e83   :  { %v3949_v62 = vmul.f32 0.5, %v3947_v60  ;;  %v3948_v5 = vadd.f32 1.0, %v6963_v61  ;;  %v8008_v60 = vld [vmem:[%s8347_s6 + $0x18] sm:$0xff] }
0x2e84   :  { %v4091_v47 = vrot.slane %v8008_v60, %v7170_v8 }
0x2e85   :  { %v3950_v6 = vmul.f32 0.5, %v3948_v5  ;;  %v3951_v10 = vmul.f32 %v3949_v62, %v3929_v48 }
0x2e87   :  { %v3952_v24 = vmul.f32 %v3950_v6, %v3932_v50 }
0x2e89   :  { %v5949_v9 = vpack.c.bf16 %v3952_v24, %v3951_v10 }
0x2e8b   :  { %6543 = vmatmul.mubr.msk.bf16.vlgmr.msra.gmra.mrb[116].mxu1 %vm1340_vm6, %v5949_v9 }
0x2e8c   :  { %6562 = vmatprep.mubr.msk.bf16.mxu1 %vm7060_vm0, %v7059_v0 }
0x2f5e   :  { %v4034_v12 = vpop.f32.mrb[116].mxu1 }
0x2f5f   :  { %v4035_v16 = vadd.f32 %v4034_v12, %v3967_v11  ;;  %v6544_v19 = vpop.f32.mrb[117].mxu1 }
0x2f60   :  { %v4037_v20 = vpop.f32.mrb[118].mxu1 }
0x2f61   :  { %v4041_v13 = vadd.f32 %v4035_v16, %v3861_v52  ;;  %v4038_v14 = vadd.f32 %v4037_v20, %v3967_v11  ;;  %v6545_v21 = vpop.f32.mrb[119].mxu1 }
0x2f63   :  { %v4042_v25 = vadd.f32 %v4038_v14, %v3862_v17  ;;  %v4043_v27 = vsel %vm111_vm1, %v4041_v13, 0.0  ;;  %v6816_v17 = vld [vmem:[%s8343_s2 + $0x30] sm:$0xff]  }
0x2f64   :  { %4044 = vadd.xlane.f32.xlu0 %v4043_v27  ;;  %6547 = vmatpush3.bf16.msra.mxu0 %v6816_v17 }
0x2f65   :  { %v4046_v28 = vsel %vm111_vm1, %v4042_v25, 0.0  ;;  %6548 = vmatprep.subr.bf16.mxu0 %v7059_v0 }
0x2f66   :  { %4047 = vadd.xlane.f32.xlu1 %v4046_v28 }
0x2f68   :  { %6549 = vmatpush3.bf16.msra.mxu0 %v6817_v46 }
0x2f69   :  { %6554 = vmatprep.subr.bf16.mxu0 %v7059_v0 }
0x2ff1   :  { %v4045_v30 = vpop.xlane.xlu0 %4044 }
0x2ff2   :  { %v4049_v32 = vmul.f32 0.03125, %v4045_v30 }
0x2ff3   :  { %v4048_v33 = vpop.xlane.xlu1 %4047 }
0x2ff4   :  { %v4051_v36 = vsub.f32 %v4041_v13, %v4049_v32  ;;  %v4050_v37 = vmul.f32 0.03125, %v4048_v33 }
0x2ff6   :  { %v4052_v38 = vsub.f32 %v4042_v25, %v4050_v37  ;;  %v4053_v40 = vmul.f32 %v4051_v36, %v4051_v36 }
0x2ff8   :  { %v4055_v41 = vsel %vm111_vm1, %v4053_v40, 0.0  ;;  %v4054_v22 = vmul.f32 %v4052_v38, %v4052_v38 }
0x2ff9   :  { %4056 = vadd.xlane.f32.xlu0 %v4055_v41 }
0x2ffa   :  { %v4058_v52 = vsel %vm111_vm1, %v4054_v22, 0.0 }
0x2ffb   :  { %4059 = vadd.xlane.f32.xlu1 %v4058_v52 }
0x3086   :  { %v4057_v7 = vpop.xlane.xlu0 %4056 }
0x3087   :  { %v4061_v48 = vmul.f32 0.03125, %v4057_v7 }
0x3088   :  { %v4060_v49 = vpop.xlane.xlu1 %4059 }
0x3089   :  { %v4063_v56 = vadd.f32 1e-12, %v4061_v48  ;;  %v4062_v3 = vmul.f32 0.03125, %v4060_v49 }
0x308b   :  { %6964 = vrsqrt.f32 %v4063_v56  ;;  %v4064_v50 = vadd.f32 1e-12, %v4062_v3 }
0x308d   :  { %6966 = vrsqrt.f32 %v4064_v50 }
0x3095   :  { %v6965_v54 = vpop.eup %6964 }
0x3096   :  { %v4067_v51 = vmul.f32 %v6965_v54, %v4051_v36 }
0x3097   :  { %v6967_v4 = vpop.eup %6966 }
0x3098   :  { %v4073_v15 = vmul.f32 %v4072_v53, %v4067_v51  ;;  %v4068_v59 = vmul.f32 %v6967_v4, %v4052_v38 }
0x309a   :  { %v4074_v1 = vmul.f32 %v4072_v53, %v4068_v59  ;;  %v7996_v55 = vadd.f32 %v4078_v63, %v4073_v15 }
0x309c   :  { %v7998_v57 = vadd.f32 %v4078_v63, %v4074_v1 }
0x309e   :  { %v5950_v58 = vpack.c.bf16 %v7998_v57, %v7996_v55 }
0x30a0   :  { %6551 = vmatmul.mubr.msk.bf16.vlgmr.msra.gmra.mrb[120].mxu0 %vm111_vm1, %v5950_v58 }
0x30a1   :  { %6556 = vmatprep.mubr.msk.bf16.mxu0 %vm7060_vm0, %v7059_v0 }
0x3173   :  { %v4146_v61 = vpop.f32.mrb[120].mxu0 }
0x3174   :  { %v4147_v62 = vadd.f32 %v4146_v61, %v4091_v47  ;;  %v6552_v5 = vpop.f32.mrb[121].mxu0 }
0x3175   :  { %v4149_v6 = vpop.f32.mrb[122].mxu0 }
0x3176   :  { %v8012_v10 = vpack.c.bf16 %v4147_v62, %v4147_v62  ;;  %v4150_v24 = vadd.f32 %v4149_v6, %v4091_v47  ;;  %v6553_v9 = vpop.f32.mrb[123].mxu0 }
0x3178   :  { %v8014_v11 = vpack.c.bf16 %v4150_v24, %v4150_v24  ;;  %4156 = vrot.lane.b32.xlu0 %v8012_v10, %s7061_s12 }
0x317a   :  { %4205 = vrot.lane.b32.xlu1 %v8014_v11, %s7061_s12 }
0x31ea   :  { %v4157_v12 = vpop.permute.xlu0 %4156 }
0x31eb   :  { %v4162_v16 = vsel %vm161_vm2, %v4157_v12, 0 }
0x31ec   :  { %6555 = vmatpush3.bf16.xpose.msra.mxu0 %v4162_v16  ;;  %v4206_v19 = vpop.permute.xlu1 %4205 }
0x31ed   :  { %v4211_v20 = vsel %vm161_vm2, %v4206_v19, 0  ;;  %6566 = vmatprep.subr.bf16.mxu0 %v7059_v0 }
0x31ee   :  { %6561 = vmatpush3.bf16.xpose.msra.mxu1 %v4211_v20 }
0x31ef   :  { %6572 = vmatprep.subr.bf16.mxu1 %v7059_v0 }
0x31f3   :  { %6557 = vmatmul.mubr.msk.bf16.vlgmr.msra.gmra.mrb[124].mxu0 %vm161_vm2, %v8012_v10 }
0x31f4   :  { %6568 = vmatprep.mubr.msk.bf16.mxu0 %vm7060_vm0, %v7059_v0 }
0x31f5   :  { %6563 = vmatmul.mubr.msk.bf16.vlgmr.msra.gmra.mrb[120].mxu1 %vm161_vm2, %v8014_v11 }
0x31f6   :  { %6574 = vmatprep.mubr.msk.bf16.mxu1 %vm7060_vm0, %v7059_v0 }
0x32c6   :  { %v4198_v13 = vpop.f32.mrb[124].mxu0 }
0x32c7   :  { %v4253_v14 = vmul.f32 0.35355338, %v4198_v13  ;;  %v6558_v21 = vpop.f32.mrb[125].mxu0 }
0x32c8   :  { %v4201_v25 = vpop.f32.mrb[126].mxu0  ;;  %v4247_v27 = vpop.f32.mrb[120].mxu1 }
0x32c9   :  { %v4255_v28 = vadd.f32 %v4253_v14, %v7204_v34  ;;  %v4254_v30 = vmul.f32 0.35355338, %v4247_v27  ;;  %v6559_v32 = vpop.f32.mrb[127].mxu0  ;;  %v6564_v33 = vpop.f32.mrb[121].mxu1 }
0x32ca   :  { %v4250_v36 = vpop.f32.mrb[122].mxu1 }
0x32cb   :  { %v4256_v37 = vadd.f32 %v4254_v30, %v7207_v39  ;;  %v6565_v38 = vpop.f32.mrb[123].mxu1  ;;  %v4257_v40 = vsel %vm161_vm2, %v4255_v28, -inf }
0x32cc   :  { %4258 = vmax.xlane.f32.xlu1 %v4257_v40 }
0x32cd   :  { %v4260_v41 = vsel %vm161_vm2, %v4256_v37, -inf }
0x32ce   :  { %4261 = vmax.xlane.f32.xlu0 %v4260_v41 }
0x32dd   :  { %4329 = vrot.lane.b32.xlu1 %v8014_v11, %s7063_s1 }
0x32e4   :  { %4281 = vrot.lane.b32.xlu0 %v8012_v10, %s7063_s1 }
0x3359   :  { %v4259_v22 = vpop.xlane.xlu1 %4258 }
0x335a   :  { %v4263_v52 = vsub.f32 %v4255_v28, %v4259_v22 }
0x335b   :  { %v4262_v17 = vpop.xlane.xlu0 %4261 }
0x335c   :  { %v4265_v46 = vmul.f32 1.442695, %v4263_v52  ;;  %v4264_v7 = vsub.f32 %v4256_v37, %v4262_v17 }
0x335d   :  { %v4330_v48 = vpop.permute.xlu1 %4329 }
0x335e   :  { %6968 = vpow2.f32 %v4265_v46  ;;  %v4267_v49 = vmul.f32 1.442695, %v4264_v7  ;;  %v4335_v56 = vsel %vm300_vm3, %v4330_v48, 0 }
0x335f   :  { %v4282_v3 = vpop.permute.xlu0 %4281  ;;  %6573 = vmatpush3.bf16.msra.mxu1 %v4335_v56 }
0x3360   :  { %6970 = vpow2.f32 %v4267_v49  ;;  %v4287_v50 = vsel %vm300_vm3, %v4282_v3, 0  ;;  %6584 = vmatprep.subr.bf16.mxu1 %v7059_v0 }
0x3361   :  { %6567 = vmatpush3.bf16.msra.mxu0 %v4287_v50 }
0x3362   :  { %6578 = vmatprep.subr.bf16.mxu0 %v7059_v0 }
0x3368   :  { %v6969_v53 = vpop.eup %6968 }
0x3369   :  { %v4269_v54 = vsel %vm161_vm2, %v6969_v53, 0.0 }
0x336a   :  { %v6971_v51 = vpop.eup %6970  ;;  %4270 = vadd.xlane.f32.xlu0 %v4269_v54 }
0x336b   :  { %v4272_v4 = vsel %vm161_vm2, %v6971_v51, 0.0 }
0x336c   :  { %4273 = vadd.xlane.f32.xlu1 %v4272_v4 }
0x337d   :  { %4379 = vrot.lane.b32.xlu1 %v8012_v10, %s7064_s15 }
0x3380   :  { %4429 = vrot.lane.b32.xlu0 %v8014_v11, %s7064_s15 }
0x3381   :  { %4377 = vrot.lane.b32.xlu1 %v8012_v10, %s7065_s16 }
0x3384   :  { %4427 = vrot.lane.b32.xlu0 %v8014_v11, %s7065_s16 }
0x33f7   :  { %v4271_v15 = vpop.xlane.xlu0 %4270 }
0x33f8   :  { %6972 = vrcp.f32 %v4271_v15 }
0x33f9   :  { %v4274_v59 = vpop.xlane.xlu1 %4273 }
0x33fa   :  { %6974 = vrcp.f32 %v4274_v59 }
0x33fb   :  { %v4430_v5 = vpop.permute.xlu0 %4429 }
0x33fc   :  { %v4435_v9 = vsel %vm161_vm2, %v4430_v5, 0 }
0x33fd   :  { %v4380_v47 = vpop.permute.xlu1 %4379 }
0x33fe   :  { %v4385_v6 = vsel %vm161_vm2, %v4380_v47, 0 }
0x33ff   :  { %v4428_v16 = vpop.permute.xlu0 %4427 }
0x3401   :  { %v4378_v12 = vpop.permute.xlu1 %4377 }
0x3402   :  { %v6973_v63 = vpop.eup %6972 }
0x3403   :  { %v4277_v1 = vmul.f32 %v6973_v63, %v6969_v53 }
0x3404   :  { %v6975_v58 = vpop.eup %6974 }
0x3405   :  { %v4278_v61 = vmul.f32 %v6975_v58, %v6971_v51  ;;  %v4279_v62 = vpack.c.bf16 %v4277_v1, %v4277_v1 }
0x3407   :  { %6569 = vmatmul.mubr.msk.bf16.vlgmr.msra.gmra.mrb[128].mxu0 %vm161_vm2, %v4279_v62  ;;  %v4280_v24 = vpack.c.bf16 %v4278_v61, %v4278_v61 }
0x3408   :  { %6579 = vmatpush3.bf16.xpose.msra.mxu0 %v4385_v6  ;;  %6580 = vmatprep.mubr.msk.bf16.mxu0 %vm7060_vm0, %v7059_v0 }
0x3409   :  { %6575 = vmatmul.mubr.msk.bf16.vlgmr.msra.gmra.mrb[124].mxu1 %vm161_vm2, %v4280_v24  ;;  %6590 = vmatprep.subr.bf16.mxu0 %v7059_v0 }
0x340a   :  { %6585 = vmatpush3.bf16.xpose.msra.mxu1 %v4435_v9  ;;  %6586 = vmatprep.mubr.msk.bf16.mxu1 %vm7060_vm0, %v7059_v0 }
0x340b   :  { %6596 = vmatprep.subr.bf16.mxu1 %v7059_v0 }
0x340f   :  { %6581 = vmatmul.mubr.msk.bf16.vlgmr.msra.gmra.mrb[132].mxu0 %vm161_vm2, %v4378_v12 }
0x3410   :  { %6592 = vmatprep.mubr.msk.bf16.mxu0 %vm7060_vm0, %v7059_v0 }
0x3411   :  { %6587 = vmatmul.mubr.msk.bf16.vlgmr.msra.gmra.mrb[128].mxu1 %vm161_vm2, %v4428_v16 }
0x3412   :  { %6598 = vmatprep.mubr.msk.bf16.mxu1 %vm7060_vm0, %v7059_v0 }
0x34da   :  { %v8070_v19 = vpop.f32.mrb[128].mxu0 }
0x34db   :  { %v6570_v20 = vpop.f32.mrb[129].mxu0 }
0x34dc   :  { %v4326_v13 = vpop.f32.mrb[130].mxu0  ;;  %v8072_v14 = vpop.f32.mrb[124].mxu1 }
0x34dd   :  { %v6571_v21 = vpop.f32.mrb[131].mxu0  ;;  %v6576_v25 = vpop.f32.mrb[125].mxu1 }
0x34de   :  { %v4374_v27 = vpop.f32.mrb[126].mxu1 }
0x34df   :  { %v6577_v28 = vpop.f32.mrb[127].mxu1 }
0x34e2   :  { %v4421_v30 = vpop.f32.mrb[132].mxu0 }
0x34e3   :  { %v4477_v32 = vmul.f32 0.35355338, %v4421_v30  ;;  %v6582_v33 = vpop.f32.mrb[133].mxu0 }
0x34e4   :  { %v4424_v36 = vpop.f32.mrb[134].mxu0  ;;  %v4471_v37 = vpop.f32.mrb[128].mxu1 }
0x34e5   :  { %v4479_v38 = vadd.f32 %v4477_v32, %v7204_v34  ;;  %v4478_v40 = vmul.f32 0.35355338, %v4471_v37  ;;  %v6583_v41 = vpop.f32.mrb[135].mxu0  ;;  %v6588_v22 = vpop.f32.mrb[129].mxu1 }
0x34e6   :  { %v4474_v52 = vpop.f32.mrb[130].mxu1 }
0x34e7   :  { %v4480_v17 = vadd.f32 %v4478_v40, %v7207_v39  ;;  %v6589_v46 = vpop.f32.mrb[131].mxu1  ;;  %v4481_v7 = vsel %vm161_vm2, %v4479_v38, -inf }
0x34e8   :  { %4482 = vmax.xlane.f32.xlu1 %v4481_v7 }
0x34e9   :  { %v4484_v48 = vsel %vm161_vm2, %v4480_v17, -inf }
0x34ea   :  { %4485 = vmax.xlane.f32.xlu0 %v4484_v48 }
0x34f9   :  { %4553 = vrot.lane.b32.xlu1 %v8014_v11, %s7066_s17 }
0x3500   :  { %4505 = vrot.lane.b32.xlu0 %v8012_v10, %s7066_s17 }
0x3575   :  { %v4483_v49 = vpop.xlane.xlu1 %4482 }
0x3576   :  { %v4487_v56 = vsub.f32 %v4479_v38, %v4483_v49 }
0x3577   :  { %v4486_v3 = vpop.xlane.xlu0 %4485 }
0x3578   :  { %v4489_v50 = vmul.f32 1.442695, %v4487_v56  ;;  %v4488_v53 = vsub.f32 %v4480_v17, %v4486_v3 }
0x3579   :  { %v4554_v54 = vpop.permute.xlu1 %4553 }
0x357a   :  { %6976 = vpow2.f32 %v4489_v50  ;;  %v4491_v51 = vmul.f32 1.442695, %v4488_v53  ;;  %v4559_v4 = vsel %vm300_vm3, %v4554_v54, 0 }
0x357b   :  { %v4506_v15 = vpop.permute.xlu0 %4505  ;;  %6597 = vmatpush3.bf16.msra.mxu1 %v4559_v4 }
0x357c   :  { %6978 = vpow2.f32 %v4491_v51  ;;  %v4511_v59 = vsel %vm300_vm3, %v4506_v15, 0  ;;  %6608 = vmatprep.subr.bf16.mxu1 %v7059_v0 }
0x357d   :  { %6591 = vmatpush3.bf16.msra.mxu0 %v4511_v59 }
0x357e   :  { %6602 = vmatprep.subr.bf16.mxu0 %v7059_v0 }
0x3584   :  { %v6977_v63 = vpop.eup %6976 }
0x3585   :  { %v4493_v1 = vsel %vm161_vm2, %v6977_v63, 0.0 }
0x3586   :  { %v6979_v58 = vpop.eup %6978  ;;  %4494 = vadd.xlane.f32.xlu0 %v4493_v1 }
0x3587   :  { %v4496_v47 = vsel %vm161_vm2, %v6979_v58, 0.0 }
0x3588   :  { %4497 = vadd.xlane.f32.xlu1 %v4496_v47 }
0x3599   :  { %4603 = vrot.lane.b32.xlu1 %v8012_v10, %s7067_s18 }
0x359c   :  { %4653 = vrot.lane.b32.xlu0 %v8014_v11, %s7067_s18 }
0x359d   :  { %4601 = vrot.lane.b32.xlu1 %v8012_v10, %s7068_s19 }
0x35a0   :  { %4651 = vrot.lane.b32.xlu0 %v8014_v11, %s7068_s19 }
0x3613   :  { %v4495_v61 = vpop.xlane.xlu0 %4494 }
0x3614   :  { %6980 = vrcp.f32 %v4495_v61 }
0x3615   :  { %v4498_v62 = vpop.xlane.xlu1 %4497 }
0x3616   :  { %6982 = vrcp.f32 %v4498_v62 }
0x3617   :  { %v4654_v20 = vpop.permute.xlu0 %4653 }
0x3618   :  { %v4659_v25 = vsel %vm161_vm2, %v4654_v20, 0 }
0x3619   :  { %v4604_v9 = vpop.permute.xlu1 %4603 }
0x361a   :  { %v4609_v13 = vsel %vm161_vm2, %v4604_v9, 0 }
0x361b   :  { %v4652_v28 = vpop.permute.xlu0 %4651 }
0x361d   :  { %v4602_v27 = vpop.permute.xlu1 %4601 }
0x361e   :  { %v6981_v5 = vpop.eup %6980 }
0x361f   :  { %v4501_v6 = vmul.f32 %v6981_v5, %v6977_v63 }
0x3620   :  { %v6983_v24 = vpop.eup %6982 }
0x3621   :  { %v4502_v12 = vmul.f32 %v6983_v24, %v6979_v58  ;;  %v4503_v16 = vpack.c.bf16 %v4501_v6, %v4501_v6 }
0x3623   :  { %6593 = vmatmul.mubr.msk.bf16.vlgmr.msra.gmra.mrb[136].mxu0 %vm161_vm2, %v4503_v16  ;;  %v4504_v21 = vpack.c.bf16 %v4502_v12, %v4502_v12 }
0x3624   :  { %6603 = vmatpush3.bf16.xpose.msra.mxu0 %v4609_v13  ;;  %6604 = vmatprep.mubr.msk.bf16.mxu0 %vm7060_vm0, %v7059_v0 }
0x3625   :  { %6599 = vmatmul.mubr.msk.bf16.vlgmr.msra.gmra.mrb[132].mxu1 %vm161_vm2, %v4504_v21  ;;  %6614 = vmatprep.subr.bf16.mxu0 %v7059_v0 }
0x3626   :  { %6609 = vmatpush3.bf16.xpose.msra.mxu1 %v4659_v25  ;;  %6610 = vmatprep.mubr.msk.bf16.mxu1 %vm7060_vm0, %v7059_v0 }
0x3627   :  { %6620 = vmatprep.subr.bf16.mxu1 %v7059_v0 }
0x362b   :  { %6605 = vmatmul.mubr.msk.bf16.vlgmr.msra.gmra.mrb[140].mxu0 %vm161_vm2, %v4602_v27 }
0x362c   :  { %6616 = vmatprep.mubr.msk.bf16.mxu0 %vm7060_vm0, %v7059_v0 }
0x362d   :  { %6611 = vmatmul.mubr.msk.bf16.vlgmr.msra.gmra.mrb[136].mxu1 %vm161_vm2, %v4652_v28 }
0x362e   :  { %6622 = vmatprep.mubr.msk.bf16.mxu1 %vm7060_vm0, %v7059_v0 }
0x36f6   :  { %v8112_v30 = vpop.f32.mrb[136].mxu0 }
0x36f7   :  { %v6594_v32 = vpop.f32.mrb[137].mxu0 }
0x36f8   :  { %v4550_v33 = vpop.f32.mrb[138].mxu0  ;;  %v8114_v36 = vpop.f32.mrb[132].mxu1 }
0x36f9   :  { %v6771_v37 = vpack.i.bf16 %v8114_v36, %v8112_v30  ;;  %v6595_v38 = vpop.f32.mrb[139].mxu0  ;;  %v6600_v40 = vpop.f32.mrb[133].mxu1 }
0x36fa   :  { %v4598_v41 = vpop.f32.mrb[134].mxu1 }
0x36fb   :  { %v6601_v22 = vpop.f32.mrb[135].mxu1 }
0x36fe   :  { %v4645_v52 = vpop.f32.mrb[140].mxu0 }
0x36ff   :  { %v4701_v17 = vmul.f32 0.35355338, %v4645_v52  ;;  %v6606_v46 = vpop.f32.mrb[141].mxu0 }
0x3700   :  { %v4648_v7 = vpop.f32.mrb[142].mxu0  ;;  %v4695_v48 = vpop.f32.mrb[136].mxu1 }
0x3701   :  { %v4703_v49 = vadd.f32 %v4701_v17, %v7204_v34  ;;  %v4702_v56 = vmul.f32 0.35355338, %v4695_v48  ;;  %v6607_v3 = vpop.f32.mrb[143].mxu0  ;;  %v6612_v50 = vpop.f32.mrb[137].mxu1 }
0x3702   :  { %v4698_v53 = vpop.f32.mrb[138].mxu1 }
0x3703   :  { %v4704_v54 = vadd.f32 %v4702_v56, %v7207_v39  ;;  %v6613_v51 = vpop.f32.mrb[139].mxu1  ;;  %v4705_v4 = vsel %vm161_vm2, %v4703_v49, -inf }
0x3704   :  { %4706 = vmax.xlane.f32.xlu1 %v4705_v4 }
0x3705   :  { %v4708_v15 = vsel %vm161_vm2, %v4704_v54, -inf }
0x3706   :  { %4709 = vmax.xlane.f32.xlu0 %v4708_v15 }
0x3715   :  { %4777 = vrot.lane.b32.xlu1 %v8014_v11, %s7069_s20 }
0x371c   :  { %4729 = vrot.lane.b32.xlu0 %v8012_v10, %s7069_s20 }
0x3791   :  { %v4707_v59 = vpop.xlane.xlu1 %4706 }
0x3792   :  { %v4711_v63 = vsub.f32 %v4703_v49, %v4707_v59 }
0x3793   :  { %v4710_v1 = vpop.xlane.xlu0 %4709 }
0x3794   :  { %v4713_v58 = vmul.f32 1.442695, %v4711_v63  ;;  %v4712_v47 = vsub.f32 %v4704_v54, %v4710_v1 }
0x3795   :  { %v4778_v61 = vpop.permute.xlu1 %4777 }
0x3796   :  { %6984 = vpow2.f32 %v4713_v58  ;;  %v4715_v62 = vmul.f32 1.442695, %v4712_v47  ;;  %v4783_v5 = vsel %vm300_vm3, %v4778_v61, 0 }
0x3797   :  { %v4730_v6 = vpop.permute.xlu0 %4729  ;;  %6621 = vmatpush3.bf16.msra.mxu1 %v4783_v5 }
0x3798   :  { %6986 = vpow2.f32 %v4715_v62  ;;  %v4735_v24 = vsel %vm300_vm3, %v4730_v6, 0  ;;  %6632 = vmatprep.subr.bf16.mxu1 %v7059_v0 }
0x3799   :  { %6615 = vmatpush3.bf16.msra.mxu0 %v4735_v24 }
0x379a   :  { %6626 = vmatprep.subr.bf16.mxu0 %v7059_v0 }
0x37a0   :  { %v6985_v9 = vpop.eup %6984 }
0x37a1   :  { %v4717_v12 = vsel %vm161_vm2, %v6985_v9, 0.0 }
0x37a2   :  { %v6987_v16 = vpop.eup %6986  ;;  %4718 = vadd.xlane.f32.xlu0 %v4717_v12 }
0x37a3   :  { %v4720_v20 = vsel %vm161_vm2, %v6987_v16, 0.0 }
0x37a4   :  { %4721 = vadd.xlane.f32.xlu1 %v4720_v20 }
0x37b5   :  { %4827 = vrot.lane.b32.xlu1 %v8012_v10, %s7070_s21 }
0x37b8   :  { %4877 = vrot.lane.b32.xlu0 %v8014_v11, %s7070_s21 }
0x37b9   :  { %4825 = vrot.lane.b32.xlu1 %v8012_v10, %s7071_s22 }
0x37bc   :  { %4875 = vrot.lane.b32.xlu0 %v8014_v11, %s7071_s22 }
0x382f   :  { %v4719_v13 = vpop.xlane.xlu0 %4718 }
0x3830   :  { %6988 = vrcp.f32 %v4719_v13 }
0x3831   :  { %v4722_v21 = vpop.xlane.xlu1 %4721 }
0x3832   :  { %6990 = vrcp.f32 %v4722_v21 }
0x3833   :  { %v4878_v40 = vpop.permute.xlu0 %4877 }
0x3834   :  { %v4883_v52 = vsel %vm161_vm2, %v4878_v40, 0 }
0x3835   :  { %v4828_v32 = vpop.permute.xlu1 %4827 }
0x3836   :  { %v4833_v41 = vsel %vm161_vm2, %v4828_v32, 0 }
0x3837   :  { %v4876_v46 = vpop.permute.xlu0 %4875 }
0x3839   :  { %v4826_v17 = vpop.permute.xlu1 %4825 }
0x383a   :  { %v6989_v25 = vpop.eup %6988 }
0x383b   :  { %v4725_v27 = vmul.f32 %v6989_v25, %v6985_v9 }
0x383c   :  { %v6991_v28 = vpop.eup %6990 }
0x383d   :  { %v4726_v33 = vmul.f32 %v6991_v28, %v6987_v16  ;;  %v4727_v38 = vpack.c.bf16 %v4725_v27, %v4725_v27 }
0x383f   :  { %6617 = vmatmul.mubr.msk.bf16.vlgmr.msra.gmra.mrb[144].mxu0 %vm161_vm2, %v4727_v38  ;;  %v4728_v22 = vpack.c.bf16 %v4726_v33, %v4726_v33 }
0x3840   :  { %6627 = vmatpush3.bf16.xpose.msra.mxu0 %v4833_v41  ;;  %6628 = vmatprep.mubr.msk.bf16.mxu0 %vm7060_vm0, %v7059_v0 }
0x3841   :  { %6623 = vmatmul.mubr.msk.bf16.vlgmr.msra.gmra.mrb[140].mxu1 %vm161_vm2, %v4728_v22  ;;  %6638 = vmatprep.subr.bf16.mxu0 %v7059_v0 }
0x3842   :  { %6633 = vmatpush3.bf16.xpose.msra.mxu1 %v4883_v52  ;;  %6634 = vmatprep.mubr.msk.bf16.mxu1 %vm7060_vm0, %v7059_v0 }
0x3843   :  { %6644 = vmatprep.subr.bf16.mxu1 %v7059_v0 }
0x3847   :  { %6629 = vmatmul.mubr.msk.bf16.vlgmr.msra.gmra.mrb[148].mxu0 %vm161_vm2, %v4826_v17 }
0x3848   :  { %6640 = vmatprep.mubr.msk.bf16.mxu0 %vm7060_vm0, %v7059_v0 }
0x3849   :  { %6635 = vmatmul.mubr.msk.bf16.vlgmr.msra.gmra.mrb[144].mxu1 %vm161_vm2, %v4876_v46  ;;  %v6818_v46 = vld [vmem:[%s8344_s3 + $0x30] sm:$0xff]  }
0x384a   :  { %6646 = vmatprep.mubr.msk.bf16.mxu1 %vm7060_vm0, %v7059_v0 }
0x3912   :  { %v4771_v7 = vpop.f32.mrb[144].mxu0 }
0x3913   :  { %v6618_v48 = vpop.f32.mrb[145].mxu0 }
0x3914   :  { %v4774_v49 = vpop.f32.mrb[146].mxu0  ;;  %v4819_v56 = vpop.f32.mrb[140].mxu1 }
0x3915   :  { %v6776_v3 = vpack.i.bf16 %v4819_v56, %v4771_v7  ;;  %v6619_v50 = vpop.f32.mrb[147].mxu0  ;;  %v6624_v53 = vpop.f32.mrb[141].mxu1  ;;  %v6819_v7 = vld [vmem:[%s8344_s3 + $0x38] sm:$0xff]  }
0x3916   :  { %v4822_v54 = vpop.f32.mrb[142].mxu1 }
0x3917   :  { %v6625_v51 = vpop.f32.mrb[143].mxu1 }
0x391a   :  { %v4869_v4 = vpop.f32.mrb[148].mxu0 }
0x391b   :  { %v4925_v15 = vmul.f32 0.35355338, %v4869_v4  ;;  %v6630_v59 = vpop.f32.mrb[149].mxu0 }
0x391c   :  { %v4872_v63 = vpop.f32.mrb[150].mxu0  ;;  %v4919_v1 = vpop.f32.mrb[144].mxu1 }
0x391d   :  { %v4927_v58 = vadd.f32 %v4925_v15, %v7204_v34  ;;  %v4926_v47 = vmul.f32 0.35355338, %v4919_v1  ;;  %v6631_v61 = vpop.f32.mrb[151].mxu0  ;;  %v6636_v62 = vpop.f32.mrb[145].mxu1 }
0x391e   :  { %v4922_v5 = vpop.f32.mrb[146].mxu1 }
0x391f   :  { %v4928_v6 = vadd.f32 %v4926_v47, %v7207_v39  ;;  %v6637_v24 = vpop.f32.mrb[147].mxu1  ;;  %v4929_v9 = vsel %vm161_vm2, %v4927_v58, -inf }
0x3920   :  { %4930 = vmax.xlane.f32.xlu1 %v4929_v9 }
0x3921   :  { %v4932_v12 = vsel %vm161_vm2, %v4928_v6, -inf }
0x3922   :  { %4933 = vmax.xlane.f32.xlu0 %v4932_v12 }
0x39ad   :  { %v4931_v16 = vpop.xlane.xlu1 %4930 }
0x39ae   :  { %v4935_v20 = vsub.f32 %v4927_v58, %v4931_v16 }
0x39af   :  { %v4934_v13 = vpop.xlane.xlu0 %4933 }
0x39b0   :  { %v4937_v21 = vmul.f32 1.442695, %v4935_v20  ;;  %v4936_v25 = vsub.f32 %v4928_v6, %v4934_v13 }
0x39b2   :  { %6992 = vpow2.f32 %v4937_v21  ;;  %v4939_v34 = vmul.f32 1.442695, %v4936_v25 }
0x39b4   :  { %6994 = vpow2.f32 %v4939_v34 }
0x39bc   :  { %v6993_v27 = vpop.eup %6992 }
0x39bd   :  { %v4941_v28 = vsel %vm161_vm2, %v6993_v27, 0.0 }
0x39be   :  { %v6995_v32 = vpop.eup %6994  ;;  %4942 = vadd.xlane.f32.xlu0 %v4941_v28 }
0x39bf   :  { %v4944_v39 = vsel %vm161_vm2, %v6995_v32, 0.0 }
0x39c0   :  { %4945 = vadd.xlane.f32.xlu1 %v4944_v39 }
0x39d1   :  { %5001 = vrot.lane.b32.xlu1 %v8014_v11, %s7072_s23 }
0x39d4   :  { %4953 = vrot.lane.b32.xlu0 %v8012_v10, %s7072_s23 }
0x39d5   :  { %6772 = vrot.lane.b32.xlu1 %v6771_v37, %s7058_s24 }
0x39d8   :  { %6777 = vrot.lane.b32.xlu0 %v6776_v3, %s7073_s25 }
0x3a4b   :  { %v4943_v33 = vpop.xlane.xlu0 %4942 }
0x3a4c   :  { %6996 = vrcp.f32 %v4943_v33 }
0x3a4d   :  { %v4946_v38 = vpop.xlane.xlu1 %4945 }
0x3a4e   :  { %6998 = vrcp.f32 %v4946_v38 }
0x3a4f   :  { %v4954_v40 = vpop.permute.xlu0 %4953 }
0x3a50   :  { %v4959_v41 = vsel %vm300_vm3, %v4954_v40, 0 }
0x3a51   :  { %6639 = vmatpush3.bf16.msra.mxu0 %v4959_v41  ;;  %v5002_v22 = vpop.permute.xlu1 %5001 }
0x3a52   :  { %v5007_v11 = vsel %vm300_vm3, %v5002_v22, 0  ;;  %6650 = vmatprep.subr.bf16.mxu0 %v7059_v0 }
0x3a53   :  { %6645 = vmatpush3.bf16.msra.mxu1 %v5007_v11  ;;  %v6778_v1 = vpop.permute.xlu0 %6777 }
0x3a54   :  { %6658 = vmatprep.subr.bf16.mxu1 %v7059_v0  ;;  %v6780_v61 = vunpack.i.h.bf16 %v6778_v1  ;;  %v6779_v62 = vunpack.i.l.bf16 %v6778_v1  ;;  %v5188_v1 = vrot.slane %v8008_v60, %v7403_v2 }
0x3a55   :  { %v6773_v15 = vpop.permute.xlu1 %6772 }
0x3a56   :  { %v6997_v10 = vpop.eup %6996  ;;  %v6775_v59 = vunpack.i.h.bf16 %v6773_v15  ;;  %v6774_v63 = vunpack.i.l.bf16 %v6773_v15 }
0x3a57   :  { %v4949_v30 = vmul.f32 %v6997_v10, %v6993_v27 }
0x3a58   :  { %v6999_v36 = vpop.eup %6998  ;;  %v5074_v58 = vsel %vm161_vm2, %v8072_v14, %v6775_v59  ;;  %v5073_v47 = vsel %vm161_vm2, %v8070_v19, %v6774_v63  ;;  %v5089_v19 = vrot.slane %v8008_v60, %v7379_v26 }
0x3a59   :  { %v4950_v37 = vmul.f32 %v6999_v36, %v6995_v32  ;;  %v4951_v52 = vpack.c.bf16 %v4949_v30, %v4949_v30  ;;  %v5075_v9 = vsel %vm1090_vm4, %v5073_v47, %v6779_v62  ;;  %v5076_v12 = vsel %vm1090_vm4, %v5074_v58, %v6780_v61 }
0x3a5b   :  { %6641 = vmatmul.mubr.msk.bf16.vlgmr.msra.gmra.mrb[152].mxu0 %vm161_vm2, %v4951_v52  ;;  %v4952_v17 = vpack.c.bf16 %v4950_v37, %v4950_v37 }
0x3a5c   :  { %6654 = vmatprep.mubr.msk.bf16.mxu0 %vm7060_vm0, %v7059_v0  ;;  %6651 = vmatpush3.bf16.msra.mxu0 %v6818_v46  ;;  %v6820_v46 = vld [vmem:[%s8345_s4 + $0x30] sm:$0xff]  }
0x3a5d   :  { %6647 = vmatmul.mubr.msk.bf16.vlgmr.msra.gmra.mrb[148].mxu1 %vm161_vm2, %v4952_v17  ;;  %6652 = vmatprep.subr.bf16.mxu0 %v7059_v0 }
0x3a5e   :  { %6662 = vmatprep.mubr.msk.bf16.mxu1 %vm7060_vm0, %v7059_v0  ;;  %6659 = vmatpush3.bf16.msra.mxu1 %v6820_v46 }
0x3a5f   :  { %6660 = vmatprep.subr.bf16.mxu1 %v7059_v0 }
0x3a60   :  { %6653 = vmatpush3.bf16.msra.mxu0 %v6819_v7  ;;  %v6821_v7 = vld [vmem:[%s8345_s4 + $0x38] sm:$0xff]  }
0x3a61   :  { %6666 = vmatprep.subr.bf16.mxu0 %v7059_v0 }
0x3a62   :  { %6661 = vmatpush3.bf16.msra.mxu1 %v6821_v7  ;;  %v5295_v7 = vrot.slane %v8008_v60, %v7435_v23 }
0x3a63   :  { %6678 = vmatprep.subr.bf16.mxu1 %v7059_v0 }
0x3b2e   :  { %v4995_v48 = vpop.f32.mrb[152].mxu0 }
0x3b2f   :  { %v6642_v49 = vpop.f32.mrb[153].mxu0 }
0x3b30   :  { %v4998_v56 = vpop.f32.mrb[154].mxu0  ;;  %v5043_v3 = vpop.f32.mrb[148].mxu1 }
0x3b31   :  { %v6781_v50 = vpack.i.bf16 %v5043_v3, %v4995_v48  ;;  %v6643_v53 = vpop.f32.mrb[155].mxu0  ;;  %v6648_v54 = vpop.f32.mrb[149].mxu1 }
0x3b32   :  { %v5046_v51 = vpop.f32.mrb[150].mxu1 }
0x3b33   :  { %v6649_v4 = vpop.f32.mrb[151].mxu1  ;;  %6782 = vrot.lane.b32.xlu1 %v6781_v50, %s7074_s29  ;;  %v5182_v51 = vrot.slane %v8008_v60, %v7398_v18 }
0x3ba5   :  { %v6783_v5 = vpop.permute.xlu1 %6782 }
0x3ba6   :  { %v6785_v6 = vunpack.i.h.bf16 %v6783_v5  ;;  %v6784_v24 = vunpack.i.l.bf16 %v6783_v5  ;;  %v6822_v5 = vld [vmem:[%s8346_s5 + $0x60] sm:$0xff]  }
0x3ba8   :  { %v5078_v16 = vsel %vm1093_vm5, %v5076_v12, %v6785_v6  ;;  %v5077_v20 = vsel %vm1093_vm5, %v5075_v9, %v6784_v24  ;;  %v6823_v6 = vld [vmem:[%s8346_s5 + $0x68] sm:$0xff]   ;;  %v6824_v24 = vld [vmem:[%s8346_s5 + $0x70] sm:$0xff]   ;;  %v6825_v9 = vld [vmem:[%s8346_s5 + $0x78] sm:$0xff]   ;;  %v5201_v12 = vrot.slane %v8008_v60, %v7427_v29  ;;  %s7075_s5 = smov 32  }
0x3ba9   :  { %v5951_v13 = vpack.c.bf16 %v5078_v16, %v5077_v20 }
0x3bab   :  { %6655 = vmatmul.mubr.msk.bf16.vlgmr.msra.gmra.mrb[156].mxu0 %vm111_vm1, %v5951_v13 }
0x3bac   :  { %6674 = vmatprep.mubr.msk.bf16.mxu0 %vm7060_vm0, %v7059_v0  ;;  %6667 = vmatpush3.bf16.msra.mxu0 %v6822_v5 }
0x3bad   :  { %6668 = vmatprep.subr.bf16.mxu0 %v7059_v0 }
0x3bb0   :  { %6669 = vmatpush3.bf16.msra.mxu0 %v6823_v6 }
0x3bb1   :  { %6670 = vmatprep.subr.bf16.mxu0 %v7059_v0 }
0x3bb4   :  { %6671 = vmatpush3.bf16.msra.mxu0 %v6824_v24 }
0x3bb5   :  { %6672 = vmatprep.subr.bf16.mxu0 %v7059_v0 }
0x3bb8   :  { %6673 = vmatpush3.bf16.msra.mxu0 %v6825_v9  ;;  %v5424_v9 = vrot.slane %v7998_v57, 7 }
0x3bb9   :  { %6698 = vmatprep.subr.bf16.mxu0 %v7059_v0 }
0x3c7e   :  { %v5144_v14 = vpop.f32.mrb[156].mxu0 }
0x3c7f   :  { %v5145_v21 = vadd.f32 %v5144_v14, %v5089_v19  ;;  %v6656_v25 = vpop.f32.mrb[157].mxu0 }
0x3c80   :  { %v5147_v34 = vpop.f32.mrb[158].mxu0 }
0x3c81   :  { %v5151_v27 = vadd.f32 %v5145_v21, %v7996_v55  ;;  %v5148_v28 = vadd.f32 %v5147_v34, %v5089_v19  ;;  %v6657_v32 = vpop.f32.mrb[159].mxu0 }
0x3c83   :  { %v5152_v39 = vadd.f32 %v5148_v28, %v7998_v57  ;;  %v5153_v33 = vsel %vm111_vm1, %v5151_v27, 0.0  ;;  %v6830_v57 = vld [vmem:[%s8348_s7 + $0x20] sm:$0xff]  }
0x3c84   :  { %5154 = vadd.xlane.f32.xlu0 %v5153_v33 }
0x3c85   :  { %v5156_v38 = vsel %vm111_vm1, %v5152_v39, 0.0 }
0x3c86   :  { %5157 = vadd.xlane.f32.xlu1 %v5156_v38 }
0x3d11   :  { %v5155_v40 = vpop.xlane.xlu0 %5154 }
0x3d12   :  { %v5159_v41 = vmul.f32 0.03125, %v5155_v40 }
0x3d13   :  { %v5158_v22 = vpop.xlane.xlu1 %5157 }
0x3d14   :  { %v5161_v11 = vsub.f32 %v5151_v27, %v5159_v41  ;;  %v5160_v10 = vmul.f32 0.03125, %v5158_v22 }
0x3d16   :  { %v5162_v30 = vsub.f32 %v5152_v39, %v5160_v10  ;;  %v5163_v36 = vmul.f32 %v5161_v11, %v5161_v11 }
0x3d18   :  { %v5165_v37 = vsel %vm111_vm1, %v5163_v36, 0.0  ;;  %v5164_v52 = vmul.f32 %v5162_v30, %v5162_v30 }
0x3d19   :  { %5166 = vadd.xlane.f32.xlu0 %v5165_v37 }
0x3d1a   :  { %v5168_v17 = vsel %vm111_vm1, %v5164_v52, 0.0 }
0x3d1d   :  { %5169 = vadd.xlane.f32.xlu0 %v5168_v17 }
0x3da6   :  { %v5167_v48 = vpop.xlane.xlu0 %5166 }
0x3da7   :  { %v5171_v49 = vmul.f32 0.03125, %v5167_v48 }
0x3da9   :  { %v5173_v56 = vadd.f32 1e-12, %v5171_v49 }
0x3daa   :  { %v5170_v3 = vpop.xlane.xlu0 %5169 }
0x3dab   :  { %7000 = vrsqrt.f32 %v5173_v56  ;;  %v5172_v50 = vmul.f32 0.03125, %v5170_v3 }
0x3dad   :  { %v5174_v53 = vadd.f32 1e-12, %v5172_v50 }
0x3daf   :  { %7002 = vrsqrt.f32 %v5174_v53 }
0x3db5   :  { %v7001_v54 = vpop.eup %7000 }
0x3db6   :  { %v5177_v4 = vmul.f32 %v7001_v54, %v5161_v11 }
0x3db8   :  { %v5183_v59 = vmul.f32 %v5182_v51, %v5177_v4 }
0x3db9   :  { %v7003_v15 = vpop.eup %7002 }
0x3dba   :  { %v5178_v63 = vmul.f32 %v7003_v15, %v5162_v30  ;;  %v5189_v47 = vadd.f32 %v5188_v1, %v5183_v59 }
0x3dbc   :  { %v5184_v58 = vmul.f32 %v5182_v51, %v5178_v63 }
0x3dbe   :  { %v5190_v61 = vadd.f32 %v5188_v1, %v5184_v58 }
0x3dc0   :  { %v5952_v62 = vpack.c.bf16 %v5190_v61, %v5189_v47 }
0x3dc2   :  { %6663 = vmatmul.mubr.msk.bf16.vlgmr.msra.gmra.mrb[152].mxu1 %vm111_vm1, %v5952_v62 }
0x3dc3   :  { %6694 = vmatprep.mubr.msk.bf16.mxu1 %vm7060_vm0, %v7059_v0 }
0x3e95   :  { %v5256_v16 = vpop.f32.mrb[152].mxu1 }
0x3e96   :  { %v5257_v20 = vadd.f32 %v5256_v16, %v5201_v12  ;;  %v6664_v13 = vpop.f32.mrb[153].mxu1  ;;  %v5425_v16 = vsel %vm5412_vm7, %v5424_v9, %v7996_v55  ;;  %v6829_v55 = vld [vmem:[%s8348_s7 + $0x18] sm:$0xff]  }
0x3e97   :  { %v5259_v19 = vpop.f32.mrb[154].mxu1  ;;  %v6831_v13 = vld [vmem:[%s8348_s7 + $0x28] sm:$0xff]  }
0x3e98   :  { %v5263_v14 = vmul.f32 %v5257_v20, %v5257_v20  ;;  %v5260_v21 = vadd.f32 %v5259_v19, %v5201_v12  ;;  %v6665_v25 = vpop.f32.mrb[155].mxu1  ;;  %v6832_v19 = vld [vmem:[%s8348_s7 + $0x30] sm:$0xff]  }
0x3e9a   :  { %v5265_v34 = vmul.f32 %v5263_v14, %v5257_v20  ;;  %v5264_v27 = vmul.f32 %v5260_v21, %v5260_v21 }
0x3e9c   :  { %v5267_v28 = vmul.f32 0.044715, %v5265_v34  ;;  %v5266_v32 = vmul.f32 %v5264_v27, %v5260_v21 }
0x3e9e   :  { %v5269_v39 = vadd.f32 %v5267_v28, %v5257_v20  ;;  %v5268_v33 = vmul.f32 0.044715, %v5266_v32  ;;  %v6833_v32 = vld [vmem:[%s8348_s7 + $0x38] sm:$0xff]  }
0x3ea0   :  { %v5271_v38 = vmul.f32 0.7978846, %v5269_v39  ;;  %v5270_v40 = vadd.f32 %v5268_v33, %v5260_v21 }
0x3ea2   :  { %7004 = vtanh.f32 %v5271_v38  ;;  %v5272_v41 = vmul.f32 0.7978846, %v5270_v40  ;;  %v7031_v38 = vld [vmem:[%s8347_s6 + $0x18] sm:$0xff] }
0x3ea3   :  { %v5400_v40 = vrot.slane %v7031_v38, %v7452_v31 }
0x3ea4   :  { %7006 = vtanh.f32 %v5272_v41 }
0x3eac   :  { %v7005_v22 = vpop.eup %7004 }
0x3ead   :  { %v5275_v11 = vadd.f32 1.0, %v7005_v22 }
0x3eae   :  { %v7007_v10 = vpop.eup %7006 }
0x3eaf   :  { %v5277_v30 = vmul.f32 0.5, %v5275_v11  ;;  %v5276_v36 = vadd.f32 1.0, %v7007_v10 }
0x3eb1   :  { %v5278_v37 = vmul.f32 0.5, %v5276_v36  ;;  %v5279_v52 = vmul.f32 %v5277_v30, %v5257_v20  ;;  %v6826_v20 = vld [vmem:[%s8348_s7] sm:$0xff]   ;;  %v5406_v30 = vrot.slane %v7031_v38, %v7459_v35 }
0x3eb2   :  { %6679 = vmatpush3.bf16.msra.mxu1 %v6826_v20 }
0x3eb3   :  { %v5280_v17 = vmul.f32 %v5278_v37, %v5260_v21  ;;  %6680 = vmatprep.subr.bf16.mxu1 %v7059_v0 }
0x3eb5   :  { %v5953_v46 = vpack.c.bf16 %v5280_v17, %v5279_v52 }
0x3eb7   :  { %6675 = vmatmul.mubr.msk.bf16.vlgmr.msra.gmra.mrb[160].mxu0 %vm1340_vm6, %v5953_v46  ;;  %v5411_v46 = vrot.slane %v7464_v44, 7 }
0x3eb8   :  { %6702 = vmatprep.mubr.msk.bf16.mxu0 %vm7060_vm0, %v7059_v0 }
0x3f8a   :  { %v5362_v48 = vpop.f32.mrb[160].mxu0 }
0x3f8b   :  { %v5363_v49 = vadd.f32 %v5362_v48, %v5295_v7  ;;  %v6676_v56 = vpop.f32.mrb[161].mxu0  ;;  %v5413_v48 = vsel %vm5412_vm7, %v5411_v46, %v7462_v43 }
0x3f8c   :  { %v5365_v3 = vpop.f32.mrb[162].mxu0 }
0x3f8d   :  { %v5369_v50 = vadd.f32 %v5363_v49, %v5189_v47  ;;  %v5366_v53 = vadd.f32 %v5365_v3, %v5295_v7  ;;  %v6677_v54 = vpop.f32.mrb[163].mxu0 }
0x3f8f   :  { %v5370_v51 = vadd.f32 %v5366_v53, %v5190_v61  ;;  %v5371_v4 = vsel %vm111_vm1, %v5369_v50, 0.0  ;;  %v5417_v61 = vrot.slane %v7731_v45, 7  ;;  %v6827_v45 = vld [vmem:[%s8348_s7 + $0x8] sm:$0xff]  }
0x3f90   :  { %5372 = vadd.xlane.f32.xlu0 %v5371_v4  ;;  %6681 = vmatpush3.bf16.msra.mxu1 %v6827_v45 }
0x3f91   :  { %v5374_v15 = vsel %vm111_vm1, %v5370_v51, 0.0  ;;  %v5418_v12 = vsel %vm5412_vm7, %v5417_v61, %v7729_v42  ;;  %v6828_v42 = vld [vmem:[%s8348_s7 + $0x10] sm:$0xff]   ;;  %6682 = vmatprep.subr.bf16.mxu1 %v7059_v0 }
0x3f92   :  { %5375 = vadd.xlane.f32.xlu1 %v5374_v15 }
0x3f94   :  { %6683 = vmatpush3.bf16.msra.mxu1 %v6828_v42 }
0x3f95   :  { %6684 = vmatprep.subr.bf16.mxu1 %v7059_v0 }
0x3f98   :  { %6685 = vmatpush3.bf16.msra.mxu1 %v6829_v55 }
0x3f99   :  { %6686 = vmatprep.subr.bf16.mxu1 %v7059_v0 }
0x3f9c   :  { %6687 = vmatpush3.bf16.msra.mxu1 %v6830_v57 }
0x3f9d   :  { %6688 = vmatprep.subr.bf16.mxu1 %v7059_v0 }
0x3fa0   :  { %6689 = vmatpush3.bf16.msra.mxu1 %v6831_v13 }
0x3fa1   :  { %6690 = vmatprep.subr.bf16.mxu1 %v7059_v0 }
0x3fa4   :  { %6691 = vmatpush3.bf16.msra.mxu1 %v6832_v19 }
0x3fa5   :  { %6692 = vmatprep.subr.bf16.mxu1 %v7059_v0 }
0x3fa8   :  { %6693 = vmatpush3.bf16.msra.mxu1 %v6833_v32 }
0x401d   :  { %v5373_v59 = vpop.xlane.xlu0 %5372 }
0x401e   :  { %v5377_v63 = vmul.f32 0.03125, %v5373_v59 }
0x401f   :  { %v5376_v1 = vpop.xlane.xlu1 %5375 }
0x4020   :  { %v5379_v58 = vsub.f32 %v5369_v50, %v5377_v63  ;;  %v5378_v62 = vmul.f32 0.03125, %v5376_v1 }
0x4022   :  { %v5380_v60 = vsub.f32 %v5370_v51, %v5378_v62  ;;  %v5381_v5 = vmul.f32 %v5379_v58, %v5379_v58  ;;  %v8304_v51 = vld [vmem:[%s8350_s9] sm:$0xff] }
0x4023   :  { %v5460_v44 = vrot.slane %v8304_v51, %v7170_v8  ;;  %v5571_v45 = vrot.slane %v8304_v51, %v7398_v18 }
0x4024   :  { %v5383_v6 = vsel %vm111_vm1, %v5381_v5, 0.0  ;;  %v5382_v24 = vmul.f32 %v5380_v60, %v5380_v60 }
0x4025   :  { %5384 = vadd.xlane.f32.xlu0 %v5383_v6 }
0x4026   :  { %v5386_v47 = vsel %vm111_vm1, %v5382_v24, 0.0  ;;  %v6834_v24 = vld [vmem:[%s8349_s8] sm:$0xff]  }
0x4027   :  { %5387 = vadd.xlane.f32.xlu1 %v5386_v47  ;;  %6699 = vmatpush3.bf16.msra.mxu0 %v6834_v24  ;;  %v6835_v47 = vld [vmem:[%s8349_s8 + $0x8] sm:$0xff]  }
0x4028   :  { %6700 = vmatprep.subr.bf16.mxu0 %v7059_v0 }
0x402b   :  { %6701 = vmatpush3.bf16.msra.mxu0 %v6835_v47 }
0x4038   :  { %5419 = vrot.lane.b32.xlu1 %v5418_v12, %s7075_s5 }
0x403b   :  { %5426 = vrot.lane.b32.xlu0 %v5425_v16, %s7063_s1  ;;  %v5566_v16 = vrot.slane %v8304_v51, %v7379_v26 }
0x40b2   :  { %v5385_v14 = vpop.xlane.xlu0 %5384 }
0x40b3   :  { %v5389_v21 = vmul.f32 0.03125, %v5385_v14 }
0x40b4   :  { %v5388_v25 = vpop.xlane.xlu1 %5387 }
0x40b5   :  { %v5391_v34 = vadd.f32 1e-12, %v5389_v21  ;;  %v5390_v27 = vmul.f32 0.03125, %v5388_v25 }
0x40b6   :  { %v5427_v56 = vpop.permute.xlu0 %5426 }
0x40b7   :  { %7008 = vrsqrt.f32 %v5391_v34  ;;  %v5392_v28 = vadd.f32 1e-12, %v5390_v27 }
0x40b8   :  { %v5420_v7 = vpop.permute.xlu1 %5419 }
0x40b9   :  { %7010 = vrsqrt.f32 %v5392_v28  ;;  %v5436_v49 = vsel %vm111_vm1, %v5413_v48, %v5420_v7 }
0x40ba   :  { %v5437_v3 = vsel %vm1340_vm6, %v5436_v49, %v5427_v56 }
0x40c1   :  { %v7009_v39 = vpop.eup %7008 }
0x40c2   :  { %v5395_v33 = vmul.f32 %v7009_v39, %v5379_v58 }
0x40c3   :  { %v7011_v41 = vpop.eup %7010 }
0x40c4   :  { %v5396_v22 = vmul.f32 %v7011_v41, %v5380_v60  ;;  %v5401_v11 = vmul.f32 %v5400_v40, %v5395_v33  ;;  %v5597_v41 = vrot.slane %v8304_v51, %v7403_v2  ;;  %v5671_v2 = vrot.slane %v8304_v51, %v7427_v29 }
0x40c6   :  { %v5402_v10 = vmul.f32 %v5400_v40, %v5396_v22  ;;  %v5407_v37 = vadd.f32 %v5406_v30, %v5401_v11 }
0x40c8   :  { %v5408_v36 = vadd.f32 %v5406_v30, %v5402_v10 }
0x40ca   :  { %v5431_v52 = vrot.slane %v5408_v36, 7 }
0x40cc   :  { %v5432_v17 = vsel %vm5412_vm7, %v5431_v52, %v5407_v37 }
0x40cd   :  { %5433 = vrot.lane.b32.xlu1 %v5432_v17, %s7061_s12 }
0x413f   :  { %v5434_v50 = vpop.permute.xlu1 %5433 }
0x4140   :  { %v5439_v53 = vsel %vm5438_vm8, %v5437_v3, %v5434_v50 }
0x4141   :  { %v5440_v54 = vpack.c.bf16 %v5439_v53, %v5439_v53 }
0x4143   :  { %6695 = vmatmul.mubr.bf16.vlgmr.msra.gmra.mrb[156].mxu1 %v5440_v54  ;;  %v5676_v54 = vrot.slane %v8304_v51, %v7435_v23  ;;  %v5697_v23 = vrot.slane %v8304_v51, %v7452_v31 }
0x4216   :  { %v5543_v4 = vpop.f32.mrb[156].mxu1 }
0x4217   :  { %v5544_v43 = vadd.f32 %v5543_v4, %v5460_v44  ;;  %v6696_v15 = vpop.f32.mrb[157].mxu1 }
0x4218   :  { %v5546_v59 = vpop.f32.mrb[158].mxu1 }
0x4219   :  { %v6697_v63 = vpop.f32.mrb[159].mxu1  ;;  %v5550_v1 = vsel %vm5549_vm9, %v5544_v43, 0.0 }
0x421a   :  { %5551 = vadd.xlane.f32.xlu1 %v5550_v1 }
0x42a7   :  { %v5552_v58 = vpop.xlane.xlu1 %5551 }
0x42a8   :  { %v5553_v62 = vmul.f32 0.03125, %v5552_v58 }
0x42aa   :  { %v5554_v60 = vsub.f32 %v5544_v43, %v5553_v62 }
0x42ac   :  { %v5555_v5 = vmul.f32 %v5554_v60, %v5554_v60 }
0x42ae   :  { %v5556_v6 = vsel %vm5549_vm9, %v5555_v5, 0.0 }
0x42af   :  { %5557 = vadd.xlane.f32.xlu0 %v5556_v6 }
0x433c   :  { %v5558_v61 = vpop.xlane.xlu0 %5557 }
0x433d   :  { %v5559_v9 = vmul.f32 0.03125, %v5558_v61 }
0x433f   :  { %v5560_v12 = vadd.f32 1e-05, %v5559_v9 }
0x4341   :  { %7012 = vrsqrt.f32 %v5560_v12 }
0x434b   :  { %v7013_v20 = vpop.eup %7012 }
0x434c   :  { %v5562_v42 = vmul.f32 %v7013_v20, %v5554_v60 }
0x434e   :  { %v5567_v55 = vmul.f32 %v5566_v16, %v5562_v42  ;;  %v5705_v16 = vrot.slane %v8304_v51, %v7459_v35 }
0x4350   :  { %v5572_v57 = vadd.f32 %v5571_v45, %v5567_v55 }
0x4352   :  { %v5574_v13 = vmin.f32 %v5572_v57, 20.0  ;;  %vm5573_vm11 = vcmp.gt.f32.partialorder %v5572_v57, 20.0 }
0x4354   :  { %v5575_v19 = vmul.f32 1.442695, %v5574_v13  ;;  %v58_v13 = vld [vmem:[%s8350_s9 + $0x8] sm:$0x3] }
0x4355   :  { %v5717_v31 = vrot.slane %v58_v13, %v7170_v8 }
0x4356   :  { %7014 = vpow2.f32 %v5575_v19 }
0x4360   :  { %v7015_v14 = vpop.eup %7014 }
0x4361   :  { %v5577_v0 = vadd.f32 1.0, %v7015_v14  ;;  %v5580_v21 = vmul.f32 -0.5, %v7015_v14  ;;  %v5583_v34 = vand.u32 2147483647, %v7015_v14 }
0x4363   :  { %7016 = vlog2.f32 %v5577_v0  ;;  %v5581_v25 = vadd.f32 1.0, %v5580_v21  ;;  %vm5584_vm10 = vcmp.lt.f32.partialorder %v5583_v34, 0.0004427343 }
0x4365   :  { %v5582_v32 = vmul.f32 %v7015_v14, %v5581_v25  ;;  %v5722_v14 = vrot.slane %v58_v13, %v7379_v26 }
0x436d   :  { %v7017_v27 = vpop.eup %7016 }
0x436e   :  { %v5579_v28 = vmul.f32 0.6931472, %v7017_v27 }
0x4370   :  { %v5585_v39 = vsel %vm5584_vm10, %v5582_v32, %v5579_v28 }
0x4371   :  { %v5586_v33 = vsel %vm5573_vm11, %v5572_v57, %v5585_v39 }
0x4372   :  { %7018 = vtanh.f32 %v5586_v33 }
0x437c   :  { %v7019_v18 = vpop.eup %7018 }
0x437d   :  { %v5588_v38 = vmul.f32 %v7019_v18, %v5572_v57 }
0x437f   :  { %v5589_v40 = vpack.c.bf16 %v5588_v38, %v5588_v38 }
0x4381   :  { %6703 = vmatmul.mubr.msk.bf16.vlgmr.msra.gmra.mrb[164].mxu0 %vm111_vm1, %v5589_v40 }
0x4454   :  { %v5647_v22 = vpop.f32.mrb[164].mxu0 }
0x4455   :  { %v5648_v11 = vadd.f32 %v5647_v22, %v5597_v41  ;;  %v6704_v10 = vpop.f32.mrb[165].mxu0 }
0x4456   :  { %v5650_v30 = vpop.f32.mrb[166].mxu0 }
0x4457   :  { %v6705_v36 = vpop.f32.mrb[167].mxu0  ;;  %v5654_v37 = vsel %vm5653_vm12, %v5648_v11, 0.0 }
0x4458   :  { %5655 = vadd.xlane.f32.xlu0 %v5654_v37 }
0x44e5   :  { %v5656_v52 = vpop.xlane.xlu0 %5655 }
0x44e6   :  { %v5658_v17 = vmul.f32 0.0625, %v5656_v52 }
0x44e8   :  { %v5659_v46 = vsub.f32 %v5648_v11, %v5658_v17 }
0x44ea   :  { %v5660_v7 = vmul.f32 %v5659_v46, %v5659_v46 }
0x44ec   :  { %v5661_v48 = vsel %vm5653_vm12, %v5660_v7, 0.0 }
0x44ed   :  { %5662 = vadd.xlane.f32.xlu1 %v5661_v48 }
0x457a   :  { %v5663_v49 = vpop.xlane.xlu1 %5662 }
0x457b   :  { %v5664_v56 = vmul.f32 0.0625, %v5663_v49 }
0x457d   :  { %v5665_v3 = vadd.f32 1e-05, %v5664_v56 }
0x457f   :  { %7020 = vrsqrt.f32 %v5665_v3 }
0x4589   :  { %v7021_v50 = vpop.eup %7020 }
0x458a   :  { %v5667_v53 = vmul.f32 %v7021_v50, %v5659_v46 }
0x458c   :  { %v5672_v44 = vmul.f32 %v5671_v2, %v5667_v53 }
0x458e   :  { %v5677_v4 = vadd.f32 %v5676_v54, %v5672_v44 }
0x4590   :  { %v5679_v43 = vmin.f32 %v5677_v4, 20.0  ;;  %vm5678_vm14 = vcmp.gt.f32.partialorder %v5677_v4, 20.0 }
0x4592   :  { %v5680_v15 = vmul.f32 1.442695, %v5679_v43 }
0x4594   :  { %7022 = vpow2.f32 %v5680_v15 }
0x459e   :  { %v7023_v59 = vpop.eup %7022 }
0x459f   :  { %v5682_v63 = vadd.f32 1.0, %v7023_v59  ;;  %v5685_v1 = vmul.f32 -0.5, %v7023_v59  ;;  %v5688_v62 = vand.u32 2147483647, %v7023_v59 }
0x45a1   :  { %7024 = vlog2.f32 %v5682_v63  ;;  %v5686_v58 = vadd.f32 1.0, %v5685_v1  ;;  %vm5689_vm13 = vcmp.lt.f32.partialorder %v5688_v62, 0.0004427343 }
0x45a3   :  { %v5687_v6 = vmul.f32 %v7023_v59, %v5686_v58 }
0x45ab   :  { %v7025_v60 = vpop.eup %7024 }
0x45ac   :  { %v5684_v5 = vmul.f32 0.6931472, %v7025_v60 }
0x45ae   :  { %v5690_v29 = vsel %vm5689_vm13, %v5687_v6, %v5684_v5 }
0x45af   :  { %v5691_v24 = vsel %vm5678_vm14, %v5677_v4, %v5690_v29 }
0x45b0   :  { %7026 = vtanh.f32 %v5691_v24 }
0x45ba   :  { %v7027_v47 = vpop.eup %7026 }
0x45bb   :  { %v5693_v61 = vmul.f32 %v7027_v47, %v5677_v4 }
0x45bd   :  { %v5698_v9 = vmul.f32 %v5697_v23, %v5693_v61 }
0x45bf   :  { %v5699_v12 = vsel %vm5653_vm12, %v5698_v9, 0.0 }
0x45c0   :  { %5700 = vadd.xlane.f32.xlu0 %v5699_v12 }
0x464d   :  { %v5701_v20 = vpop.xlane.xlu0 %5700 }
0x464e   :  { %v5706_v45 = vadd.f32 %v5705_v16, %v5701_v20 }
0x4650   :  { %v5708_v42 = vsub.f32 %v5706_v45, %v5706_v45 }
0x4652   :  { %v5709_v55 = vmul.f32 %v5708_v42, %v5708_v42 }
0x4654   :  { %v5711_v57 = vadd.f32 1e-05, %v5709_v55 }
0x4656   :  { %7028 = vrsqrt.f32 %v5711_v57 }
0x4660   :  { %v7029_v19 = vpop.eup %7028 }
0x4661   :  { %v5713_v0 = vmul.f32 %v7029_v19, %v5708_v42 }
0x4663   :  { %v5718_v21 = vmul.f32 %v5717_v31, %v5713_v0 }
0x4665   :  { %v5723_v25 = vadd.f32 %v5722_v14, %v5718_v21 }
0x4667   :  { %5725 = vst.msk [vmem:[%s8351_s10] sm:$0x3] %vm5724_vm15, %v5723_v25 }
0x4668   :  { %5730 = vsyncpa [#allocation3], 1 }

</bundles_post_ra>
